<compile_context>
chip_gen: v7x
topology: tpu7x:2x2x1
jax: 0.10.0
libtpu: 0.0.40
codegen_flags: <defaults>
</compile_context>

<pallas_src>
import functools

import jax
import jax.numpy as jnp
from jax import lax
from jax.experimental import pallas as pl
from jax.experimental.pallas import tpu as pltpu

_VMEM_LIMIT = 48 * 1024 * 1024     # conservative: fits v7x's 64 MiB physical VMEM
_ROW_TILE = 512                    # measured sweet spot for f32 elementwise tiles


def _round_up(x, m):
    return (x + m - 1) // m * m


def _compiler_params(semantics):
    return pltpu.CompilerParams(dimension_semantics=semantics,
                                vmem_limit_bytes=_VMEM_LIMIT)


# ------------------------- Direct convolution kernel ------------------------ #
def _conv_kernel(taps, lq, wp, wo, ho, x_ref, w_ref, y_ref, st_ref):
    """Direct conv on a flattened padded image + fused BN-statistics epilogue.

    x_ref:  (1, S, Ls, Cin)   phase streams of the flat padded image
    w_ref:  (T, Cin, TCo)     per-tap weights
    y_ref:  (1, Ho, Wo, TCo)  conv output written directly in NHWC
    st_ref: (1, 2, TCo)       per-channel [sum, sum-of-squares] over valid rows
    """
    tco = w_ref.shape[-1]
    acc = jnp.zeros((lq, tco), jnp.float32)
    for t, (phase, off) in enumerate(taps):
        lhs = x_ref[0, phase, pl.ds(off, lq), :]            # (Lq, Cin) static slice
        acc = acc + jnp.dot(lhs, w_ref[t],
                            preferred_element_type=jnp.float32)

    # Flat row q = h*Wp + w; only w < Wo are real output positions. Scatter the
    # valid rows straight into the NHWC output block (static sublane slices).
    for h in range(ho):
        y_ref[0, h, :, :] = acc[h * wp:h * wp + wo, :]

    # BN batch statistics over valid output positions only (mask filler rows).
    q = lax.broadcasted_iota(jnp.int32, (lq, 1), 0)
    acc_v = jnp.where((q % wp) < wo, acc, 0.0)
    s1 = jnp.sum(acc_v, axis=0, keepdims=True)              # (1, TCo)
    s2 = jnp.sum(acc_v * acc_v, axis=0, keepdims=True)      # (1, TCo)
    st_ref[0] = jnp.concatenate([s1, s2], axis=0)


def conv2d_with_stats(x, w, stride, padding):
    """x: (N,H,W,Cin) NHWC f32; w: (Cout,Cin,KH,KW) (PyTorch OIHW layout).

    Returns (y: (N,Ho,Wo,Cout) f32, stats: (N,2,Cout) per-image channel sums).
    """
    N, H, W, Cin = x.shape
    Cout, Cin2, KH, KW = w.shape
    assert Cin == Cin2
    Hp, Wp = H + 2 * padding, W + 2 * padding
    Ho = (Hp - KH) // stride + 1
    Wo = (Wp - KW) // stride + 1
    P = Hp * Wp
    Lq = (Ho - 1) * Wp + Wo            # flat output rows computed per image

    xp = x if padding == 0 else jnp.pad(
        x, ((0, 0), (padding, padding), (padding, padding), (0, 0)))
    x_flat = xp.reshape(N, P, Cin)
    if stride == 1:
        xs = x_flat[:, None]                                 # (N, 1, P, Cin)
    else:
        ls = -(-P // stride)
        streams = []
        for r in range(stride):
            s_r = x_flat[:, r::stride, :]
            if s_r.shape[1] < ls:
                s_r = jnp.pad(s_r, ((0, 0), (0, ls - s_r.shape[1]), (0, 0)))
            streams.append(s_r)
        xs = jnp.stack(streams, axis=1)                      # (N, s, Ls, Cin)
    S, Ls = xs.shape[1], xs.shape[2]

    # Tap (kh,kw) of output row q reads flat element stride*q + d with
    # d = kh*Wp + kw, i.e. element (q + d//stride) of phase stream (d % stride).
    taps = tuple(((kh * Wp + kw) % stride, (kh * Wp + kw) // stride)
                 for kh in range(KH) for kw in range(KW))
    wt = jnp.transpose(w, (2, 3, 1, 0)).reshape(KH * KW, Cin, Cout)

    # Tile output channels when large so output/weight blocks stay VMEM-bounded.
    tco = Cout if (Cout <= 256 or Cout % 256 != 0) else 256

    kernel = functools.partial(_conv_kernel, taps, Lq, Wp, Wo, Ho)
    y, stats = pl.pallas_call(
        kernel,
        out_shape=(jax.ShapeDtypeStruct((N, Ho, Wo, Cout), jnp.float32),
                   jax.ShapeDtypeStruct((N, 2, Cout), jnp.float32)),
        grid_spec=pltpu.PrefetchScalarGridSpec(
            num_scalar_prefetch=0,
            grid=(N, Cout // tco),
            in_specs=[
                pl.BlockSpec((1, S, Ls, Cin), lambda n, j: (n, 0, 0, 0)),
                pl.BlockSpec((KH * KW, Cin, tco), lambda n, j: (0, 0, j)),
            ],
            out_specs=(
                pl.BlockSpec((1, Ho, Wo, tco), lambda n, j: (n, 0, 0, j)),
                pl.BlockSpec((1, 2, tco), lambda n, j: (n, 0, j)),
            )),
        compiler_params=_compiler_params(("parallel", "parallel")),
    )(xs, wt)
    return y, stats


# ------------ Fused BatchNorm fold + affine (+residual, +ReLU) -------------- #
def _fold_stats(st, gamma, beta, inv_count, eps):
    """Fold fused conv statistics into per-channel scale/bias (train-mode BN)."""
    s = jnp.sum(st, axis=0)                          # (2, C): [sum, sum_sq]
    mean = s[0:1, :] * inv_count                     # (1, C)
    var = jnp.maximum(s[1:2, :] * inv_count - mean * mean, 0.0)
    scale = gamma * lax.rsqrt(var + eps)
    bias = beta - mean * scale
    return scale, bias


def _bn_act_kernel(relu, inv_count, eps, x_ref, st_ref, g_ref, b_ref, o_ref):
    scale, bias = _fold_stats(st_ref[...], g_ref[...], b_ref[...],
                              inv_count, eps)
    y = x_ref[...] * scale + bias
    if relu:
        y = jnp.maximum(y, 0.0)
    o_ref[...] = y


def _bn_res_act_kernel(relu, inv_count, eps, x_ref, st_ref, g_ref, b_ref,
                       r_ref, o_ref):
    scale, bias = _fold_stats(st_ref[...], g_ref[...], b_ref[...],
                              inv_count, eps)
    y = x_ref[...] * scale + bias + r_ref[...]
    if relu:
        y = jnp.maximum(y, 0.0)
    o_ref[...] = y


def _bn_res_bn_act_kernel(relu, inv_count, eps, x_ref, st_ref, g_ref, b_ref,
                          r_ref, rst_ref, rg_ref, rb_ref, o_ref):
    scale, bias = _fold_stats(st_ref[...], g_ref[...], b_ref[...],
                              inv_count, eps)
    r_scale, r_bias = _fold_stats(rst_ref[...], rg_ref[...], rb_ref[...],
                                  inv_count, eps)
    y = x_ref[...] * scale + bias + r_ref[...] * r_scale + r_bias
    if relu:
        y = jnp.maximum(y, 0.0)
    o_ref[...] = y


def batchnorm_act(x, stats, gamma, beta, *, residual=None, res_stats=None,
                  res_gamma=None, res_beta=None, relu=True, eps=1e-5):
    """Fused train-mode BN (+optional residual / residual-BN) + optional ReLU.

    The batch-statistic -> scale/bias fold happens inside the kernel; only the
    raw conv output, the tiny stats tensor(s) and gamma/beta are read.
    """
    N, H, W, C = x.shape
    R = N * H * W
    inv_count = 1.0 / float(R)
    x2 = x.reshape(R, C)
    g2 = gamma.reshape(1, C).astype(jnp.float32)
    b2 = beta.reshape(1, C).astype(jnp.float32)
    st = stats.astype(jnp.float32)

    if R <= _ROW_TILE:
        tr, Rp = R, R                        # single full block, no padding
    else:
        tr = _ROW_TILE
        Rp = _round_up(R, tr)
    if Rp != R:
        x2 = jnp.pad(x2, ((0, Rp - R), (0, 0)))

    row_spec = pl.BlockSpec((tr, C), lambda i: (i, 0))
    vec_spec = pl.BlockSpec((1, C), lambda i: (0, 0))
    st_spec = pl.BlockSpec(st.shape, lambda i: (0, 0, 0))

    if residual is None:
        kernel = functools.partial(_bn_act_kernel, relu, inv_count, eps)
        in_specs = [row_spec, st_spec, vec_spec, vec_spec]
        args = (x2, st, g2, b2)
    else:
        r2 = residual.astype(jnp.float32).reshape(R, C)
        if Rp != R:
            r2 = jnp.pad(r2, ((0, Rp - R), (0, 0)))
        if res_stats is None:
            kernel = functools.partial(_bn_res_act_kernel, relu, inv_count, eps)
            in_specs = [row_spec, st_spec, vec_spec, vec_spec, row_spec]
            args = (x2, st, g2, b2, r2)
        else:
            rst = res_stats.astype(jnp.float32)
            rg2 = res_gamma.reshape(1, C).astype(jnp.float32)
            rb2 = res_beta.reshape(1, C).astype(jnp.float32)
            rst_spec = pl.BlockSpec(rst.shape, lambda i: (0, 0, 0))
            kernel = functools.partial(_bn_res_bn_act_kernel, relu,
                                       inv_count, eps)
            in_specs = [row_spec, st_spec, vec_spec, vec_spec,
                        row_spec, rst_spec, vec_spec, vec_spec]
            args = (x2, st, g2, b2, r2, rst, rg2, rb2)

    out = pl.pallas_call(
        kernel,
        out_shape=jax.ShapeDtypeStruct((Rp, C), jnp.float32),
        grid_spec=pltpu.PrefetchScalarGridSpec(
            num_scalar_prefetch=0,
            grid=(Rp // tr,),
            in_specs=in_specs,
            out_specs=row_spec),
        compiler_params=_compiler_params(("parallel",)),
    )(*args)
    if Rp != R:
        out = out[:R]
    return out.reshape(N, H, W, C)


# ------------------------------ Bottleneck --------------------------------- #
def bottleneck_forward(params, x_nchw, stride=1, downsample=False, eps=1e-5):
    """Forward pass matching the PyTorch Bottleneck module (train-mode BN)."""
    x = jnp.transpose(x_nchw, (0, 2, 3, 1)).astype(jnp.float32)   # NCHW -> NHWC

    y1, st1 = conv2d_with_stats(x, params['conv1_w'], stride=stride, padding=1)
    g1, b1 = params['bn1']
    h = batchnorm_act(y1, st1, g1, b1, relu=True, eps=eps)         # bn1 + relu

    y2, st2 = conv2d_with_stats(h, params['conv2_w'], stride=1, padding=1)
    g2, b2 = params['bn2']

    if downsample:
        yd, std = conv2d_with_stats(x, params['down_w'], stride=stride,
                                    padding=0)
        gd, bd = params['dbn']
        # bn2 + downsample-bn + add + relu, all in one elementwise pass.
        out = batchnorm_act(y2, st2, g2, b2, residual=yd, res_stats=std,
                            res_gamma=gd, res_beta=bd, relu=True, eps=eps)
    else:
        out = batchnorm_act(y2, st2, g2, b2, residual=x, relu=True, eps=eps)

    return jnp.transpose(out, (0, 3, 1, 2))                        # NHWC -> NCHW


# ----------------------------- Parameter init ------------------------------ #
def init_bottleneck_params(key, inplaces, planes, downsample=False):
    keys = iter(jax.random.split(key, 16))

    def conv(cout, cin, kh, kw):
        std = (2.0 / (cin * kh * kw)) ** 0.5
        return std * jax.random.normal(next(keys), (cout, cin, kh, kw),
                                       jnp.float32)

    def bn(c):
        gamma = 1.0 + 0.1 * jax.random.normal(next(keys), (c,), jnp.float32)
        beta = 0.1 * jax.random.normal(next(keys), (c,), jnp.float32)
        return gamma, beta

    p = {'conv1_w': conv(planes, inplaces, 3, 3), 'bn1': bn(planes),
         'conv2_w': conv(planes, planes, 3, 3), 'bn2': bn(planes)}
    if downsample:
        p['down_w'] = conv(planes, inplaces, 1, 1)
        p['dbn'] = bn(planes)
    return p


# -------------------------- Pure-JAX reference ------------------------------ #
def _ref_bottleneck(params, x, stride, downsample, eps=1e-5):
    """XLA-conv reference of the module (train-mode BN) for validation."""
    def conv(z, w, s, p):
        return lax.conv_general_dilated(
            z, w, window_strides=(s, s), padding=((p, p), (p, p)),
            dimension_numbers=("NCHW", "OIHW", "NCHW"),
            precision=lax.Precision.HIGHEST)

    def bn(z, gb):
        gamma, beta = gb
        mean = jnp.mean(z, axis=(0, 2, 3), keepdims=True)
        var = jnp.mean(jnp.square(z - mean), axis=(0, 2, 3), keepdims=True)
        zn = (z - mean) * lax.rsqrt(var + eps)
        return zn * gamma.reshape(1, -1, 1, 1) + beta.reshape(1, -1, 1, 1)

    out = jnp.maximum(bn(conv(x, params['conv1_w'], stride, 1),
                         params['bn1']), 0.0)
    out = bn(conv(out, params['conv2_w'], 1, 1), params['bn2'])
    res = x
    if downsample:
        res = bn(conv(x, params['down_w'], stride, 0), params['dbn'])
    return jnp.maximum(out + res, 0.0)


if __name__ == "__main__":
    root = jax.random.PRNGKey(0)
    k_b1, k_b2, k_in = jax.random.split(root, 3)

    # Small shapes consistent with the module: N=2, Cin=4, 16x16 spatial (NCHW).
    x = jax.random.normal(k_in, (2, 4, 16, 16), jnp.float32)

    p_plain = init_bottleneck_params(k_b1, inplaces=4, planes=4,
                                     downsample=False)
    p_down = init_bottleneck_params(k_b2, inplaces=4, planes=8,
                                    downsample=True)

    @functools.partial(jax.jit, static_argnames=("stride", "downsample"))
    def fwd(params, inp, stride, downsample):
        return bottleneck_forward(params, inp, stride=stride,
                                  downsample=downsample)

    # Identity-residual block (stride 1, no downsample) ...
    h = fwd(p_plain, x, stride=1, downsample=False)
    # ... chained into a strided block with a 1x1-conv downsample path.
    y = fwd(p_down, h, stride=2, downsample=True)
    y = jax.block_until_ready(y)
    assert h.shape == (2, 4, 16, 16), h.shape
    assert y.shape == (2, 8, 8, 8), y.shape

    # Validate numerics against the pure-JAX (XLA conv) reference chain.
    h_ref = _ref_bottleneck(p_plain, x, 1, False)
    y_ref = _ref_bottleneck(p_down, h_ref, 2, True)
    err = float(jnp.max(jnp.abs(y - y_ref)))
    assert err < 3e-3, f"max abs error vs reference: {err}"

    print("KERNEL_OK")
</pallas_src>

<mosaic_0001>
module attributes {stable_mosaic.version = 11 : i64} {
  func.func @_bn_act_kernel(%arg0: i32, %arg1: memref<512x4xf32, #tpu.memory_space<vmem>>, %arg2: memref<2x2x4xf32, #tpu.memory_space<vmem>>, %arg3: memref<1x4xf32, #tpu.memory_space<vmem>>, %arg4: memref<1x4xf32, #tpu.memory_space<vmem>>, %arg5: memref<512x4xf32, #tpu.memory_space<vmem>>) attributes {dimension_semantics = [#tpu.dimension_semantics<parallel>], iteration_bounds = array<i64: 1>, scalar_prefetch = 0 : i64, scratch_operands = 0 : i64, tpu.core_type = #tpu.core_type<tc>, window_params = [{transform_indices = @transform_0, window_bounds = array<i64: 512, 4>}, {pipeline_mode = #tpu.pipeline_mode<synchronous>, transform_indices = @transform_1, window_bounds = array<i64: 2, 2, 4>}, {pipeline_mode = #tpu.pipeline_mode<synchronous>, transform_indices = @transform_2, window_bounds = array<i64: 1, 4>}, {pipeline_mode = #tpu.pipeline_mode<synchronous>, transform_indices = @transform_3, window_bounds = array<i64: 1, 4>}, {transform_indices = @transform_4, window_bounds = array<i64: 512, 4>}]} {
    %c0 = arith.constant 0 : index
    %c0_0 = arith.constant 0 : index
    %c0_1 = arith.constant 0 : index
    %0 = vector.load %arg2[%c0, %c0_0, %c0_1] : memref<2x2x4xf32, #tpu.memory_space<vmem>>, vector<2x2x4xf32>
    %c0_2 = arith.constant 0 : index
    %c0_3 = arith.constant 0 : index
    %1 = vector.load %arg3[%c0_2, %c0_3] : memref<1x4xf32, #tpu.memory_space<vmem>>, vector<1x4xf32>
    %c0_4 = arith.constant 0 : index
    %c0_5 = arith.constant 0 : index
    %2 = vector.load %arg4[%c0_4, %c0_5] : memref<1x4xf32, #tpu.memory_space<vmem>>, vector<1x4xf32>
    %cst = arith.constant dense<0.000000e+00> : vector<2x4xf32>
    %3 = vector.multi_reduction <add>, %0, %cst [0] : vector<2x2x4xf32> to vector<2x4xf32>
    %4 = vector.extract_strided_slice %3 {offsets = [0, 0], sizes = [1, 4], strides = [1, 1]} : vector<2x4xf32> to vector<1x4xf32>
    %cst_6 = arith.constant 0.001953125 : f32
    %5 = vector.broadcast %cst_6 : f32 to vector<1x4xf32>
    %6 = arith.mulf %4, %5 : vector<1x4xf32>
    %7 = vector.extract_strided_slice %3 {offsets = [1, 0], sizes = [1, 4], strides = [1, 1]} : vector<2x4xf32> to vector<1x4xf32>
    %cst_7 = arith.constant 0.001953125 : f32
    %8 = vector.broadcast %cst_7 : f32 to vector<1x4xf32>
    %9 = arith.mulf %7, %8 : vector<1x4xf32>
    %10 = arith.mulf %6, %6 : vector<1x4xf32>
    %11 = arith.subf %9, %10 : vector<1x4xf32>
    %cst_8 = arith.constant 0.000000e+00 : f32
    %12 = vector.broadcast %cst_8 : f32 to vector<1x4xf32>
    %13 = arith.maximumf %11, %12 : vector<1x4xf32>
    %cst_9 = arith.constant 9.99999974E-6 : f32
    %14 = vector.broadcast %cst_9 : f32 to vector<1x4xf32>
    %15 = arith.addf %13, %14 : vector<1x4xf32>
    %16 = math.rsqrt %15 : vector<1x4xf32>
    %17 = arith.mulf %1, %16 : vector<1x4xf32>
    %18 = arith.mulf %6, %17 : vector<1x4xf32>
    %19 = arith.subf %2, %18 : vector<1x4xf32>
    %c0_10 = arith.constant 0 : index
    %c0_11 = arith.constant 0 : index
    %20 = vector.load %arg1[%c0_10, %c0_11] : memref<512x4xf32, #tpu.memory_space<vmem>>, vector<512x4xf32>
    %21 = vector.broadcast %17 : vector<1x4xf32> to vector<512x4xf32>
    %22 = arith.mulf %20, %21 : vector<512x4xf32>
    %23 = vector.broadcast %19 : vector<1x4xf32> to vector<512x4xf32>
    %24 = arith.addf %22, %23 : vector<512x4xf32>
    %cst_12 = arith.constant 0.000000e+00 : f32
    %25 = vector.broadcast %cst_12 : f32 to vector<512x4xf32>
    %26 = arith.maximumf %24, %25 : vector<512x4xf32>
    %c0_13 = arith.constant 0 : index
    %c0_14 = arith.constant 0 : index
    %27 = vector.load %arg5[%c0_13, %c0_14] : memref<512x4xf32, #tpu.memory_space<vmem>>, vector<512x4xf32>
    tpu.vector_store %arg5[%c0_13, %c0_14], %26 {strides = array<i32>} : memref<512x4xf32, #tpu.memory_space<vmem>>, vector<512x4xf32>,
    return
  }
  func.func @transform_0(%arg0: i32) -> (i32, i32) {
    %c0_i32 = arith.constant 0 : i32
    %c0_i32_0 = arith.constant 0 : i32
    return %arg0, %c0_i32 : i32, i32
  }
  func.func @transform_1(%arg0: i32) -> (i32, i32, i32) {
    %c0_i32 = arith.constant 0 : i32
    %c0_i32_0 = arith.constant 0 : i32
    %c0_i32_1 = arith.constant 0 : i32
    %c0_i32_2 = arith.constant 0 : i32
    return %c0_i32, %c0_i32_0, %c0_i32_1 : i32, i32, i32
  }
  func.func @transform_2(%arg0: i32) -> (i32, i32) {
    %c0_i32 = arith.constant 0 : i32
    %c0_i32_0 = arith.constant 0 : i32
    %c0_i32_1 = arith.constant 0 : i32
    return %c0_i32, %c0_i32_0 : i32, i32
  }
  func.func @transform_3(%arg0: i32) -> (i32, i32) {
    %c0_i32 = arith.constant 0 : i32
    %c0_i32_0 = arith.constant 0 : i32
    %c0_i32_1 = arith.constant 0 : i32
    return %c0_i32, %c0_i32_0 : i32, i32
  }
  func.func @transform_4(%arg0: i32) -> (i32, i32) {
    %c0_i32 = arith.constant 0 : i32
    %c0_i32_0 = arith.constant 0 : i32
    return %arg0, %c0_i32 : i32, i32
  }
}

module attributes {stable_mosaic.version = 11 : i64} {
  func.func @_conv_kernel(%arg0: i32, %arg1: i32, %arg2: memref<1x1x324x4xf32, #tpu.memory_space<vmem>>, %arg3: memref<9x4x4xf32, #tpu.memory_space<vmem>>, %arg4: memref<1x16x16x4xf32, #tpu.memory_space<vmem>>, %arg5: memref<1x2x4xf32, #tpu.memory_space<vmem>>) attributes {dimension_semantics = [#tpu.dimension_semantics<parallel>, #tpu.dimension_semantics<parallel>], iteration_bounds = array<i64: 2, 1>, scalar_prefetch = 0 : i64, scratch_operands = 0 : i64, tpu.core_type = #tpu.core_type<tc>, window_params = [{transform_indices = @transform_0, window_bounds = array<i64: 1, 1, 324, 4>}, {transform_indices = @transform_1, window_bounds = array<i64: 9, 4, 4>}, {transform_indices = @transform_2, window_bounds = array<i64: 1, 16, 16, 4>}, {transform_indices = @transform_3, window_bounds = array<i64: 1, 2, 4>}]} {
    %cst = arith.constant 0.000000e+00 : f32
    %0 = vector.broadcast %cst : f32 to vector<286x4xf32>
    %c0 = arith.constant 0 : index
    %c0_0 = arith.constant 0 : index
    %c0_1 = arith.constant 0 : index
    %c0_2 = arith.constant 0 : index
    %1 = vector.load %arg2[%c0, %c0_0, %c0_1, %c0_2] : memref<1x1x324x4xf32, #tpu.memory_space<vmem>>, vector<1x1x286x4xf32>
    %2 = vector.shape_cast %1 : vector<1x1x286x4xf32> to vector<286x4xf32>
    %c0_3 = arith.constant 0 : index
    %c0_4 = arith.constant 0 : index
    %c0_5 = arith.constant 0 : index
    %3 = vector.load %arg3[%c0_3, %c0_4, %c0_5] : memref<9x4x4xf32, #tpu.memory_space<vmem>>, vector<1x4x4xf32>
    %4 = vector.shape_cast %3 : vector<1x4x4xf32> to vector<4x4xf32>
    %cst_6 = arith.constant dense<0.000000e+00> : vector<286x4xf32>
    %5 = tpu.matmul %2, %4, %cst_6 {dimension_numbers = #tpu.dot_dimension_numbers<[1], [0], [0], [1], [0, 0, 1, 1], [], []>} : vector<286x4xf32>, vector<4x4xf32>, vector<286x4xf32> -> vector<286x4xf32>
    %6 = arith.addf %0, %5 : vector<286x4xf32>
    %c0_7 = arith.constant 0 : index
    %c0_8 = arith.constant 0 : index
    %c1 = arith.constant 1 : index
    %c0_9 = arith.constant 0 : index
    %7 = vector.load %arg2[%c0_7, %c0_8, %c1, %c0_9] : memref<1x1x324x4xf32, #tpu.memory_space<vmem>>, vector<1x1x286x4xf32>
    %8 = vector.shape_cast %7 : vector<1x1x286x4xf32> to vector<286x4xf32>
    %c1_10 = arith.constant 1 : index
    %c0_11 = arith.constant 0 : index
    %c0_12 = arith.constant 0 : index
    %9 = vector.load %arg3[%c1_10, %c0_11, %c0_12] : memref<9x4x4xf32, #tpu.memory_space<vmem>>, vector<1x4x4xf32>
    %10 = vector.shape_cast %9 : vector<1x4x4xf32> to vector<4x4xf32>
    %cst_13 = arith.constant dense<0.000000e+00> : vector<286x4xf32>
    %11 = tpu.matmul %8, %10, %cst_13 {dimension_numbers = #tpu.dot_dimension_numbers<[1], [0], [0], [1], [0, 0, 1, 1], [], []>} : vector<286x4xf32>, vector<4x4xf32>, vector<286x4xf32> -> vector<286x4xf32>
    %12 = arith.addf %6, %11 : vector<286x4xf32>
    %c0_14 = arith.constant 0 : index
    %c0_15 = arith.constant 0 : index
    %c2 = arith.constant 2 : index
    %c0_16 = arith.constant 0 : index
    %13 = vector.load %arg2[%c0_14, %c0_15, %c2, %c0_16] : memref<1x1x324x4xf32, #tpu.memory_space<vmem>>, vector<1x1x286x4xf32>
    %14 = vector.shape_cast %13 : vector<1x1x286x4xf32> to vector<286x4xf32>
    %c2_17 = arith.constant 2 : index
    %c0_18 = arith.constant 0 : index
    %c0_19 = arith.constant 0 : index
    %15 = vector.load %arg3[%c2_17, %c0_18, %c0_19] : memref<9x4x4xf32, #tpu.memory_space<vmem>>, vector<1x4x4xf32>
    %16 = vector.shape_cast %15 : vector<1x4x4xf32> to vector<4x4xf32>
    %cst_20 = arith.constant dense<0.000000e+00> : vector<286x4xf32>
    %17 = tpu.matmul %14, %16, %cst_20 {dimension_numbers = #tpu.dot_dimension_numbers<[1], [0], [0], [1], [0, 0, 1, 1], [], []>} : vector<286x4xf32>, vector<4x4xf32>, vector<286x4xf32> -> vector<286x4xf32>
    %18 = arith.addf %12, %17 : vector<286x4xf32>
    %c0_21 = arith.constant 0 : index
    %c0_22 = arith.constant 0 : index
    %c18 = arith.constant 18 : index
    %c0_23 = arith.constant 0 : index
    %19 = vector.load %arg2[%c0_21, %c0_22, %c18, %c0_23] : memref<1x1x324x4xf32, #tpu.memory_space<vmem>>, vector<1x1x286x4xf32>
    %20 = vector.shape_cast %19 : vector<1x1x286x4xf32> to vector<286x4xf32>
    %c3 = arith.constant 3 : index
    %c0_24 = arith.constant 0 : index
    %c0_25 = arith.constant 0 : index
    %21 = vector.load %arg3[%c3, %c0_24, %c0_25] : memref<9x4x4xf32, #tpu.memory_space<vmem>>, vector<1x4x4xf32>
    %22 = vector.shape_cast %21 : vector<1x4x4xf32> to vector<4x4xf32>
    %cst_26 = arith.constant dense<0.000000e+00> : vector<286x4xf32>
    %23 = tpu.matmul %20, %22, %cst_26 {dimension_numbers = #tpu.dot_dimension_numbers<[1], [0], [0], [1], [0, 0, 1, 1], [], []>} : vector<286x4xf32>, vector<4x4xf32>, vector<286x4xf32> -> vector<286x4xf32>
    %24 = arith.addf %18, %23 : vector<286x4xf32>
    %c0_27 = arith.constant 0 : index
    %c0_28 = arith.constant 0 : index
    %c19 = arith.constant 19 : index
    %c0_29 = arith.constant 0 : index
    %25 = vector.load %arg2[%c0_27, %c0_28, %c19, %c0_29] : memref<1x1x324x4xf32, #tpu.memory_space<vmem>>, vector<1x1x286x4xf32>
    %26 = vector.shape_cast %25 : vector<1x1x286x4xf32> to vector<286x4xf32>
    %c4 = arith.constant 4 : index
    %c0_30 = arith.constant 0 : index
    %c0_31 = arith.constant 0 : index
    %27 = vector.load %arg3[%c4, %c0_30, %c0_31] : memref<9x4x4xf32, #tpu.memory_space<vmem>>, vector<1x4x4xf32>
    %28 = vector.shape_cast %27 : vector<1x4x4xf32> to vector<4x4xf32>
    %cst_32 = arith.constant dense<0.000000e+00> : vector<286x4xf32>
    %29 = tpu.matmul %26, %28, %cst_32 {dimension_numbers = #tpu.dot_dimension_numbers<[1], [0], [0], [1], [0, 0, 1, 1], [], []>} : vector<286x4xf32>, vector<4x4xf32>, vector<286x4xf32> -> vector<286x4xf32>
    %30 = arith.addf %24, %29 : vector<286x4xf32>
    %c0_33 = arith.constant 0 : index
    %c0_34 = arith.constant 0 : index
    %c20 = arith.constant 20 : index
    %c0_35 = arith.constant 0 : index
    %31 = vector.load %arg2[%c0_33, %c0_34, %c20, %c0_35] : memref<1x1x324x4xf32, #tpu.memory_space<vmem>>, vector<1x1x286x4xf32>
    %32 = vector.shape_cast %31 : vector<1x1x286x4xf32> to vector<286x4xf32>
    %c5 = arith.constant 5 : index
    %c0_36 = arith.constant 0 : index
    %c0_37 = arith.constant 0 : index
    %33 = vector.load %arg3[%c5, %c0_36, %c0_37] : memref<9x4x4xf32, #tpu.memory_space<vmem>>, vector<1x4x4xf32>
    %34 = vector.shape_cast %33 : vector<1x4x4xf32> to vector<4x4xf32>
    %cst_38 = arith.constant dense<0.000000e+00> : vector<286x4xf32>
    %35 = tpu.matmul %32, %34, %cst_38 {dimension_numbers = #tpu.dot_dimension_numbers<[1], [0], [0], [1], [0, 0, 1, 1], [], []>} : vector<286x4xf32>, vector<4x4xf32>, vector<286x4xf32> -> vector<286x4xf32>
    %36 = arith.addf %30, %35 : vector<286x4xf32>
    %c0_39 = arith.constant 0 : index
    %c0_40 = arith.constant 0 : index
    %c36 = arith.constant 36 : index
    %c0_41 = arith.constant 0 : index
    %37 = vector.load %arg2[%c0_39, %c0_40, %c36, %c0_41] : memref<1x1x324x4xf32, #tpu.memory_space<vmem>>, vector<1x1x286x4xf32>
    %38 = vector.shape_cast %37 : vector<1x1x286x4xf32> to vector<286x4xf32>
    %c6 = arith.constant 6 : index
    %c0_42 = arith.constant 0 : index
    %c0_43 = arith.constant 0 : index
    %39 = vector.load %arg3[%c6, %c0_42, %c0_43] : memref<9x4x4xf32, #tpu.memory_space<vmem>>, vector<1x4x4xf32>
    %40 = vector.shape_cast %39 : vector<1x4x4xf32> to vector<4x4xf32>
    %cst_44 = arith.constant dense<0.000000e+00> : vector<286x4xf32>
    %41 = tpu.matmul %38, %40, %cst_44 {dimension_numbers = #tpu.dot_dimension_numbers<[1], [0], [0], [1], [0, 0, 1, 1], [], []>} : vector<286x4xf32>, vector<4x4xf32>, vector<286x4xf32> -> vector<286x4xf32>
    %42 = arith.addf %36, %41 : vector<286x4xf32>
    %c0_45 = arith.constant 0 : index
    %c0_46 = arith.constant 0 : index
    %c37 = arith.constant 37 : index
    %c0_47 = arith.constant 0 : index
    %43 = vector.load %arg2[%c0_45, %c0_46, %c37, %c0_47] : memref<1x1x324x4xf32, #tpu.memory_space<vmem>>, vector<1x1x286x4xf32>
    %44 = vector.shape_cast %43 : vector<1x1x286x4xf32> to vector<286x4xf32>
    %c7 = arith.constant 7 : index
    %c0_48 = arith.constant 0 : index
    %c0_49 = arith.constant 0 : index
    %45 = vector.load %arg3[%c7, %c0_48, %c0_49] : memref<9x4x4xf32, #tpu.memory_space<vmem>>, vector<1x4x4xf32>
    %46 = vector.shape_cast %45 : vector<1x4x4xf32> to vector<4x4xf32>
    %cst_50 = arith.constant dense<0.000000e+00> : vector<286x4xf32>
    %47 = tpu.matmul %44, %46, %cst_50 {dimension_numbers = #tpu.dot_dimension_numbers<[1], [0], [0], [1], [0, 0, 1, 1], [], []>} : vector<286x4xf32>, vector<4x4xf32>, vector<286x4xf32> -> vector<286x4xf32>
    %48 = arith.addf %42, %47 : vector<286x4xf32>
    %c0_51 = arith.constant 0 : index
    %c0_52 = arith.constant 0 : index
    %c38 = arith.constant 38 : index
    %c0_53 = arith.constant 0 : index
    %49 = vector.load %arg2[%c0_51, %c0_52, %c38, %c0_53] : memref<1x1x324x4xf32, #tpu.memory_space<vmem>>, vector<1x1x286x4xf32>
    %50 = vector.shape_cast %49 : vector<1x1x286x4xf32> to vector<286x4xf32>
    %c8 = arith.constant 8 : index
    %c0_54 = arith.constant 0 : index
    %c0_55 = arith.constant 0 : index
    %51 = vector.load %arg3[%c8, %c0_54, %c0_55] : memref<9x4x4xf32, #tpu.memory_space<vmem>>, vector<1x4x4xf32>
    %52 = vector.shape_cast %51 : vector<1x4x4xf32> to vector<4x4xf32>
    %cst_56 = arith.constant dense<0.000000e+00> : vector<286x4xf32>
    %53 = tpu.matmul %50, %52, %cst_56 {dimension_numbers = #tpu.dot_dimension_numbers<[1], [0], [0], [1], [0, 0, 1, 1], [], []>} : vector<286x4xf32>, vector<4x4xf32>, vector<286x4xf32> -> vector<286x4xf32>
    %54 = arith.addf %48, %53 : vector<286x4xf32>
    %55 = vector.extract_strided_slice %54 {offsets = [0, 0], sizes = [16, 4], strides = [1, 1]} : vector<286x4xf32> to vector<16x4xf32>
    %c0_57 = arith.constant 0 : index
    %c0_58 = arith.constant 0 : index
    %c0_59 = arith.constant 0 : index
    %c0_60 = arith.constant 0 : index
    %56 = vector.load %arg4[%c0_57, %c0_58, %c0_59, %c0_60] : memref<1x16x16x4xf32, #tpu.memory_space<vmem>>, vector<1x1x16x4xf32>
    %57 = vector.shape_cast %56 : vector<1x1x16x4xf32> to vector<16x4xf32>
    %58 = vector.shape_cast %55 : vector<16x4xf32> to vector<1x1x16x4xf32>
    tpu.vector_store %arg4[%c0_57, %c0_58, %c0_59, %c0_60], %58 {strides = array<i32>} : memref<1x16x16x4xf32, #tpu.memory_space<vmem>>, vector<1x1x16x4xf32>,
    %59 = vector.extract_strided_slice %54 {offsets = [18, 0], sizes = [16, 4], strides = [1, 1]} : vector<286x4xf32> to vector<16x4xf32>
    %c0_61 = arith.constant 0 : index
    %c1_62 = arith.constant 1 : index
    %c0_63 = arith.constant 0 : index
    %c0_64 = arith.constant 0 : index
    %60 = vector.load %arg4[%c0_61, %c1_62, %c0_63, %c0_64] : memref<1x16x16x4xf32, #tpu.memory_space<vmem>>, vector<1x1x16x4xf32>
    %61 = vector.shape_cast %60 : vector<1x1x16x4xf32> to vector<16x4xf32>
    %62 = vector.shape_cast %59 : vector<16x4xf32> to vector<1x1x16x4xf32>
    tpu.vector_store %arg4[%c0_61, %c1_62, %c0_63, %c0_64], %62 {strides = array<i32>} : memref<1x16x16x4xf32, #tpu.memory_space<vmem>>, vector<1x1x16x4xf32>,
    %63 = vector.extract_strided_slice %54 {offsets = [36, 0], sizes = [16, 4], strides = [1, 1]} : vector<286x4xf32> to vector<16x4xf32>
    %c0_65 = arith.constant 0 : index
    %c2_66 = arith.constant 2 : index
    %c0_67 = arith.constant 0 : index
    %c0_68 = arith.constant 0 : index
    %64 = vector.load %arg4[%c0_65, %c2_66, %c0_67, %c0_68] : memref<1x16x16x4xf32, #tpu.memory_space<vmem>>, vector<1x1x16x4xf32>
    %65 = vector.shape_cast %64 : vector<1x1x16x4xf32> to vector<16x4xf32>
    %66 = vector.shape_cast %63 : vector<16x4xf32> to vector<1x1x16x4xf32>
    tpu.vector_store %arg4[%c0_65, %c2_66, %c0_67, %c0_68], %66 {strides = array<i32>} : memref<1x16x16x4xf32, #tpu.memory_space<vmem>>, vector<1x1x16x4xf32>,
    %67 = vector.extract_strided_slice %54 {offsets = [54, 0], sizes = [16, 4], strides = [1, 1]} : vector<286x4xf32> to vector<16x4xf32>
    %c0_69 = arith.constant 0 : index
    %c3_70 = arith.constant 3 : index
    %c0_71 = arith.constant 0 : index
    %c0_72 = arith.constant 0 : index
    %68 = vector.load %arg4[%c0_69, %c3_70, %c0_71, %c0_72] : memref<1x16x16x4xf32, #tpu.memory_space<vmem>>, vector<1x1x16x4xf32>
    %69 = vector.shape_cast %68 : vector<1x1x16x4xf32> to vector<16x4xf32>
    %70 = vector.shape_cast %67 : vector<16x4xf32> to vector<1x1x16x4xf32>
    tpu.vector_store %arg4[%c0_69, %c3_70, %c0_71, %c0_72], %70 {strides = array<i32>} : memref<1x16x16x4xf32, #tpu.memory_space<vmem>>, vector<1x1x16x4xf32>,
    %71 = vector.extract_strided_slice %54 {offsets = [72, 0], sizes = [16, 4], strides = [1, 1]} : vector<286x4xf32> to vector<16x4xf32>
    %c0_73 = arith.constant 0 : index
    %c4_74 = arith.constant 4 : index
    %c0_75 = arith.constant 0 : index
    %c0_76 = arith.constant 0 : index
    %72 = vector.load %arg4[%c0_73, %c4_74, %c0_75, %c0_76] : memref<1x16x16x4xf32, #tpu.memory_space<vmem>>, vector<1x1x16x4xf32>
    %73 = vector.shape_cast %72 : vector<1x1x16x4xf32> to vector<16x4xf32>
    %74 = vector.shape_cast %71 : vector<16x4xf32> to vector<1x1x16x4xf32>
    tpu.vector_store %arg4[%c0_73, %c4_74, %c0_75, %c0_76], %74 {strides = array<i32>} : memref<1x16x16x4xf32, #tpu.memory_space<vmem>>, vector<1x1x16x4xf32>,
    %75 = vector.extract_strided_slice %54 {offsets = [90, 0], sizes = [16, 4], strides = [1, 1]} : vector<286x4xf32> to vector<16x4xf32>
    %c0_77 = arith.constant 0 : index
    %c5_78 = arith.constant 5 : index
    %c0_79 = arith.constant 0 : index
    %c0_80 = arith.constant 0 : index
    %76 = vector.load %arg4[%c0_77, %c5_78, %c0_79, %c0_80] : memref<1x16x16x4xf32, #tpu.memory_space<vmem>>, vector<1x1x16x4xf32>
    %77 = vector.shape_cast %76 : vector<1x1x16x4xf32> to vector<16x4xf32>
    %78 = vector.shape_cast %75 : vector<16x4xf32> to vector<1x1x16x4xf32>
    tpu.vector_store %arg4[%c0_77, %c5_78, %c0_79, %c0_80], %78 {strides = array<i32>} : memref<1x16x16x4xf32, #tpu.memory_space<vmem>>, vector<1x1x16x4xf32>,
    %79 = vector.extract_strided_slice %54 {offsets = [108, 0], sizes = [16, 4], strides = [1, 1]} : vector<286x4xf32> to vector<16x4xf32>
    %c0_81 = arith.constant 0 : index
    %c6_82 = arith.constant 6 : index
    %c0_83 = arith.constant 0 : index
    %c0_84 = arith.constant 0 : index
    %80 = vector.load %arg4[%c0_81, %c6_82, %c0_83, %c0_84] : memref<1x16x16x4xf32, #tpu.memory_space<vmem>>, vector<1x1x16x4xf32>
    %81 = vector.shape_cast %80 : vector<1x1x16x4xf32> to vector<16x4xf32>
    %82 = vector.shape_cast %79 : vector<16x4xf32> to vector<1x1x16x4xf32>
    tpu.vector_store %arg4[%c0_81, %c6_82, %c0_83, %c0_84], %82 {strides = array<i32>} : memref<1x16x16x4xf32, #tpu.memory_space<vmem>>, vector<1x1x16x4xf32>,
    %83 = vector.extract_strided_slice %54 {offsets = [126, 0], sizes = [16, 4], strides = [1, 1]} : vector<286x4xf32> to vector<16x4xf32>
    %c0_85 = arith.constant 0 : index
    %c7_86 = arith.constant 7 : index
    %c0_87 = arith.constant 0 : index
    %c0_88 = arith.constant 0 : index
    %84 = vector.load %arg4[%c0_85, %c7_86, %c0_87, %c0_88] : memref<1x16x16x4xf32, #tpu.memory_space<vmem>>, vector<1x1x16x4xf32>
    %85 = vector.shape_cast %84 : vector<1x1x16x4xf32> to vector<16x4xf32>
    %86 = vector.shape_cast %83 : vector<16x4xf32> to vector<1x1x16x4xf32>
    tpu.vector_store %arg4[%c0_85, %c7_86, %c0_87, %c0_88], %86 {strides = array<i32>} : memref<1x16x16x4xf32, #tpu.memory_space<vmem>>, vector<1x1x16x4xf32>,
    %87 = vector.extract_strided_slice %54 {offsets = [144, 0], sizes = [16, 4], strides = [1, 1]} : vector<286x4xf32> to vector<16x4xf32>
    %c0_89 = arith.constant 0 : index
    %c8_90 = arith.constant 8 : index
    %c0_91 = arith.constant 0 : index
    %c0_92 = arith.constant 0 : index
    %88 = vector.load %arg4[%c0_89, %c8_90, %c0_91, %c0_92] : memref<1x16x16x4xf32, #tpu.memory_space<vmem>>, vector<1x1x16x4xf32>
    %89 = vector.shape_cast %88 : vector<1x1x16x4xf32> to vector<16x4xf32>
    %90 = vector.shape_cast %87 : vector<16x4xf32> to vector<1x1x16x4xf32>
    tpu.vector_store %arg4[%c0_89, %c8_90, %c0_91, %c0_92], %90 {strides = array<i32>} : memref<1x16x16x4xf32, #tpu.memory_space<vmem>>, vector<1x1x16x4xf32>,
    %91 = vector.extract_strided_slice %54 {offsets = [162, 0], sizes = [16, 4], strides = [1, 1]} : vector<286x4xf32> to vector<16x4xf32>
    %c0_93 = arith.constant 0 : index
    %c9 = arith.constant 9 : index
    %c0_94 = arith.constant 0 : index
    %c0_95 = arith.constant 0 : index
    %92 = vector.load %arg4[%c0_93, %c9, %c0_94, %c0_95] : memref<1x16x16x4xf32, #tpu.memory_space<vmem>>, vector<1x1x16x4xf32>
    %93 = vector.shape_cast %92 : vector<1x1x16x4xf32> to vector<16x4xf32>
    %94 = vector.shape_cast %91 : vector<16x4xf32> to vector<1x1x16x4xf32>
    tpu.vector_store %arg4[%c0_93, %c9, %c0_94, %c0_95], %94 {strides = array<i32>} : memref<1x16x16x4xf32, #tpu.memory_space<vmem>>, vector<1x1x16x4xf32>,
    %95 = vector.extract_strided_slice %54 {offsets = [180, 0], sizes = [16, 4], strides = [1, 1]} : vector<286x4xf32> to vector<16x4xf32>
    %c0_96 = arith.constant 0 : index
    %c10 = arith.constant 10 : index
    %c0_97 = arith.constant 0 : index
    %c0_98 = arith.constant 0 : index
    %96 = vector.load %arg4[%c0_96, %c10, %c0_97, %c0_98] : memref<1x16x16x4xf32, #tpu.memory_space<vmem>>, vector<1x1x16x4xf32>
    %97 = vector.shape_cast %96 : vector<1x1x16x4xf32> to vector<16x4xf32>
    %98 = vector.shape_cast %95 : vector<16x4xf32> to vector<1x1x16x4xf32>
    tpu.vector_store %arg4[%c0_96, %c10, %c0_97, %c0_98], %98 {strides = array<i32>} : memref<1x16x16x4xf32, #tpu.memory_space<vmem>>, vector<1x1x16x4xf32>,
    %99 = vector.extract_strided_slice %54 {offsets = [198, 0], sizes = [16, 4], strides = [1, 1]} : vector<286x4xf32> to vector<16x4xf32>
    %c0_99 = arith.constant 0 : index
    %c11 = arith.constant 11 : index
    %c0_100 = arith.constant 0 : index
    %c0_101 = arith.constant 0 : index
    %100 = vector.load %arg4[%c0_99, %c11, %c0_100, %c0_101] : memref<1x16x16x4xf32, #tpu.memory_space<vmem>>, vector<1x1x16x4xf32>
    %101 = vector.shape_cast %100 : vector<1x1x16x4xf32> to vector<16x4xf32>
    %102 = vector.shape_cast %99 : vector<16x4xf32> to vector<1x1x16x4xf32>
    tpu.vector_store %arg4[%c0_99, %c11, %c0_100, %c0_101], %102 {strides = array<i32>} : memref<1x16x16x4xf32, #tpu.memory_space<vmem>>, vector<1x1x16x4xf32>,
    %103 = vector.extract_strided_slice %54 {offsets = [216, 0], sizes = [16, 4], strides = [1, 1]} : vector<286x4xf32> to vector<16x4xf32>
    %c0_102 = arith.constant 0 : index
    %c12 = arith.constant 12 : index
    %c0_103 = arith.constant 0 : index
    %c0_104 = arith.constant 0 : index
    %104 = vector.load %arg4[%c0_102, %c12, %c0_103, %c0_104] : memref<1x16x16x4xf32, #tpu.memory_space<vmem>>, vector<1x1x16x4xf32>
    %105 = vector.shape_cast %104 : vector<1x1x16x4xf32> to vector<16x4xf32>
    %106 = vector.shape_cast %103 : vector<16x4xf32> to vector<1x1x16x4xf32>
    tpu.vector_store %arg4[%c0_102, %c12, %c0_103, %c0_104], %106 {strides = array<i32>} : memref<1x16x16x4xf32, #tpu.memory_space<vmem>>, vector<1x1x16x4xf32>,
    %107 = vector.extract_strided_slice %54 {offsets = [234, 0], sizes = [16, 4], strides = [1, 1]} : vector<286x4xf32> to vector<16x4xf32>
    %c0_105 = arith.constant 0 : index
    %c13 = arith.constant 13 : index
    %c0_106 = arith.constant 0 : index
    %c0_107 = arith.constant 0 : index
    %108 = vector.load %arg4[%c0_105, %c13, %c0_106, %c0_107] : memref<1x16x16x4xf32, #tpu.memory_space<vmem>>, vector<1x1x16x4xf32>
    %109 = vector.shape_cast %108 : vector<1x1x16x4xf32> to vector<16x4xf32>
    %110 = vector.shape_cast %107 : vector<16x4xf32> to vector<1x1x16x4xf32>
    tpu.vector_store %arg4[%c0_105, %c13, %c0_106, %c0_107], %110 {strides = array<i32>} : memref<1x16x16x4xf32, #tpu.memory_space<vmem>>, vector<1x1x16x4xf32>,
    %111 = vector.extract_strided_slice %54 {offsets = [252, 0], sizes = [16, 4], strides = [1, 1]} : vector<286x4xf32> to vector<16x4xf32>
    %c0_108 = arith.constant 0 : index
    %c14 = arith.constant 14 : index
    %c0_109 = arith.constant 0 : index
    %c0_110 = arith.constant 0 : index
    %112 = vector.load %arg4[%c0_108, %c14, %c0_109, %c0_110] : memref<1x16x16x4xf32, #tpu.memory_space<vmem>>, vector<1x1x16x4xf32>
    %113 = vector.shape_cast %112 : vector<1x1x16x4xf32> to vector<16x4xf32>
    %114 = vector.shape_cast %111 : vector<16x4xf32> to vector<1x1x16x4xf32>
    tpu.vector_store %arg4[%c0_108, %c14, %c0_109, %c0_110], %114 {strides = array<i32>} : memref<1x16x16x4xf32, #tpu.memory_space<vmem>>, vector<1x1x16x4xf32>,
    %115 = vector.extract_strided_slice %54 {offsets = [270, 0], sizes = [16, 4], strides = [1, 1]} : vector<286x4xf32> to vector<16x4xf32>
    %c0_111 = arith.constant 0 : index
    %c15 = arith.constant 15 : index
    %c0_112 = arith.constant 0 : index
    %c0_113 = arith.constant 0 : index
    %116 = vector.load %arg4[%c0_111, %c15, %c0_112, %c0_113] : memref<1x16x16x4xf32, #tpu.memory_space<vmem>>, vector<1x1x16x4xf32>
    %117 = vector.shape_cast %116 : vector<1x1x16x4xf32> to vector<16x4xf32>
    %118 = vector.shape_cast %115 : vector<16x4xf32> to vector<1x1x16x4xf32>
    tpu.vector_store %arg4[%c0_111, %c15, %c0_112, %c0_113], %118 {strides = array<i32>} : memref<1x16x16x4xf32, #tpu.memory_space<vmem>>, vector<1x1x16x4xf32>,
    %119 = tpu.iota {dimensions = array<i32: 0>} : vector<286x1xi32>
    %c18_i32 = arith.constant 18 : i32
    %c0_i32 = arith.constant 0 : i32
    %120 = arith.cmpi eq, %c18_i32, %c0_i32 : i32
    %c1_i32 = arith.constant 1 : i32
    %121 = arith.select %120, %c1_i32, %c18_i32 : i32
    %122 = vector.broadcast %121 : i32 to vector<286x1xi32>
    %123 = arith.remsi %119, %122 : vector<286x1xi32>
    %c0_i32_114 = arith.constant 0 : i32
    %124 = vector.broadcast %c0_i32_114 : i32 to vector<286x1xi32>
    %125 = arith.cmpi ne, %123, %124 : vector<286x1xi32>
    %c0_i32_115 = arith.constant 0 : i32
    %126 = vector.broadcast %c0_i32_115 : i32 to vector<286x1xi32>
    %127 = arith.cmpi slt, %123, %126 : vector<286x1xi32>
    %c0_i32_116 = arith.constant 0 : i32
    %128 = arith.cmpi slt, %121, %c0_i32_116 : i32
    %129 = vector.broadcast %128 : i1 to vector<286x1xi1>
    %130 = vector.broadcast %129 : vector<286x1xi1> to vector<286x1xi1>
    %131 = arith.xori %127, %130 : vector<286x1xi1>
    %132 = arith.andi %131, %125 : vector<286x1xi1>
    %133 = vector.broadcast %121 : i32 to vector<286x1xi32>
    %134 = arith.addi %123, %133 : vector<286x1xi32>
    %135 = arith.select %132, %134, %123 : vector<286x1xi1>, vector<286x1xi32>
    %c16_i32 = arith.constant 16 : i32
    %136 = vector.broadcast %c16_i32 : i32 to vector<286x1xi32>
    %137 = arith.cmpi slt, %135, %136 : vector<286x1xi32>
    %cst_117 = arith.constant 0.000000e+00 : f32
    %138 = vector.shape_cast %137 : vector<286x1xi1> to vector<286x1xi1>
    %139 = vector.broadcast %138 : vector<286x1xi1> to vector<286x4xi1>
    %140 = vector.broadcast %cst_117 : f32 to vector<286x4xf32>
    %141 = arith.select %139, %54, %140 : vector<286x4xi1>, vector<286x4xf32>
    %cst_118 = arith.constant dense<0.000000e+00> : vector<4xf32>
    %142 = vector.multi_reduction <add>, %141, %cst_118 [0] : vector<286x4xf32> to vector<4xf32>
    %143 = vector.shape_cast %142 : vector<4xf32> to vector<1x4xf32>
    %144 = arith.mulf %141, %141 : vector<286x4xf32>
    %cst_119 = arith.constant dense<0.000000e+00> : vector<4xf32>
    %145 = vector.multi_reduction <add>, %144, %cst_119 [0] : vector<286x4xf32> to vector<4xf32>
    %146 = vector.shape_cast %145 : vector<4xf32> to vector<1x4xf32>
    %147 = tpu.concatenate %143, %146 in 0 : vector<1x4xf32>, vector<1x4xf32> -> vector<2x4xf32>
    %c0_120 = arith.constant 0 : index
    %c0_121 = arith.constant 0 : index
    %c0_122 = arith.constant 0 : index
    %148 = vector.load %arg5[%c0_120, %c0_121, %c0_122] : memref<1x2x4xf32, #tpu.memory_space<vmem>>, vector<1x2x4xf32>
    %149 = vector.shape_cast %148 : vector<1x2x4xf32> to vector<2x4xf32>
    %150 = vector.shape_cast %147 : vector<2x4xf32> to vector<1x2x4xf32>
    tpu.vector_store %arg5[%c0_120, %c0_121, %c0_122], %150 {strides = array<i32>} : memref<1x2x4xf32, #tpu.memory_space<vmem>>, vector<1x2x4xf32>,
    return
  }
  func.func @transform_0(%arg0: i32, %arg1: i32) -> (i32, i32, i32, i32) {
    %c0_i32 = arith.constant 0 : i32
    %c0_i32_0 = arith.constant 0 : i32
    %c0_i32_1 = arith.constant 0 : i32
    %c0_i32_2 = arith.constant 0 : i32
    return %arg0, %c0_i32, %c0_i32_0, %c0_i32_1 : i32, i32, i32, i32
  }
  func.func @transform_1(%arg0: i32, %arg1: i32) -> (i32, i32, i32) {
    %c0_i32 = arith.constant 0 : i32
    %c0_i32_0 = arith.constant 0 : i32
    %c0_i32_1 = arith.constant 0 : i32
    return %c0_i32, %c0_i32_0, %arg1 : i32, i32, i32
  }
  func.func @transform_2(%arg0: i32, %arg1: i32) -> (i32, i32, i32, i32) {
    %c0_i32 = arith.constant 0 : i32
    %c0_i32_0 = arith.constant 0 : i32
    %c0_i32_1 = arith.constant 0 : i32
    return %arg0, %c0_i32, %c0_i32_0, %arg1 : i32, i32, i32, i32
  }
  func.func @transform_3(%arg0: i32, %arg1: i32) -> (i32, i32, i32) {
    %c0_i32 = arith.constant 0 : i32
    %c0_i32_0 = arith.constant 0 : i32
    return %arg0, %c0_i32, %arg1 : i32, i32, i32
  }
}

module attributes {stable_mosaic.version = 11 : i64} {
  func.func @_bn_res_act_kernel(%arg0: i32, %arg1: memref<512x4xf32, #tpu.memory_space<vmem>>, %arg2: memref<2x2x4xf32, #tpu.memory_space<vmem>>, %arg3: memref<1x4xf32, #tpu.memory_space<vmem>>, %arg4: memref<1x4xf32, #tpu.memory_space<vmem>>, %arg5: memref<512x4xf32, #tpu.memory_space<vmem>>, %arg6: memref<512x4xf32, #tpu.memory_space<vmem>>) attributes {dimension_semantics = [#tpu.dimension_semantics<parallel>], iteration_bounds = array<i64: 1>, scalar_prefetch = 0 : i64, scratch_operands = 0 : i64, tpu.core_type = #tpu.core_type<tc>, window_params = [{transform_indices = @transform_0, window_bounds = array<i64: 512, 4>}, {pipeline_mode = #tpu.pipeline_mode<synchronous>, transform_indices = @transform_1, window_bounds = array<i64: 2, 2, 4>}, {pipeline_mode = #tpu.pipeline_mode<synchronous>, transform_indices = @transform_2, window_bounds = array<i64: 1, 4>}, {pipeline_mode = #tpu.pipeline_mode<synchronous>, transform_indices = @transform_3, window_bounds = array<i64: 1, 4>}, {transform_indices = @transform_4, window_bounds = array<i64: 512, 4>}, {transform_indices = @transform_5, window_bounds = array<i64: 512, 4>}]} {
    %c0 = arith.constant 0 : index
    %c0_0 = arith.constant 0 : index
    %c0_1 = arith.constant 0 : index
    %0 = vector.load %arg2[%c0, %c0_0, %c0_1] : memref<2x2x4xf32, #tpu.memory_space<vmem>>, vector<2x2x4xf32>
    %c0_2 = arith.constant 0 : index
    %c0_3 = arith.constant 0 : index
    %1 = vector.load %arg3[%c0_2, %c0_3] : memref<1x4xf32, #tpu.memory_space<vmem>>, vector<1x4xf32>
    %c0_4 = arith.constant 0 : index
    %c0_5 = arith.constant 0 : index
    %2 = vector.load %arg4[%c0_4, %c0_5] : memref<1x4xf32, #tpu.memory_space<vmem>>, vector<1x4xf32>
    %cst = arith.constant dense<0.000000e+00> : vector<2x4xf32>
    %3 = vector.multi_reduction <add>, %0, %cst [0] : vector<2x2x4xf32> to vector<2x4xf32>
    %4 = vector.extract_strided_slice %3 {offsets = [0, 0], sizes = [1, 4], strides = [1, 1]} : vector<2x4xf32> to vector<1x4xf32>
    %cst_6 = arith.constant 0.001953125 : f32
    %5 = vector.broadcast %cst_6 : f32 to vector<1x4xf32>
    %6 = arith.mulf %4, %5 : vector<1x4xf32>
    %7 = vector.extract_strided_slice %3 {offsets = [1, 0], sizes = [1, 4], strides = [1, 1]} : vector<2x4xf32> to vector<1x4xf32>
    %cst_7 = arith.constant 0.001953125 : f32
    %8 = vector.broadcast %cst_7 : f32 to vector<1x4xf32>
    %9 = arith.mulf %7, %8 : vector<1x4xf32>
    %10 = arith.mulf %6, %6 : vector<1x4xf32>
    %11 = arith.subf %9, %10 : vector<1x4xf32>
    %cst_8 = arith.constant 0.000000e+00 : f32
    %12 = vector.broadcast %cst_8 : f32 to vector<1x4xf32>
    %13 = arith.maximumf %11, %12 : vector<1x4xf32>
    %cst_9 = arith.constant 9.99999974E-6 : f32
    %14 = vector.broadcast %cst_9 : f32 to vector<1x4xf32>
    %15 = arith.addf %13, %14 : vector<1x4xf32>
    %16 = math.rsqrt %15 : vector<1x4xf32>
    %17 = arith.mulf %1, %16 : vector<1x4xf32>
    %18 = arith.mulf %6, %17 : vector<1x4xf32>
    %19 = arith.subf %2, %18 : vector<1x4xf32>
    %c0_10 = arith.constant 0 : index
    %c0_11 = arith.constant 0 : index
    %20 = vector.load %arg1[%c0_10, %c0_11] : memref<512x4xf32, #tpu.memory_space<vmem>>, vector<512x4xf32>
    %21 = vector.broadcast %17 : vector<1x4xf32> to vector<512x4xf32>
    %22 = arith.mulf %20, %21 : vector<512x4xf32>
    %23 = vector.broadcast %19 : vector<1x4xf32> to vector<512x4xf32>
    %24 = arith.addf %22, %23 : vector<512x4xf32>
    %c0_12 = arith.constant 0 : index
    %c0_13 = arith.constant 0 : index
    %25 = vector.load %arg5[%c0_12, %c0_13] : memref<512x4xf32, #tpu.memory_space<vmem>>, vector<512x4xf32>
    %26 = arith.addf %24, %25 : vector<512x4xf32>
    %cst_14 = arith.constant 0.000000e+00 : f32
    %27 = vector.broadcast %cst_14 : f32 to vector<512x4xf32>
    %28 = arith.maximumf %26, %27 : vector<512x4xf32>
    %c0_15 = arith.constant 0 : index
    %c0_16 = arith.constant 0 : index
    %29 = vector.load %arg6[%c0_15, %c0_16] : memref<512x4xf32, #tpu.memory_space<vmem>>, vector<512x4xf32>
    tpu.vector_store %arg6[%c0_15, %c0_16], %28 {strides = array<i32>} : memref<512x4xf32, #tpu.memory_space<vmem>>, vector<512x4xf32>,
    return
  }
  func.func @transform_0(%arg0: i32) -> (i32, i32) {
    %c0_i32 = arith.constant 0 : i32
    %c0_i32_0 = arith.constant 0 : i32
    return %arg0, %c0_i32 : i32, i32
  }
  func.func @transform_1(%arg0: i32) -> (i32, i32, i32) {
    %c0_i32 = arith.constant 0 : i32
    %c0_i32_0 = arith.constant 0 : i32
    %c0_i32_1 = arith.constant 0 : i32
    %c0_i32_2 = arith.constant 0 : i32
    return %c0_i32, %c0_i32_0, %c0_i32_1 : i32, i32, i32
  }
  func.func @transform_2(%arg0: i32) -> (i32, i32) {
    %c0_i32 = arith.constant 0 : i32
    %c0_i32_0 = arith.constant 0 : i32
    %c0_i32_1 = arith.constant 0 : i32
    return %c0_i32, %c0_i32_0 : i32, i32
  }
  func.func @transform_3(%arg0: i32) -> (i32, i32) {
    %c0_i32 = arith.constant 0 : i32
    %c0_i32_0 = arith.constant 0 : i32
    %c0_i32_1 = arith.constant 0 : i32
    return %c0_i32, %c0_i32_0 : i32, i32
  }
  func.func @transform_4(%arg0: i32) -> (i32, i32) {
    %c0_i32 = arith.constant 0 : i32
    %c0_i32_0 = arith.constant 0 : i32
    return %arg0, %c0_i32 : i32, i32
  }
  func.func @transform_5(%arg0: i32) -> (i32, i32) {
    %c0_i32 = arith.constant 0 : i32
    %c0_i32_0 = arith.constant 0 : i32
    return %arg0, %c0_i32 : i32, i32
  }
}

</mosaic_0001>

<bundles_post_ra>
// kernel: fwd.5
= control target key start
LH: loop header
LB: loop body
LE: loop exit
PB: predicated region body
PF: predicated region fallthrough
CT: control target
= control target key end

     0   :  { %vm21_vm0 = vcmask 25600   ;;  %v394_v11 = vmov 1966171168   ;;  %v38_v13 = vlaneseq  ;;  %vm322_vm1 = vcmask 31744   ;;  %s1012_s1 = inlined_call_operand.vmem [shape: f32[2,2,4], index: 1, kind: input, shape index: {}]   ;;  %s1013_s2 = inlined_call_operand.vmem [shape: f32[1,4], index: 2, kind: input, shape index: {}]   ;;  %s1014_s0 = inlined_call_operand.vmem [shape: f32[512,4], index: 0, kind: input, shape index: {}]   ;;  %s1015_s3 = inlined_call_operand.vmem [shape: f32[1,4], index: 3, kind: input, shape index: {}]   ;;  %s1016_s4 = inlined_call_operand.vmem [shape: f32[512,4], index: 4, kind: output, shape index: {}]  }
   0x1   :  { %v17_v0 = vld [vmem:[%s1012_s1] sm:$0x3]  ;;  %v18_v1 = vld [vmem:[%s1012_s1 + $0x2] sm:$0x3]  ;;  %v36_v12 = vunpack.c.l.s4 %v394_v11  ;;  %v55_v26 = vld [vmem:[%s1014_s0 + $0x8] sm:$0xff] }
   0x2   :  { %v22_v2 = vsel %vm21_vm0, %v17_v0, 0.0  ;;  %v23_v3 = vsel %vm21_vm0, %v18_v1, 0.0  ;;  %v39_v15 = vshrl.u32 %v38_v13, 7  ;;  %v19_v20 = vld [vmem:[%s1013_s2] sm:$0x1]  ;;  %v56_v27 = vld [vmem:[%s1014_s0 + $0x10] sm:$0xff] }
   0x3   :  { %v24_v4 = vadd.f32 %v23_v3, %v22_v2  ;;  %v37_v14 = vunpack.c.0.s8 %v36_v12  ;;  %v20_v23 = vld [vmem:[%s1015_s3] sm:$0x1]  ;;  %v57_v28 = vld [vmem:[%s1014_s0 + $0x18] sm:$0xff]  ;;  %v59_v32 = vld [vmem:[%s1014_s0 + $0x28] sm:$0xff] }
   0x4   :  { %v121_v22 = vsub.s32 0, %v39_v15  ;;  %v54_v25 = vld [vmem:[%s1014_s0] sm:$0xff]  ;;  %v60_v33 = vld [vmem:[%s1014_s0 + $0x30] sm:$0xff]  ;;  %v61_v34 = vld [vmem:[%s1014_s0 + $0x38] sm:$0xff] }
   0x5   :  { %v25_v5 = vmul.f32 0.001953125, %v24_v4  ;;  %v40_v16 = vsub.s32 %v37_v14, %v39_v15  ;;  %v58_v29 = vld [vmem:[%s1014_s0 + $0x20] sm:$0xff]  ;;  %v63_v36 = vld [vmem:[%s1014_s0 + $0x48] sm:$0xff]  ;;  %v64_v37 = vld [vmem:[%s1014_s0 + $0x50] sm:$0xff] }
   0x6   :  { %v62_v35 = vld [vmem:[%s1014_s0 + $0x40] sm:$0xff]  ;;  %v65_v42 = vld [vmem:[%s1014_s0 + $0x58] sm:$0xff]  ;;  %v67_v44 = vld [vmem:[%s1014_s0 + $0x68] sm:$0xff] }
   0x7   :  { %v26_v6 = vmul.f32 %v25_v5, %v25_v5  ;;  %v66_v43 = vld [vmem:[%s1014_s0 + $0x60] sm:$0xff] }
   0x8   :  { %v70_v15 = vld [vmem:[%s1014_s0 + $0x80] sm:$0xff] }
   0x9   :  { %v28_v7 = vrot.slane %v26_v6, 7  ;;  %v69_v6 = vld [vmem:[%s1014_s0 + $0x78] sm:$0xff] }
   0xb   :  { %v30_v8 = vsub.f32 %v25_v5, %v28_v7 }
   0xd   :  { %v31_v9 = vmax.f32 %v30_v8, 0.0 }
   0xf   :  { %v32_v10 = vadd.f32 1e-05, %v31_v9 }
  0x11   :  { %392 = vrsqrt.f32 %v32_v10 }
  0x1b   :  { %v393_v17 = vpop.eup %392 }
  0x1c   :  { %v41_v18 = vrot.slane %v393_v17, %v40_v16 }
  0x1e   :  { %v42_v19 = vcombine.high %v41_v18, %v41_v18 }
  0x20   :  { %v49_v21 = vrot.slane %v42_v19, %v40_v16 }
  0x22   :  { %v51_v24 = vmul.f32 %v49_v21, %v19_v20  ;;  %v71_v20 = vld [vmem:[%s1014_s0 + $0x88] sm:$0xff]  ;;  %v72_v21 = vld [vmem:[%s1014_s0 + $0x90] sm:$0xff] }
  0x24   :  { %v52_v30 = vmul.f32 %v51_v24, %v25_v5  ;;  %v447_v31 = vrot.slane %v51_v24, %v121_v22  ;;  %v68_v5 = vld [vmem:[%s1014_s0 + $0x70] sm:$0xff] }
  0x26   :  { %v53_v38 = vsub.f32 %v20_v23, %v52_v30  ;;  %v124_v39 = vmul.f32 %v447_v31, %v54_v25  ;;  %v125_v40 = vmul.f32 %v447_v31, %v55_v26  ;;  %v126_v41 = vmul.f32 %v447_v31, %v56_v27  ;;  %v74_v27 = vld [vmem:[%s1014_s0 + $0xa0] sm:$0xff] }
  0x27   :  { %v127_v45 = vmul.f32 %v447_v31, %v57_v28  ;;  %v128_v46 = vmul.f32 %v447_v31, %v58_v29  ;;  %v129_v47 = vmul.f32 %v447_v31, %v59_v32  ;;  %v130_v48 = vmul.f32 %v447_v31, %v60_v33  ;;  %v75_v28 = vld [vmem:[%s1014_s0 + $0xa8] sm:$0xff] }
  0x28   :  { %v483_v49 = vrot.slane %v53_v38, %v121_v22  ;;  %v131_v50 = vmul.f32 %v447_v31, %v61_v34  ;;  %v132_v51 = vmul.f32 %v447_v31, %v62_v35  ;;  %v133_v52 = vmul.f32 %v447_v31, %v63_v36  ;;  %v73_v22 = vld [vmem:[%s1014_s0 + $0x98] sm:$0xff]  ;;  %v76_v38 = vld [vmem:[%s1014_s0 + $0xb0] sm:$0xff] }
  0x29   :  { %v134_v53 = vmul.f32 %v447_v31, %v64_v37  ;;  %v135_v54 = vmul.f32 %v447_v31, %v65_v42  ;;  %v136_v55 = vmul.f32 %v447_v31, %v66_v43  ;;  %v137_v56 = vmul.f32 %v447_v31, %v67_v44 }
  0x2a   :  { %v194_v57 = vadd.f32 %v483_v49, %v124_v39  ;;  %v195_v58 = vadd.f32 %v483_v49, %v125_v40  ;;  %v196_v59 = vadd.f32 %v483_v49, %v126_v41  ;;  %v197_v60 = vadd.f32 %v483_v49, %v127_v45  ;;  %v77_v39 = vld [vmem:[%s1014_s0 + $0xb8] sm:$0xff] }
  0x2b   :  { %v198_v61 = vadd.f32 %v483_v49, %v128_v46  ;;  %v199_v62 = vadd.f32 %v483_v49, %v129_v47  ;;  %v200_v63 = vadd.f32 %v483_v49, %v130_v48  ;;  %v201_v0 = vadd.f32 %v483_v49, %v131_v50  ;;  %v78_v48 = vld [vmem:[%s1014_s0 + $0xc0] sm:$0xff] }
  0x2c   :  { %v258_v1 = vmax.f32 %v194_v57, 0.0  ;;  %v259_v2 = vmax.f32 %v195_v58, 0.0  ;;  %v260_v3 = vmax.f32 %v196_v59, 0.0  ;;  %v261_v4 = vmax.f32 %v197_v60, 0.0 }
  0x2d   :  { %v262_v7 = vmax.f32 %v198_v61, 0.0  ;;  %v263_v8 = vmax.f32 %v199_v62, 0.0  ;;  %v264_v9 = vmax.f32 %v200_v63, 0.0  ;;  %v265_v10 = vmax.f32 %v201_v0, 0.0  ;;  %v82_v61 = vld [vmem:[%s1014_s0 + $0xe0] sm:$0xff]  ;;  %v83_v62 = vld [vmem:[%s1014_s0 + $0xe8] sm:$0xff] }
  0x2e   :  { %323 = vst.msk [vmem:[%s1016_s4] sm:$0xff] %vm322_vm1, %v258_v1  ;;  %324 = vst.msk [vmem:[%s1016_s4 + $0x8] sm:$0xff] %vm322_vm1, %v259_v2  ;;  %v202_v11 = vadd.f32 %v483_v49, %v132_v51  ;;  %v203_v12 = vadd.f32 %v483_v49, %v133_v52  ;;  %v204_v13 = vadd.f32 %v483_v49, %v134_v53 }
  0x2f   :  { %325 = vst.msk [vmem:[%s1016_s4 + $0x10] sm:$0xff] %vm322_vm1, %v260_v3  ;;  %326 = vst.msk [vmem:[%s1016_s4 + $0x18] sm:$0xff] %vm322_vm1, %v261_v4  ;;  %v205_v14 = vadd.f32 %v483_v49, %v135_v54  ;;  %v206_v16 = vadd.f32 %v483_v49, %v136_v55  ;;  %v207_v17 = vadd.f32 %v483_v49, %v137_v56  ;;  %v79_v54 = vld [vmem:[%s1014_s0 + $0xc8] sm:$0xff]  ;;  %v80_v55 = vld [vmem:[%s1014_s0 + $0xd0] sm:$0xff] }
  0x30   :  { %327 = vst.msk [vmem:[%s1016_s4 + $0x20] sm:$0xff] %vm322_vm1, %v262_v7  ;;  %328 = vst.msk [vmem:[%s1016_s4 + $0x28] sm:$0xff] %vm322_vm1, %v263_v8  ;;  %v138_v18 = vmul.f32 %v447_v31, %v68_v5  ;;  %v139_v19 = vmul.f32 %v447_v31, %v69_v6  ;;  %v266_v23 = vmax.f32 %v202_v11, 0.0  ;;  %v267_v24 = vmax.f32 %v203_v12, 0.0  ;;  %v81_v56 = vld [vmem:[%s1014_s0 + $0xd8] sm:$0xff]  ;;  %v84_v7 = vld [vmem:[%s1014_s0 + $0xf0] sm:$0xff] }
  0x31   :  { %329 = vst.msk [vmem:[%s1016_s4 + $0x30] sm:$0xff] %vm322_vm1, %v264_v9  ;;  %330 = vst.msk [vmem:[%s1016_s4 + $0x38] sm:$0xff] %vm322_vm1, %v265_v10  ;;  %v268_v25 = vmax.f32 %v204_v13, 0.0  ;;  %v269_v26 = vmax.f32 %v205_v14, 0.0  ;;  %v270_v29 = vmax.f32 %v206_v16, 0.0  ;;  %v271_v30 = vmax.f32 %v207_v17, 0.0 }
  0x32   :  { %v208_v32 = vadd.f32 %v483_v49, %v138_v18  ;;  %v209_v33 = vadd.f32 %v483_v49, %v139_v19  ;;  %331 = vst.msk [vmem:[%s1016_s4 + $0x40] sm:$0xff] %vm322_vm1, %v266_v23  ;;  %332 = vst.msk [vmem:[%s1016_s4 + $0x48] sm:$0xff] %vm322_vm1, %v267_v24  ;;  %v140_v34 = vmul.f32 %v447_v31, %v70_v15  ;;  %v85_v8 = vld [vmem:[%s1014_s0 + $0xf8] sm:$0xff]  ;;  %v86_v17 = vld [vmem:[%s1014_s0 + $0x100] sm:$0xff] }
  0x33   :  { %333 = vst.msk [vmem:[%s1016_s4 + $0x50] sm:$0xff] %vm322_vm1, %v268_v25  ;;  %334 = vst.msk [vmem:[%s1016_s4 + $0x58] sm:$0xff] %vm322_vm1, %v269_v26  ;;  %v141_v35 = vmul.f32 %v447_v31, %v71_v20  ;;  %v142_v36 = vmul.f32 %v447_v31, %v72_v21  ;;  %v143_v37 = vmul.f32 %v447_v31, %v73_v22  ;;  %v87_v22 = vld [vmem:[%s1014_s0 + $0x108] sm:$0xff]  ;;  %v88_v23 = vld [vmem:[%s1014_s0 + $0x110] sm:$0xff] }
  0x34   :  { %335 = vst.msk [vmem:[%s1016_s4 + $0x60] sm:$0xff] %vm322_vm1, %v270_v29  ;;  %336 = vst.msk [vmem:[%s1016_s4 + $0x68] sm:$0xff] %vm322_vm1, %v271_v30  ;;  %v272_v40 = vmax.f32 %v208_v32, 0.0  ;;  %v273_v41 = vmax.f32 %v209_v33, 0.0  ;;  %v144_v42 = vmul.f32 %v447_v31, %v74_v27  ;;  %v145_v43 = vmul.f32 %v447_v31, %v75_v28  ;;  %v89_v24 = vld [vmem:[%s1014_s0 + $0x118] sm:$0xff]  ;;  %v90_v29 = vld [vmem:[%s1014_s0 + $0x120] sm:$0xff] }
  0x35   :  { %v210_v44 = vadd.f32 %v483_v49, %v140_v34  ;;  %v211_v45 = vadd.f32 %v483_v49, %v141_v35  ;;  %v212_v46 = vadd.f32 %v483_v49, %v142_v36  ;;  %v213_v47 = vadd.f32 %v483_v49, %v143_v37  ;;  %v91_v30 = vld [vmem:[%s1014_s0 + $0x128] sm:$0xff] }
  0x36   :  { %337 = vst.msk [vmem:[%s1016_s4 + $0x70] sm:$0xff] %vm322_vm1, %v272_v40  ;;  %338 = vst.msk [vmem:[%s1016_s4 + $0x78] sm:$0xff] %vm322_vm1, %v273_v41  ;;  %v214_v50 = vadd.f32 %v483_v49, %v144_v42  ;;  %v215_v51 = vadd.f32 %v483_v49, %v145_v43  ;;  %v146_v52 = vmul.f32 %v447_v31, %v76_v38  ;;  %v92_v40 = vld [vmem:[%s1014_s0 + $0x130] sm:$0xff]  ;;  %v93_v41 = vld [vmem:[%s1014_s0 + $0x138] sm:$0xff] }
  0x37   :  { %v147_v53 = vmul.f32 %v447_v31, %v77_v39  ;;  %v274_v57 = vmax.f32 %v210_v44, 0.0  ;;  %v275_v58 = vmax.f32 %v211_v45, 0.0  ;;  %v276_v59 = vmax.f32 %v212_v46, 0.0 }
  0x38   :  { %v277_v60 = vmax.f32 %v213_v47, 0.0  ;;  %v278_v63 = vmax.f32 %v214_v50, 0.0  ;;  %v279_v0 = vmax.f32 %v215_v51, 0.0  ;;  %v216_v1 = vadd.f32 %v483_v49, %v146_v52  ;;  %v94_v51 = vld [vmem:[%s1014_s0 + $0x140] sm:$0xff] }
  0x39   :  { %v217_v2 = vadd.f32 %v483_v49, %v147_v53  ;;  %339 = vst.msk [vmem:[%s1016_s4 + $0x80] sm:$0xff] %vm322_vm1, %v274_v57  ;;  %340 = vst.msk [vmem:[%s1016_s4 + $0x88] sm:$0xff] %vm322_vm1, %v275_v58  ;;  %v148_v3 = vmul.f32 %v447_v31, %v78_v48  ;;  %v149_v4 = vmul.f32 %v447_v31, %v79_v54  ;;  %v96_v57 = vld [vmem:[%s1014_s0 + $0x150] sm:$0xff]  ;;  %v97_v58 = vld [vmem:[%s1014_s0 + $0x158] sm:$0xff] }
  0x3a   :  { %341 = vst.msk [vmem:[%s1016_s4 + $0x90] sm:$0xff] %vm322_vm1, %v276_v59  ;;  %342 = vst.msk [vmem:[%s1016_s4 + $0x98] sm:$0xff] %vm322_vm1, %v277_v60  ;;  %v150_v5 = vmul.f32 %v447_v31, %v80_v55  ;;  %v151_v6 = vmul.f32 %v447_v31, %v81_v56  ;;  %v280_v9 = vmax.f32 %v216_v1, 0.0  ;;  %v152_v11 = vmul.f32 %v447_v31, %v82_v61  ;;  %v95_v56 = vld [vmem:[%s1014_s0 + $0x148] sm:$0xff] }
  0x3b   :  { %343 = vst.msk [vmem:[%s1016_s4 + $0xa0] sm:$0xff] %vm322_vm1, %v278_v63  ;;  %344 = vst.msk [vmem:[%s1016_s4 + $0xa8] sm:$0xff] %vm322_vm1, %v279_v0  ;;  %v281_v10 = vmax.f32 %v217_v2, 0.0  ;;  %v153_v12 = vmul.f32 %v447_v31, %v83_v62  ;;  %v218_v13 = vadd.f32 %v483_v49, %v148_v3  ;;  %v219_v14 = vadd.f32 %v483_v49, %v149_v4  ;;  %v98_v63 = vld [vmem:[%s1014_s0 + $0x160] sm:$0xff]  ;;  %v99_v0 = vld [vmem:[%s1014_s0 + $0x168] sm:$0xff] }
  0x3c   :  { %v220_v15 = vadd.f32 %v483_v49, %v150_v5  ;;  %v221_v16 = vadd.f32 %v483_v49, %v151_v6  ;;  %345 = vst.msk [vmem:[%s1016_s4 + $0xb0] sm:$0xff] %vm322_vm1, %v280_v9  ;;  %v222_v18 = vadd.f32 %v483_v49, %v152_v11  ;;  %v154_v20 = vmul.f32 %v447_v31, %v84_v7  ;;  %v100_v9 = vld [vmem:[%s1014_s0 + $0x170] sm:$0xff] }
  0x3d   :  { %346 = vst.msk [vmem:[%s1016_s4 + $0xb8] sm:$0xff] %vm322_vm1, %v281_v10  ;;  %v223_v19 = vadd.f32 %v483_v49, %v153_v12  ;;  %v155_v21 = vmul.f32 %v447_v31, %v85_v8  ;;  %v282_v25 = vmax.f32 %v218_v13, 0.0  ;;  %v283_v26 = vmax.f32 %v219_v14, 0.0  ;;  %v101_v10 = vld [vmem:[%s1014_s0 + $0x178] sm:$0xff] }
  0x3e   :  { %v284_v27 = vmax.f32 %v220_v15, 0.0  ;;  %v285_v28 = vmax.f32 %v221_v16, 0.0  ;;  %v286_v32 = vmax.f32 %v222_v18, 0.0  ;;  %v224_v34 = vadd.f32 %v483_v49, %v154_v20 }
  0x3f   :  { %v287_v33 = vmax.f32 %v223_v19, 0.0  ;;  %v225_v35 = vadd.f32 %v483_v49, %v155_v21  ;;  %347 = vst.msk [vmem:[%s1016_s4 + $0xc0] sm:$0xff] %vm322_vm1, %v282_v25  ;;  %348 = vst.msk [vmem:[%s1016_s4 + $0xc8] sm:$0xff] %vm322_vm1, %v283_v26  ;;  %v156_v36 = vmul.f32 %v447_v31, %v86_v17  ;;  %v157_v37 = vmul.f32 %v447_v31, %v87_v22  ;;  %v102_v19 = vld [vmem:[%s1014_s0 + $0x180] sm:$0xff]  ;;  %v104_v25 = vld [vmem:[%s1014_s0 + $0x190] sm:$0xff] }
  0x40   :  { %349 = vst.msk [vmem:[%s1016_s4 + $0xd0] sm:$0xff] %vm322_vm1, %v284_v27  ;;  %350 = vst.msk [vmem:[%s1016_s4 + $0xd8] sm:$0xff] %vm322_vm1, %v285_v28  ;;  %v158_v38 = vmul.f32 %v447_v31, %v88_v23  ;;  %v159_v39 = vmul.f32 %v447_v31, %v89_v24  ;;  %v288_v42 = vmax.f32 %v224_v34, 0.0  ;;  %v160_v44 = vmul.f32 %v447_v31, %v90_v29  ;;  %v103_v24 = vld [vmem:[%s1014_s0 + $0x188] sm:$0xff]  ;;  %v105_v26 = vld [vmem:[%s1014_s0 + $0x198] sm:$0xff] }
  0x41   :  { %351 = vst.msk [vmem:[%s1016_s4 + $0xe0] sm:$0xff] %vm322_vm1, %v286_v32  ;;  %352 = vst.msk [vmem:[%s1016_s4 + $0xe8] sm:$0xff] %vm322_vm1, %v287_v33  ;;  %v289_v43 = vmax.f32 %v225_v35, 0.0  ;;  %v161_v45 = vmul.f32 %v447_v31, %v91_v30  ;;  %v226_v46 = vadd.f32 %v483_v49, %v156_v36  ;;  %v227_v47 = vadd.f32 %v483_v49, %v157_v37  ;;  %v106_v32 = vld [vmem:[%s1014_s0 + $0x1a0] sm:$0xff]  ;;  %v107_v33 = vld [vmem:[%s1014_s0 + $0x1a8] sm:$0xff] }
  0x42   :  { %v228_v48 = vadd.f32 %v483_v49, %v158_v38  ;;  %v229_v50 = vadd.f32 %v483_v49, %v159_v39  ;;  %353 = vst.msk [vmem:[%s1016_s4 + $0xf0] sm:$0xff] %vm322_vm1, %v288_v42  ;;  %v230_v52 = vadd.f32 %v483_v49, %v160_v44  ;;  %v162_v54 = vmul.f32 %v447_v31, %v92_v40  ;;  %v108_v42 = vld [vmem:[%s1014_s0 + $0x1b0] sm:$0xff] }
  0x43   :  { %354 = vst.msk [vmem:[%s1016_s4 + $0xf8] sm:$0xff] %vm322_vm1, %v289_v43  ;;  %v231_v53 = vadd.f32 %v483_v49, %v161_v45  ;;  %v163_v55 = vmul.f32 %v447_v31, %v93_v41  ;;  %v290_v59 = vmax.f32 %v226_v46, 0.0  ;;  %v291_v60 = vmax.f32 %v227_v47, 0.0  ;;  %v109_v43 = vld [vmem:[%s1014_s0 + $0x1b8] sm:$0xff] }
  0x44   :  { %v292_v61 = vmax.f32 %v228_v48, 0.0  ;;  %v293_v62 = vmax.f32 %v229_v50, 0.0  ;;  %v294_v1 = vmax.f32 %v230_v52, 0.0  ;;  %v232_v3 = vadd.f32 %v483_v49, %v162_v54 }
  0x45   :  { %v295_v2 = vmax.f32 %v231_v53, 0.0  ;;  %v233_v4 = vadd.f32 %v483_v49, %v163_v55  ;;  %355 = vst.msk [vmem:[%s1016_s4 + $0x100] sm:$0xff] %vm322_vm1, %v290_v59  ;;  %356 = vst.msk [vmem:[%s1016_s4 + $0x108] sm:$0xff] %vm322_vm1, %v291_v60  ;;  %v164_v5 = vmul.f32 %v447_v31, %v94_v51  ;;  %v165_v6 = vmul.f32 %v447_v31, %v95_v56  ;;  %v110_v53 = vld [vmem:[%s1014_s0 + $0x1c0] sm:$0xff]  ;;  %v112_v59 = vld [vmem:[%s1014_s0 + $0x1d0] sm:$0xff] }
  0x46   :  { %357 = vst.msk [vmem:[%s1016_s4 + $0x110] sm:$0xff] %vm322_vm1, %v292_v61  ;;  %358 = vst.msk [vmem:[%s1016_s4 + $0x118] sm:$0xff] %vm322_vm1, %v293_v62  ;;  %v166_v7 = vmul.f32 %v447_v31, %v96_v57  ;;  %v167_v8 = vmul.f32 %v447_v31, %v97_v58  ;;  %v296_v11 = vmax.f32 %v232_v3, 0.0  ;;  %v168_v13 = vmul.f32 %v447_v31, %v98_v63  ;;  %v111_v58 = vld [vmem:[%s1014_s0 + $0x1c8] sm:$0xff]  ;;  %v113_v60 = vld [vmem:[%s1014_s0 + $0x1d8] sm:$0xff] }
  0x47   :  { %359 = vst.msk [vmem:[%s1016_s4 + $0x120] sm:$0xff] %vm322_vm1, %v294_v1  ;;  %360 = vst.msk [vmem:[%s1016_s4 + $0x128] sm:$0xff] %vm322_vm1, %v295_v2  ;;  %v297_v12 = vmax.f32 %v233_v4, 0.0  ;;  %v169_v14 = vmul.f32 %v447_v31, %v99_v0  ;;  %v234_v15 = vadd.f32 %v483_v49, %v164_v5  ;;  %v235_v16 = vadd.f32 %v483_v49, %v165_v6  ;;  %v114_v1 = vld [vmem:[%s1014_s0 + $0x1e0] sm:$0xff]  ;;  %v115_v2 = vld [vmem:[%s1014_s0 + $0x1e8] sm:$0xff] }
  0x48   :  { %v236_v17 = vadd.f32 %v483_v49, %v166_v7  ;;  %v237_v18 = vadd.f32 %v483_v49, %v167_v8  ;;  %361 = vst.msk [vmem:[%s1016_s4 + $0x130] sm:$0xff] %vm322_vm1, %v296_v11  ;;  %v238_v20 = vadd.f32 %v483_v49, %v168_v13  ;;  %v170_v22 = vmul.f32 %v447_v31, %v100_v9  ;;  %v116_v11 = vld [vmem:[%s1014_s0 + $0x1f0] sm:$0xff] }
  0x49   :  { %362 = vst.msk [vmem:[%s1016_s4 + $0x138] sm:$0xff] %vm322_vm1, %v297_v12  ;;  %v239_v21 = vadd.f32 %v483_v49, %v169_v14  ;;  %v171_v23 = vmul.f32 %v447_v31, %v101_v10  ;;  %v298_v27 = vmax.f32 %v234_v15, 0.0  ;;  %v299_v28 = vmax.f32 %v235_v16, 0.0  ;;  %v117_v12 = vld [vmem:[%s1014_s0 + $0x1f8] sm:$0xff] }
  0x4a   :  { %v300_v29 = vmax.f32 %v236_v17, 0.0  ;;  %v301_v30 = vmax.f32 %v237_v18, 0.0  ;;  %v302_v34 = vmax.f32 %v238_v20, 0.0  ;;  %v240_v36 = vadd.f32 %v483_v49, %v170_v22 }
  0x4b   :  { %v303_v35 = vmax.f32 %v239_v21, 0.0  ;;  %v241_v37 = vadd.f32 %v483_v49, %v171_v23  ;;  %363 = vst.msk [vmem:[%s1016_s4 + $0x140] sm:$0xff] %vm322_vm1, %v298_v27  ;;  %364 = vst.msk [vmem:[%s1016_s4 + $0x148] sm:$0xff] %vm322_vm1, %v299_v28  ;;  %v172_v38 = vmul.f32 %v447_v31, %v102_v19  ;;  %v173_v39 = vmul.f32 %v447_v31, %v103_v24 }
  0x4c   :  { %365 = vst.msk [vmem:[%s1016_s4 + $0x150] sm:$0xff] %vm322_vm1, %v300_v29  ;;  %366 = vst.msk [vmem:[%s1016_s4 + $0x158] sm:$0xff] %vm322_vm1, %v301_v30  ;;  %v174_v40 = vmul.f32 %v447_v31, %v104_v25  ;;  %v175_v41 = vmul.f32 %v447_v31, %v105_v26  ;;  %v304_v44 = vmax.f32 %v240_v36, 0.0  ;;  %v176_v46 = vmul.f32 %v447_v31, %v106_v32 }
  0x4d   :  { %367 = vst.msk [vmem:[%s1016_s4 + $0x160] sm:$0xff] %vm322_vm1, %v302_v34  ;;  %368 = vst.msk [vmem:[%s1016_s4 + $0x168] sm:$0xff] %vm322_vm1, %v303_v35  ;;  %v305_v45 = vmax.f32 %v241_v37, 0.0  ;;  %v177_v47 = vmul.f32 %v447_v31, %v107_v33  ;;  %v242_v48 = vadd.f32 %v483_v49, %v172_v38  ;;  %v243_v50 = vadd.f32 %v483_v49, %v173_v39 }
  0x4e   :  { %v244_v51 = vadd.f32 %v483_v49, %v174_v40  ;;  %v245_v52 = vadd.f32 %v483_v49, %v175_v41  ;;  %369 = vst.msk [vmem:[%s1016_s4 + $0x170] sm:$0xff] %vm322_vm1, %v304_v44  ;;  %v246_v54 = vadd.f32 %v483_v49, %v176_v46  ;;  %v178_v56 = vmul.f32 %v447_v31, %v108_v42 }
  0x4f   :  { %370 = vst.msk [vmem:[%s1016_s4 + $0x178] sm:$0xff] %vm322_vm1, %v305_v45  ;;  %v247_v55 = vadd.f32 %v483_v49, %v177_v47  ;;  %v179_v57 = vmul.f32 %v447_v31, %v109_v43  ;;  %v306_v61 = vmax.f32 %v242_v48, 0.0  ;;  %v307_v62 = vmax.f32 %v243_v50, 0.0 }
  0x50   :  { %v308_v63 = vmax.f32 %v244_v51, 0.0  ;;  %v309_v0 = vmax.f32 %v245_v52, 0.0  ;;  %v310_v3 = vmax.f32 %v246_v54, 0.0  ;;  %v248_v5 = vadd.f32 %v483_v49, %v178_v56 }
  0x51   :  { %v311_v4 = vmax.f32 %v247_v55, 0.0  ;;  %v249_v6 = vadd.f32 %v483_v49, %v179_v57  ;;  %371 = vst.msk [vmem:[%s1016_s4 + $0x180] sm:$0xff] %vm322_vm1, %v306_v61  ;;  %372 = vst.msk [vmem:[%s1016_s4 + $0x188] sm:$0xff] %vm322_vm1, %v307_v62  ;;  %v180_v7 = vmul.f32 %v447_v31, %v110_v53  ;;  %v181_v8 = vmul.f32 %v447_v31, %v111_v58 }
  0x52   :  { %373 = vst.msk [vmem:[%s1016_s4 + $0x190] sm:$0xff] %vm322_vm1, %v308_v63  ;;  %374 = vst.msk [vmem:[%s1016_s4 + $0x198] sm:$0xff] %vm322_vm1, %v309_v0  ;;  %v182_v9 = vmul.f32 %v447_v31, %v112_v59  ;;  %v183_v10 = vmul.f32 %v447_v31, %v113_v60  ;;  %v312_v13 = vmax.f32 %v248_v5, 0.0  ;;  %v184_v15 = vmul.f32 %v447_v31, %v114_v1 }
  0x53   :  { %375 = vst.msk [vmem:[%s1016_s4 + $0x1a0] sm:$0xff] %vm322_vm1, %v310_v3  ;;  %376 = vst.msk [vmem:[%s1016_s4 + $0x1a8] sm:$0xff] %vm322_vm1, %v311_v4  ;;  %v313_v14 = vmax.f32 %v249_v6, 0.0  ;;  %v185_v16 = vmul.f32 %v447_v31, %v115_v2  ;;  %v250_v17 = vadd.f32 %v483_v49, %v180_v7  ;;  %v251_v18 = vadd.f32 %v483_v49, %v181_v8 }
  0x54   :  { %v252_v19 = vadd.f32 %v483_v49, %v182_v9  ;;  %v253_v20 = vadd.f32 %v483_v49, %v183_v10  ;;  %377 = vst.msk [vmem:[%s1016_s4 + $0x1b0] sm:$0xff] %vm322_vm1, %v312_v13  ;;  %v254_v21 = vadd.f32 %v483_v49, %v184_v15  ;;  %v186_v23 = vmul.f32 %v447_v31, %v116_v11 }
  0x55   :  { %378 = vst.msk [vmem:[%s1016_s4 + $0x1b8] sm:$0xff] %vm322_vm1, %v313_v14  ;;  %v255_v22 = vadd.f32 %v483_v49, %v185_v16  ;;  %v187_v24 = vmul.f32 %v447_v31, %v117_v12  ;;  %v314_v25 = vmax.f32 %v250_v17, 0.0  ;;  %v315_v26 = vmax.f32 %v251_v18, 0.0 }
  0x56   :  { %v316_v27 = vmax.f32 %v252_v19, 0.0  ;;  %v317_v28 = vmax.f32 %v253_v20, 0.0  ;;  %v318_v29 = vmax.f32 %v254_v21, 0.0  ;;  %v256_v32 = vadd.f32 %v483_v49, %v186_v23 }
  0x57   :  { %v319_v30 = vmax.f32 %v255_v22, 0.0  ;;  %v257_v33 = vadd.f32 %v483_v49, %v187_v24  ;;  %379 = vst.msk [vmem:[%s1016_s4 + $0x1c0] sm:$0xff] %vm322_vm1, %v314_v25  ;;  %380 = vst.msk [vmem:[%s1016_s4 + $0x1c8] sm:$0xff] %vm322_vm1, %v315_v26 }
  0x58   :  { %381 = vst.msk [vmem:[%s1016_s4 + $0x1d0] sm:$0xff] %vm322_vm1, %v316_v27  ;;  %382 = vst.msk [vmem:[%s1016_s4 + $0x1d8] sm:$0xff] %vm322_vm1, %v317_v28  ;;  %v320_v31 = vmax.f32 %v256_v32, 0.0 }
  0x59   :  { %383 = vst.msk [vmem:[%s1016_s4 + $0x1e0] sm:$0xff] %vm322_vm1, %v318_v29  ;;  %384 = vst.msk [vmem:[%s1016_s4 + $0x1e8] sm:$0xff] %vm322_vm1, %v319_v30  ;;  %v321_v49 = vmax.f32 %v257_v33, 0.0 }
  0x5a   :  { %385 = vst.msk [vmem:[%s1016_s4 + $0x1f0] sm:$0xff] %vm322_vm1, %v320_v31 }
  0x5b   :  { %386 = vst.msk [vmem:[%s1016_s4 + $0x1f8] sm:$0xff] %vm322_vm1, %v321_v49 }

// kernel: fwd.7
= control target key start
LH: loop header
LB: loop body
LE: loop exit
PB: predicated region body
PF: predicated region fallthrough
CT: control target
= control target key end

     0   :  { %vm24_vm0 = vcmask 25600   ;;  %v525_v11 = vmov 1966171168   ;;  %v41_v13 = vlaneseq  ;;  %vm453_vm1 = vcmask 31744   ;;  %s1340_s1 = inlined_call_operand.vmem [shape: f32[2,2,4], index: 1, kind: input, shape index: {}]   ;;  %s1341_s2 = inlined_call_operand.vmem [shape: f32[1,4], index: 2, kind: input, shape index: {}]   ;;  %s1342_s0 = inlined_call_operand.vmem [shape: f32[512,4], index: 0, kind: input, shape index: {}]   ;;  %s1343_s3 = inlined_call_operand.vmem [shape: f32[1,4], index: 3, kind: input, shape index: {}]   ;;  %s1344_s4 = inlined_call_operand.vmem [shape: f32[512,4], index: 4, kind: input, shape index: {}]   ;;  %s1345_s5 = inlined_call_operand.vmem [shape: f32[512,4], index: 5, kind: output, shape index: {}]  }
   0x1   :  { %v20_v0 = vld [vmem:[%s1340_s1] sm:$0x3]  ;;  %v21_v1 = vld [vmem:[%s1340_s1 + $0x2] sm:$0x3]  ;;  %v39_v12 = vunpack.c.l.s4 %v525_v11  ;;  %v58_v26 = vld [vmem:[%s1342_s0 + $0x8] sm:$0xff] }
   0x2   :  { %v25_v2 = vsel %vm24_vm0, %v20_v0, 0.0  ;;  %v26_v3 = vsel %vm24_vm0, %v21_v1, 0.0  ;;  %v42_v15 = vshrl.u32 %v41_v13, 7  ;;  %v22_v20 = vld [vmem:[%s1341_s2] sm:$0x1]  ;;  %v59_v27 = vld [vmem:[%s1342_s0 + $0x10] sm:$0xff] }
   0x3   :  { %v27_v4 = vadd.f32 %v26_v3, %v25_v2  ;;  %v40_v14 = vunpack.c.0.s8 %v39_v12  ;;  %v23_v23 = vld [vmem:[%s1343_s3] sm:$0x1]  ;;  %v60_v28 = vld [vmem:[%s1342_s0 + $0x18] sm:$0xff]  ;;  %v62_v32 = vld [vmem:[%s1342_s0 + $0x28] sm:$0xff] }
   0x4   :  { %v124_v22 = vsub.s32 0, %v42_v15  ;;  %v57_v25 = vld [vmem:[%s1342_s0] sm:$0xff]  ;;  %v63_v33 = vld [vmem:[%s1342_s0 + $0x30] sm:$0xff]  ;;  %v64_v34 = vld [vmem:[%s1342_s0 + $0x38] sm:$0xff] }
   0x5   :  { %v28_v5 = vmul.f32 0.001953125, %v27_v4  ;;  %v43_v16 = vsub.s32 %v40_v14, %v42_v15  ;;  %v61_v29 = vld [vmem:[%s1342_s0 + $0x20] sm:$0xff]  ;;  %v66_v36 = vld [vmem:[%s1342_s0 + $0x48] sm:$0xff]  ;;  %v67_v37 = vld [vmem:[%s1342_s0 + $0x50] sm:$0xff] }
   0x6   :  { %v65_v35 = vld [vmem:[%s1342_s0 + $0x40] sm:$0xff]  ;;  %v68_v42 = vld [vmem:[%s1342_s0 + $0x58] sm:$0xff]  ;;  %v70_v44 = vld [vmem:[%s1342_s0 + $0x68] sm:$0xff] }
   0x7   :  { %v29_v6 = vmul.f32 %v28_v5, %v28_v5  ;;  %v69_v43 = vld [vmem:[%s1342_s0 + $0x60] sm:$0xff]  ;;  %v262_v51 = vld [vmem:[%s1344_s4 + $0x8] sm:$0xff]  ;;  %v263_v55 = vld [vmem:[%s1344_s4 + $0x10] sm:$0xff] }
   0x8   :  { %v261_v50 = vld [vmem:[%s1344_s4] sm:$0xff]  ;;  %v264_v56 = vld [vmem:[%s1344_s4 + $0x18] sm:$0xff]  ;;  %v266_v2 = vld [vmem:[%s1344_s4 + $0x28] sm:$0xff] }
   0x9   :  { %v31_v7 = vrot.slane %v29_v6, 7  ;;  %v265_v57 = vld [vmem:[%s1344_s4 + $0x20] sm:$0xff]  ;;  %v267_v3 = vld [vmem:[%s1344_s4 + $0x30] sm:$0xff]  ;;  %v268_v4 = vld [vmem:[%s1344_s4 + $0x38] sm:$0xff] }
   0xb   :  { %v33_v8 = vsub.f32 %v28_v5, %v31_v7 }
   0xd   :  { %v34_v9 = vmax.f32 %v33_v8, 0.0 }
   0xf   :  { %v35_v10 = vadd.f32 1e-05, %v34_v9 }
  0x11   :  { %523 = vrsqrt.f32 %v35_v10 }
  0x1b   :  { %v524_v17 = vpop.eup %523 }
  0x1c   :  { %v44_v18 = vrot.slane %v524_v17, %v43_v16  ;;  %v269_v17 = vld [vmem:[%s1344_s4 + $0x40] sm:$0xff] }
  0x1e   :  { %v45_v19 = vcombine.high %v44_v18, %v44_v18  ;;  %v270_v18 = vld [vmem:[%s1344_s4 + $0x48] sm:$0xff] }
  0x20   :  { %v52_v21 = vrot.slane %v45_v19, %v43_v16 }
  0x22   :  { %v54_v24 = vmul.f32 %v52_v21, %v22_v20 }
  0x24   :  { %v55_v30 = vmul.f32 %v54_v24, %v28_v5  ;;  %v583_v31 = vrot.slane %v54_v24, %v124_v22  ;;  %v72_v24 = vld [vmem:[%s1342_s0 + $0x78] sm:$0xff] }
  0x26   :  { %v56_v38 = vsub.f32 %v23_v23, %v55_v30  ;;  %v127_v39 = vmul.f32 %v583_v31, %v57_v25  ;;  %v128_v40 = vmul.f32 %v583_v31, %v58_v26  ;;  %v129_v41 = vmul.f32 %v583_v31, %v59_v27  ;;  %v71_v23 = vld [vmem:[%s1342_s0 + $0x70] sm:$0xff]  ;;  %v272_v30 = vld [vmem:[%s1344_s4 + $0x58] sm:$0xff] }
  0x27   :  { %v130_v45 = vmul.f32 %v583_v31, %v60_v28  ;;  %v131_v46 = vmul.f32 %v583_v31, %v61_v29  ;;  %v132_v47 = vmul.f32 %v583_v31, %v62_v32  ;;  %v133_v48 = vmul.f32 %v583_v31, %v63_v33  ;;  %v271_v29 = vld [vmem:[%s1344_s4 + $0x50] sm:$0xff] }
  0x28   :  { %v619_v49 = vrot.slane %v56_v38, %v124_v22  ;;  %v134_v52 = vmul.f32 %v583_v31, %v64_v34  ;;  %v135_v53 = vmul.f32 %v583_v31, %v65_v35  ;;  %v136_v54 = vmul.f32 %v583_v31, %v66_v36  ;;  %v273_v36 = vld [vmem:[%s1344_s4 + $0x60] sm:$0xff] }
  0x29   :  { %v137_v58 = vmul.f32 %v583_v31, %v67_v37  ;;  %v138_v59 = vmul.f32 %v583_v31, %v68_v42  ;;  %v139_v60 = vmul.f32 %v583_v31, %v69_v43  ;;  %v140_v61 = vmul.f32 %v583_v31, %v70_v44  ;;  %v274_v37 = vld [vmem:[%s1344_s4 + $0x68] sm:$0xff] }
  0x2a   :  { %v197_v62 = vadd.f32 %v619_v49, %v127_v39  ;;  %v198_v63 = vadd.f32 %v619_v49, %v128_v40  ;;  %v199_v0 = vadd.f32 %v619_v49, %v129_v41  ;;  %v200_v1 = vadd.f32 %v619_v49, %v130_v45 }
  0x2b   :  { %v201_v5 = vadd.f32 %v619_v49, %v131_v46  ;;  %v202_v6 = vadd.f32 %v619_v49, %v132_v47  ;;  %v203_v7 = vadd.f32 %v619_v49, %v133_v48  ;;  %v204_v8 = vadd.f32 %v619_v49, %v134_v52  ;;  %v275_v46 = vld [vmem:[%s1344_s4 + $0x70] sm:$0xff]  ;;  %v276_v47 = vld [vmem:[%s1344_s4 + $0x78] sm:$0xff]  ;;  %v73_v48 = vld [vmem:[%s1342_s0 + $0x80] sm:$0xff] }
  0x2c   :  { %v325_v9 = vadd.f32 %v261_v50, %v197_v62  ;;  %v326_v10 = vadd.f32 %v262_v51, %v198_v63  ;;  %v327_v11 = vadd.f32 %v263_v55, %v199_v0  ;;  %v328_v12 = vadd.f32 %v264_v56, %v200_v1  ;;  %v75_v55 = vld [vmem:[%s1342_s0 + $0x90] sm:$0xff]  ;;  %v76_v56 = vld [vmem:[%s1342_s0 + $0x98] sm:$0xff]  ;;  %v78_v62 = vld [vmem:[%s1342_s0 + $0xa8] sm:$0xff] }
  0x2d   :  { %v329_v13 = vadd.f32 %v265_v57, %v201_v5  ;;  %v330_v14 = vadd.f32 %v266_v2, %v202_v6  ;;  %v331_v15 = vadd.f32 %v267_v3, %v203_v7  ;;  %v332_v16 = vadd.f32 %v268_v4, %v204_v8  ;;  %v277_v4 = vld [vmem:[%s1344_s4 + $0x80] sm:$0xff]  ;;  %v79_v8 = vld [vmem:[%s1342_s0 + $0xb0] sm:$0xff] }
  0x2e   :  { %v389_v19 = vmax.f32 %v325_v9, 0.0  ;;  %v390_v20 = vmax.f32 %v326_v10, 0.0  ;;  %v391_v21 = vmax.f32 %v327_v11, 0.0  ;;  %v392_v22 = vmax.f32 %v328_v12, 0.0  ;;  %v80_v9 = vld [vmem:[%s1342_s0 + $0xb8] sm:$0xff]  ;;  %v278_v12 = vld [vmem:[%s1344_s4 + $0x88] sm:$0xff] }
  0x2f   :  { %v393_v25 = vmax.f32 %v329_v13, 0.0  ;;  %v394_v26 = vmax.f32 %v330_v14, 0.0  ;;  %v395_v27 = vmax.f32 %v331_v15, 0.0  ;;  %v396_v28 = vmax.f32 %v332_v16, 0.0  ;;  %v279_v13 = vld [vmem:[%s1344_s4 + $0x90] sm:$0xff]  ;;  %v280_v14 = vld [vmem:[%s1344_s4 + $0x98] sm:$0xff] }
  0x30   :  { %454 = vst.msk [vmem:[%s1345_s5] sm:$0xff] %vm453_vm1, %v389_v19  ;;  %455 = vst.msk [vmem:[%s1345_s5 + $0x8] sm:$0xff] %vm453_vm1, %v390_v20  ;;  %v205_v32 = vadd.f32 %v619_v49, %v135_v53  ;;  %v206_v33 = vadd.f32 %v619_v49, %v136_v54  ;;  %v207_v34 = vadd.f32 %v619_v49, %v137_v58  ;;  %v74_v54 = vld [vmem:[%s1342_s0 + $0x88] sm:$0xff] }
  0x31   :  { %456 = vst.msk [vmem:[%s1345_s5 + $0x10] sm:$0xff] %vm453_vm1, %v391_v21  ;;  %457 = vst.msk [vmem:[%s1345_s5 + $0x18] sm:$0xff] %vm453_vm1, %v392_v22  ;;  %v208_v35 = vadd.f32 %v619_v49, %v138_v59  ;;  %v209_v38 = vadd.f32 %v619_v49, %v139_v60  ;;  %v210_v39 = vadd.f32 %v619_v49, %v140_v61  ;;  %v77_v61 = vld [vmem:[%s1342_s0 + $0xa0] sm:$0xff]  ;;  %v282_v22 = vld [vmem:[%s1344_s4 + $0xa8] sm:$0xff] }
  0x32   :  { %458 = vst.msk [vmem:[%s1345_s5 + $0x20] sm:$0xff] %vm453_vm1, %v393_v25  ;;  %459 = vst.msk [vmem:[%s1345_s5 + $0x28] sm:$0xff] %vm453_vm1, %v394_v26  ;;  %v141_v40 = vmul.f32 %v583_v31, %v71_v23  ;;  %v142_v41 = vmul.f32 %v583_v31, %v72_v24  ;;  %v333_v42 = vadd.f32 %v269_v17, %v205_v32  ;;  %v281_v21 = vld [vmem:[%s1344_s4 + $0xa0] sm:$0xff]  ;;  %v283_v32 = vld [vmem:[%s1344_s4 + $0xb0] sm:$0xff] }
  0x33   :  { %460 = vst.msk [vmem:[%s1345_s5 + $0x30] sm:$0xff] %vm453_vm1, %v395_v27  ;;  %461 = vst.msk [vmem:[%s1345_s5 + $0x38] sm:$0xff] %vm453_vm1, %v396_v28  ;;  %v334_v43 = vadd.f32 %v270_v18, %v206_v33  ;;  %v335_v44 = vadd.f32 %v271_v29, %v207_v34  ;;  %v336_v45 = vadd.f32 %v272_v30, %v208_v35  ;;  %v284_v33 = vld [vmem:[%s1344_s4 + $0xb8] sm:$0xff]  ;;  %v81_v34 = vld [vmem:[%s1342_s0 + $0xc0] sm:$0xff] }
  0x34   :  { %v337_v50 = vadd.f32 %v273_v36, %v209_v38  ;;  %v338_v51 = vadd.f32 %v274_v37, %v210_v39  ;;  %v211_v52 = vadd.f32 %v619_v49, %v141_v40  ;;  %v212_v53 = vadd.f32 %v619_v49, %v142_v41  ;;  %v82_v39 = vld [vmem:[%s1342_s0 + $0xc8] sm:$0xff]  ;;  %v83_v40 = vld [vmem:[%s1342_s0 + $0xd0] sm:$0xff]  ;;  %v84_v41 = vld [vmem:[%s1342_s0 + $0xd8] sm:$0xff] }
  0x35   :  { %v397_v57 = vmax.f32 %v333_v42, 0.0  ;;  %v398_v58 = vmax.f32 %v334_v43, 0.0  ;;  %v399_v59 = vmax.f32 %v335_v44, 0.0  ;;  %v400_v60 = vmax.f32 %v336_v45, 0.0 }
  0x36   :  { %v401_v63 = vmax.f32 %v337_v50, 0.0  ;;  %v402_v0 = vmax.f32 %v338_v51, 0.0  ;;  %v339_v1 = vadd.f32 %v275_v46, %v211_v52  ;;  %v340_v2 = vadd.f32 %v276_v47, %v212_v53  ;;  %v85_v46 = vld [vmem:[%s1342_s0 + $0xe0] sm:$0xff]  ;;  %v86_v47 = vld [vmem:[%s1342_s0 + $0xe8] sm:$0xff] }
  0x37   :  { %462 = vst.msk [vmem:[%s1345_s5 + $0x40] sm:$0xff] %vm453_vm1, %v397_v57  ;;  %463 = vst.msk [vmem:[%s1345_s5 + $0x48] sm:$0xff] %vm453_vm1, %v398_v58  ;;  %v143_v3 = vmul.f32 %v583_v31, %v73_v48  ;;  %v144_v5 = vmul.f32 %v583_v31, %v74_v54  ;;  %v145_v6 = vmul.f32 %v583_v31, %v75_v55  ;;  %v285_v54 = vld [vmem:[%s1344_s4 + $0xc0] sm:$0xff]  ;;  %v87_v58 = vld [vmem:[%s1342_s0 + $0xf0] sm:$0xff] }
  0x38   :  { %464 = vst.msk [vmem:[%s1345_s5 + $0x50] sm:$0xff] %vm453_vm1, %v399_v59  ;;  %465 = vst.msk [vmem:[%s1345_s5 + $0x58] sm:$0xff] %vm453_vm1, %v400_v60  ;;  %v146_v7 = vmul.f32 %v583_v31, %v76_v56  ;;  %v403_v10 = vmax.f32 %v339_v1, 0.0  ;;  %v404_v11 = vmax.f32 %v340_v2, 0.0  ;;  %v147_v15 = vmul.f32 %v583_v31, %v77_v61  ;;  %v88_v59 = vld [vmem:[%s1342_s0 + $0xf8] sm:$0xff] }
  0x39   :  { %466 = vst.msk [vmem:[%s1345_s5 + $0x60] sm:$0xff] %vm453_vm1, %v401_v63  ;;  %467 = vst.msk [vmem:[%s1345_s5 + $0x68] sm:$0xff] %vm453_vm1, %v402_v0  ;;  %v148_v16 = vmul.f32 %v583_v31, %v78_v62  ;;  %v213_v17 = vadd.f32 %v619_v49, %v143_v3  ;;  %v214_v18 = vadd.f32 %v619_v49, %v144_v5  ;;  %v286_v62 = vld [vmem:[%s1344_s4 + $0xc8] sm:$0xff]  ;;  %v287_v63 = vld [vmem:[%s1344_s4 + $0xd0] sm:$0xff] }
  0x3a   :  { %v215_v19 = vadd.f32 %v619_v49, %v145_v6  ;;  %v216_v20 = vadd.f32 %v619_v49, %v146_v7  ;;  %468 = vst.msk [vmem:[%s1345_s5 + $0x70] sm:$0xff] %vm453_vm1, %v403_v10  ;;  %469 = vst.msk [vmem:[%s1345_s5 + $0x78] sm:$0xff] %vm453_vm1, %v404_v11  ;;  %v217_v23 = vadd.f32 %v619_v49, %v147_v15  ;;  %v288_v0 = vld [vmem:[%s1344_s4 + $0xd8] sm:$0xff]  ;;  %v289_v7 = vld [vmem:[%s1344_s4 + $0xe0] sm:$0xff] }
  0x3b   :  { %v218_v24 = vadd.f32 %v619_v49, %v148_v16  ;;  %v149_v25 = vmul.f32 %v583_v31, %v79_v8  ;;  %v150_v26 = vmul.f32 %v583_v31, %v80_v9  ;;  %v341_v27 = vadd.f32 %v277_v4, %v213_v17  ;;  %v290_v8 = vld [vmem:[%s1344_s4 + $0xe8] sm:$0xff]  ;;  %v291_v17 = vld [vmem:[%s1344_s4 + $0xf0] sm:$0xff] }
  0x3c   :  { %v342_v28 = vadd.f32 %v278_v12, %v214_v18  ;;  %v343_v29 = vadd.f32 %v279_v13, %v215_v19  ;;  %v344_v30 = vadd.f32 %v280_v14, %v216_v20  ;;  %v345_v35 = vadd.f32 %v281_v21, %v217_v23  ;;  %v292_v18 = vld [vmem:[%s1344_s4 + $0xf8] sm:$0xff]  ;;  %v89_v19 = vld [vmem:[%s1342_s0 + $0x100] sm:$0xff] }
  0x3d   :  { %v346_v36 = vadd.f32 %v282_v22, %v218_v24  ;;  %v219_v37 = vadd.f32 %v619_v49, %v149_v25  ;;  %v220_v38 = vadd.f32 %v619_v49, %v150_v26  ;;  %v405_v42 = vmax.f32 %v341_v27, 0.0  ;;  %v90_v24 = vld [vmem:[%s1342_s0 + $0x108] sm:$0xff]  ;;  %v91_v25 = vld [vmem:[%s1342_s0 + $0x110] sm:$0xff]  ;;  %v92_v26 = vld [vmem:[%s1342_s0 + $0x118] sm:$0xff] }
  0x3e   :  { %v406_v43 = vmax.f32 %v342_v28, 0.0  ;;  %v407_v44 = vmax.f32 %v343_v29, 0.0  ;;  %v408_v45 = vmax.f32 %v344_v30, 0.0  ;;  %v409_v48 = vmax.f32 %v345_v35, 0.0 }
  0x3f   :  { %v410_v50 = vmax.f32 %v346_v36, 0.0  ;;  %v347_v51 = vadd.f32 %v283_v32, %v219_v37  ;;  %v348_v52 = vadd.f32 %v284_v33, %v220_v38  ;;  %470 = vst.msk [vmem:[%s1345_s5 + $0x80] sm:$0xff] %vm453_vm1, %v405_v42  ;;  %v151_v53 = vmul.f32 %v583_v31, %v81_v34  ;;  %v93_v32 = vld [vmem:[%s1342_s0 + $0x120] sm:$0xff]  ;;  %v94_v33 = vld [vmem:[%s1342_s0 + $0x128] sm:$0xff] }
  0x40   :  { %471 = vst.msk [vmem:[%s1345_s5 + $0x88] sm:$0xff] %vm453_vm1, %v406_v43  ;;  %472 = vst.msk [vmem:[%s1345_s5 + $0x90] sm:$0xff] %vm453_vm1, %v407_v44  ;;  %v152_v55 = vmul.f32 %v583_v31, %v82_v39  ;;  %v153_v56 = vmul.f32 %v583_v31, %v83_v40  ;;  %v154_v57 = vmul.f32 %v583_v31, %v84_v41  ;;  %v293_v39 = vld [vmem:[%s1344_s4 + $0x100] sm:$0xff]  ;;  %v95_v43 = vld [vmem:[%s1342_s0 + $0x130] sm:$0xff] }
  0x41   :  { %473 = vst.msk [vmem:[%s1345_s5 + $0x98] sm:$0xff] %vm453_vm1, %v408_v45  ;;  %474 = vst.msk [vmem:[%s1345_s5 + $0xa0] sm:$0xff] %vm453_vm1, %v409_v48  ;;  %v411_v60 = vmax.f32 %v347_v51, 0.0  ;;  %v412_v61 = vmax.f32 %v348_v52, 0.0  ;;  %v155_v1 = vmul.f32 %v583_v31, %v85_v46  ;;  %v156_v2 = vmul.f32 %v583_v31, %v86_v47  ;;  %v96_v44 = vld [vmem:[%s1342_s0 + $0x138] sm:$0xff]  ;;  %v294_v47 = vld [vmem:[%s1344_s4 + $0x108] sm:$0xff] }
  0x42   :  { %475 = vst.msk [vmem:[%s1345_s5 + $0xa8] sm:$0xff] %vm453_vm1, %v410_v50  ;;  %v221_v3 = vadd.f32 %v619_v49, %v151_v53  ;;  %v222_v4 = vadd.f32 %v619_v49, %v152_v55  ;;  %v223_v5 = vadd.f32 %v619_v49, %v153_v56  ;;  %v224_v6 = vadd.f32 %v619_v49, %v154_v57  ;;  %v295_v48 = vld [vmem:[%s1344_s4 + $0x110] sm:$0xff]  ;;  %v296_v50 = vld [vmem:[%s1344_s4 + $0x118] sm:$0xff]  ;;  %v297_v57 = vld [vmem:[%s1344_s4 + $0x120] sm:$0xff] }
  0x43   :  { %476 = vst.msk [vmem:[%s1345_s5 + $0xb0] sm:$0xff] %vm453_vm1, %v411_v60  ;;  %477 = vst.msk [vmem:[%s1345_s5 + $0xb8] sm:$0xff] %vm453_vm1, %v412_v61  ;;  %v225_v9 = vadd.f32 %v619_v49, %v155_v1  ;;  %v226_v10 = vadd.f32 %v619_v49, %v156_v2  ;;  %v157_v11 = vmul.f32 %v583_v31, %v87_v58  ;;  %v298_v58 = vld [vmem:[%s1344_s4 + $0x128] sm:$0xff] }
  0x44   :  { %v158_v12 = vmul.f32 %v583_v31, %v88_v59  ;;  %v349_v13 = vadd.f32 %v285_v54, %v221_v3  ;;  %v350_v14 = vadd.f32 %v286_v62, %v222_v4  ;;  %v351_v15 = vadd.f32 %v287_v63, %v223_v5  ;;  %v299_v3 = vld [vmem:[%s1344_s4 + $0x130] sm:$0xff]  ;;  %v300_v4 = vld [vmem:[%s1344_s4 + $0x138] sm:$0xff]  ;;  %v97_v5 = vld [vmem:[%s1342_s0 + $0x140] sm:$0xff] }
  0x45   :  { %v352_v16 = vadd.f32 %v288_v0, %v224_v6  ;;  %v353_v20 = vadd.f32 %v289_v7, %v225_v9  ;;  %v354_v21 = vadd.f32 %v290_v8, %v226_v10  ;;  %v227_v22 = vadd.f32 %v619_v49, %v157_v11  ;;  %v98_v10 = vld [vmem:[%s1342_s0 + $0x148] sm:$0xff]  ;;  %v99_v11 = vld [vmem:[%s1342_s0 + $0x150] sm:$0xff] }
  0x46   :  { %v228_v23 = vadd.f32 %v619_v49, %v158_v12  ;;  %v413_v27 = vmax.f32 %v349_v13, 0.0  ;;  %v414_v28 = vmax.f32 %v350_v14, 0.0  ;;  %v415_v29 = vmax.f32 %v351_v15, 0.0  ;;  %v100_v12 = vld [vmem:[%s1342_s0 + $0x158] sm:$0xff] }
  0x47   :  { %v416_v30 = vmax.f32 %v352_v16, 0.0  ;;  %v417_v34 = vmax.f32 %v353_v20, 0.0  ;;  %v418_v35 = vmax.f32 %v354_v21, 0.0  ;;  %v355_v36 = vadd.f32 %v291_v17, %v227_v22  ;;  %v101_v17 = vld [vmem:[%s1342_s0 + $0x160] sm:$0xff] }
  0x48   :  { %v356_v37 = vadd.f32 %v292_v18, %v228_v23  ;;  %478 = vst.msk [vmem:[%s1345_s5 + $0xc0] sm:$0xff] %vm453_vm1, %v413_v27  ;;  %479 = vst.msk [vmem:[%s1345_s5 + $0xc8] sm:$0xff] %vm453_vm1, %v414_v28  ;;  %v159_v38 = vmul.f32 %v583_v31, %v89_v19  ;;  %v160_v40 = vmul.f32 %v583_v31, %v90_v24  ;;  %v102_v18 = vld [vmem:[%s1342_s0 + $0x168] sm:$0xff]  ;;  %v301_v24 = vld [vmem:[%s1344_s4 + $0x140] sm:$0xff] }
  0x49   :  { %480 = vst.msk [vmem:[%s1345_s5 + $0xd0] sm:$0xff] %vm453_vm1, %v415_v29  ;;  %481 = vst.msk [vmem:[%s1345_s5 + $0xd8] sm:$0xff] %vm453_vm1, %v416_v30  ;;  %v161_v41 = vmul.f32 %v583_v31, %v91_v25  ;;  %v162_v42 = vmul.f32 %v583_v31, %v92_v26  ;;  %v419_v45 = vmax.f32 %v355_v36, 0.0  ;;  %v163_v51 = vmul.f32 %v583_v31, %v93_v32  ;;  %v103_v28 = vld [vmem:[%s1342_s0 + $0x170] sm:$0xff]  ;;  %v104_v29 = vld [vmem:[%s1342_s0 + $0x178] sm:$0xff] }
  0x4a   :  { %482 = vst.msk [vmem:[%s1345_s5 + $0xe0] sm:$0xff] %vm453_vm1, %v417_v34  ;;  %483 = vst.msk [vmem:[%s1345_s5 + $0xe8] sm:$0xff] %vm453_vm1, %v418_v35  ;;  %v420_v46 = vmax.f32 %v356_v37, 0.0  ;;  %v164_v52 = vmul.f32 %v583_v31, %v94_v33  ;;  %v229_v53 = vadd.f32 %v619_v49, %v159_v38  ;;  %v230_v54 = vadd.f32 %v619_v49, %v160_v40  ;;  %v302_v33 = vld [vmem:[%s1344_s4 + $0x148] sm:$0xff]  ;;  %v303_v34 = vld [vmem:[%s1344_s4 + $0x150] sm:$0xff] }
  0x4b   :  { %v231_v55 = vadd.f32 %v619_v49, %v161_v41  ;;  %v232_v56 = vadd.f32 %v619_v49, %v162_v42  ;;  %484 = vst.msk [vmem:[%s1345_s5 + $0xf0] sm:$0xff] %vm453_vm1, %v419_v45  ;;  %v233_v59 = vadd.f32 %v619_v49, %v163_v51  ;;  %v165_v61 = vmul.f32 %v583_v31, %v95_v43  ;;  %v304_v35 = vld [vmem:[%s1344_s4 + $0x158] sm:$0xff]  ;;  %v305_v42 = vld [vmem:[%s1344_s4 + $0x160] sm:$0xff]  ;;  %v306_v43 = vld [vmem:[%s1344_s4 + $0x168] sm:$0xff] }
  0x4c   :  { %485 = vst.msk [vmem:[%s1345_s5 + $0xf8] sm:$0xff] %vm453_vm1, %v420_v46  ;;  %v234_v60 = vadd.f32 %v619_v49, %v164_v52  ;;  %v166_v62 = vmul.f32 %v583_v31, %v96_v44  ;;  %v357_v63 = vadd.f32 %v293_v39, %v229_v53  ;;  %v358_v0 = vadd.f32 %v294_v47, %v230_v54  ;;  %v307_v53 = vld [vmem:[%s1344_s4 + $0x170] sm:$0xff]  ;;  %v308_v54 = vld [vmem:[%s1344_s4 + $0x178] sm:$0xff] }
  0x4d   :  { %v359_v1 = vadd.f32 %v295_v48, %v231_v55  ;;  %v360_v2 = vadd.f32 %v296_v50, %v232_v56  ;;  %v361_v6 = vadd.f32 %v297_v57, %v233_v59  ;;  %v235_v8 = vadd.f32 %v619_v49, %v165_v61  ;;  %v105_v55 = vld [vmem:[%s1342_s0 + $0x180] sm:$0xff]  ;;  %v107_v61 = vld [vmem:[%s1342_s0 + $0x190] sm:$0xff] }
  0x4e   :  { %v362_v7 = vadd.f32 %v298_v58, %v234_v60  ;;  %v236_v9 = vadd.f32 %v619_v49, %v166_v62  ;;  %v421_v13 = vmax.f32 %v357_v63, 0.0  ;;  %v422_v14 = vmax.f32 %v358_v0, 0.0  ;;  %v106_v60 = vld [vmem:[%s1342_s0 + $0x188] sm:$0xff]  ;;  %v108_v62 = vld [vmem:[%s1342_s0 + $0x198] sm:$0xff] }
  0x4f   :  { %v423_v15 = vmax.f32 %v359_v1, 0.0  ;;  %v424_v16 = vmax.f32 %v360_v2, 0.0  ;;  %v425_v19 = vmax.f32 %v361_v6, 0.0  ;;  %v363_v21 = vadd.f32 %v299_v3, %v235_v8  ;;  %v109_v3 = vld [vmem:[%s1342_s0 + $0x1a0] sm:$0xff] }
  0x50   :  { %v426_v20 = vmax.f32 %v362_v7, 0.0  ;;  %v364_v22 = vadd.f32 %v300_v4, %v236_v9  ;;  %486 = vst.msk [vmem:[%s1345_s5 + $0x100] sm:$0xff] %vm453_vm1, %v421_v13  ;;  %487 = vst.msk [vmem:[%s1345_s5 + $0x108] sm:$0xff] %vm453_vm1, %v422_v14  ;;  %v167_v23 = vmul.f32 %v583_v31, %v97_v5  ;;  %v168_v25 = vmul.f32 %v583_v31, %v98_v10  ;;  %v110_v4 = vld [vmem:[%s1342_s0 + $0x1a8] sm:$0xff]  ;;  %v309_v10 = vld [vmem:[%s1344_s4 + $0x180] sm:$0xff] }
  0x51   :  { %488 = vst.msk [vmem:[%s1345_s5 + $0x110] sm:$0xff] %vm453_vm1, %v423_v15  ;;  %489 = vst.msk [vmem:[%s1345_s5 + $0x118] sm:$0xff] %vm453_vm1, %v424_v16  ;;  %v169_v26 = vmul.f32 %v583_v31, %v99_v11  ;;  %v170_v27 = vmul.f32 %v583_v31, %v100_v12  ;;  %v427_v30 = vmax.f32 %v363_v21, 0.0  ;;  %v171_v36 = vmul.f32 %v583_v31, %v101_v17  ;;  %v111_v14 = vld [vmem:[%s1342_s0 + $0x1b0] sm:$0xff]  ;;  %v112_v15 = vld [vmem:[%s1342_s0 + $0x1b8] sm:$0xff] }
  0x52   :  { %490 = vst.msk [vmem:[%s1345_s5 + $0x120] sm:$0xff] %vm453_vm1, %v425_v19  ;;  %491 = vst.msk [vmem:[%s1345_s5 + $0x128] sm:$0xff] %vm453_vm1, %v426_v20  ;;  %v428_v32 = vmax.f32 %v364_v22, 0.0  ;;  %v172_v37 = vmul.f32 %v583_v31, %v102_v18  ;;  %v237_v38 = vadd.f32 %v619_v49, %v167_v23  ;;  %v238_v39 = vadd.f32 %v619_v49, %v168_v25  ;;  %v310_v18 = vld [vmem:[%s1344_s4 + $0x188] sm:$0xff]  ;;  %v311_v19 = vld [vmem:[%s1344_s4 + $0x190] sm:$0xff] }
  0x53   :  { %v239_v40 = vadd.f32 %v619_v49, %v169_v26  ;;  %v240_v41 = vadd.f32 %v619_v49, %v170_v27  ;;  %492 = vst.msk [vmem:[%s1345_s5 + $0x130] sm:$0xff] %vm453_vm1, %v427_v30  ;;  %v241_v44 = vadd.f32 %v619_v49, %v171_v36  ;;  %v173_v46 = vmul.f32 %v583_v31, %v103_v28  ;;  %v312_v20 = vld [vmem:[%s1344_s4 + $0x198] sm:$0xff]  ;;  %v313_v27 = vld [vmem:[%s1344_s4 + $0x1a0] sm:$0xff]  ;;  %v314_v28 = vld [vmem:[%s1344_s4 + $0x1a8] sm:$0xff] }
  0x54   :  { %493 = vst.msk [vmem:[%s1345_s5 + $0x138] sm:$0xff] %vm453_vm1, %v428_v32  ;;  %v242_v45 = vadd.f32 %v619_v49, %v172_v37  ;;  %v174_v47 = vmul.f32 %v583_v31, %v104_v29  ;;  %v365_v48 = vadd.f32 %v301_v24, %v237_v38  ;;  %v366_v50 = vadd.f32 %v302_v33, %v238_v39  ;;  %v315_v38 = vld [vmem:[%s1344_s4 + $0x1b0] sm:$0xff]  ;;  %v316_v39 = vld [vmem:[%s1344_s4 + $0x1b8] sm:$0xff] }
  0x55   :  { %v367_v51 = vadd.f32 %v303_v34, %v239_v40  ;;  %v368_v52 = vadd.f32 %v304_v35, %v240_v41  ;;  %v369_v56 = vadd.f32 %v305_v42, %v241_v44  ;;  %v243_v58 = vadd.f32 %v619_v49, %v173_v46  ;;  %v113_v40 = vld [vmem:[%s1342_s0 + $0x1c0] sm:$0xff]  ;;  %v115_v46 = vld [vmem:[%s1342_s0 + $0x1d0] sm:$0xff] }
  0x56   :  { %v370_v57 = vadd.f32 %v306_v43, %v242_v45  ;;  %v244_v59 = vadd.f32 %v619_v49, %v174_v47  ;;  %v429_v63 = vmax.f32 %v365_v48, 0.0  ;;  %v430_v0 = vmax.f32 %v366_v50, 0.0  ;;  %v114_v45 = vld [vmem:[%s1342_s0 + $0x1c8] sm:$0xff]  ;;  %v116_v47 = vld [vmem:[%s1342_s0 + $0x1d8] sm:$0xff] }
  0x57   :  { %v431_v1 = vmax.f32 %v367_v51, 0.0  ;;  %v432_v2 = vmax.f32 %v368_v52, 0.0  ;;  %v433_v5 = vmax.f32 %v369_v56, 0.0  ;;  %v371_v7 = vadd.f32 %v307_v53, %v243_v58  ;;  %v117_v53 = vld [vmem:[%s1342_s0 + $0x1e0] sm:$0xff] }
  0x58   :  { %v434_v6 = vmax.f32 %v370_v57, 0.0  ;;  %v372_v8 = vadd.f32 %v308_v54, %v244_v59  ;;  %494 = vst.msk [vmem:[%s1345_s5 + $0x140] sm:$0xff] %vm453_vm1, %v429_v63  ;;  %495 = vst.msk [vmem:[%s1345_s5 + $0x148] sm:$0xff] %vm453_vm1, %v430_v0  ;;  %v175_v9 = vmul.f32 %v583_v31, %v105_v55  ;;  %v176_v11 = vmul.f32 %v583_v31, %v106_v60  ;;  %v118_v54 = vld [vmem:[%s1342_s0 + $0x1e8] sm:$0xff]  ;;  %v317_v60 = vld [vmem:[%s1344_s4 + $0x1c0] sm:$0xff] }
  0x59   :  { %496 = vst.msk [vmem:[%s1345_s5 + $0x150] sm:$0xff] %vm453_vm1, %v431_v1  ;;  %497 = vst.msk [vmem:[%s1345_s5 + $0x158] sm:$0xff] %vm453_vm1, %v432_v2  ;;  %v177_v12 = vmul.f32 %v583_v31, %v107_v61  ;;  %v178_v13 = vmul.f32 %v583_v31, %v108_v62  ;;  %v435_v16 = vmax.f32 %v371_v7, 0.0  ;;  %v179_v21 = vmul.f32 %v583_v31, %v109_v3  ;;  %v119_v0 = vld [vmem:[%s1342_s0 + $0x1f0] sm:$0xff]  ;;  %v120_v1 = vld [vmem:[%s1342_s0 + $0x1f8] sm:$0xff] }
  0x5a   :  { %498 = vst.msk [vmem:[%s1345_s5 + $0x160] sm:$0xff] %vm453_vm1, %v433_v5  ;;  %499 = vst.msk [vmem:[%s1345_s5 + $0x168] sm:$0xff] %vm453_vm1, %v434_v6  ;;  %v436_v17 = vmax.f32 %v372_v8, 0.0  ;;  %v180_v22 = vmul.f32 %v583_v31, %v110_v4  ;;  %v245_v23 = vadd.f32 %v619_v49, %v175_v9  ;;  %v246_v24 = vadd.f32 %v619_v49, %v176_v11  ;;  %v318_v4 = vld [vmem:[%s1344_s4 + $0x1c8] sm:$0xff]  ;;  %v319_v5 = vld [vmem:[%s1344_s4 + $0x1d0] sm:$0xff] }
  0x5b   :  { %v247_v25 = vadd.f32 %v619_v49, %v177_v12  ;;  %v248_v26 = vadd.f32 %v619_v49, %v178_v13  ;;  %500 = vst.msk [vmem:[%s1345_s5 + $0x170] sm:$0xff] %vm453_vm1, %v435_v16  ;;  %v249_v29 = vadd.f32 %v619_v49, %v179_v21  ;;  %v181_v32 = vmul.f32 %v583_v31, %v111_v14  ;;  %v320_v6 = vld [vmem:[%s1344_s4 + $0x1d8] sm:$0xff]  ;;  %v321_v13 = vld [vmem:[%s1344_s4 + $0x1e0] sm:$0xff]  ;;  %v322_v14 = vld [vmem:[%s1344_s4 + $0x1e8] sm:$0xff] }
  0x5c   :  { %501 = vst.msk [vmem:[%s1345_s5 + $0x178] sm:$0xff] %vm453_vm1, %v436_v17  ;;  %v250_v30 = vadd.f32 %v619_v49, %v180_v22  ;;  %v182_v33 = vmul.f32 %v583_v31, %v112_v15  ;;  %v373_v34 = vadd.f32 %v309_v10, %v245_v23  ;;  %v374_v35 = vadd.f32 %v310_v18, %v246_v24  ;;  %v323_v23 = vld [vmem:[%s1344_s4 + $0x1f0] sm:$0xff]  ;;  %v324_v24 = vld [vmem:[%s1344_s4 + $0x1f8] sm:$0xff] }
  0x5d   :  { %v375_v36 = vadd.f32 %v311_v19, %v247_v25  ;;  %v376_v37 = vadd.f32 %v312_v20, %v248_v26  ;;  %v377_v41 = vadd.f32 %v313_v27, %v249_v29  ;;  %v251_v43 = vadd.f32 %v619_v49, %v181_v32 }
  0x5e   :  { %v378_v42 = vadd.f32 %v314_v28, %v250_v30  ;;  %v252_v44 = vadd.f32 %v619_v49, %v182_v33  ;;  %v437_v48 = vmax.f32 %v373_v34, 0.0  ;;  %v438_v50 = vmax.f32 %v374_v35, 0.0 }
  0x5f   :  { %v439_v51 = vmax.f32 %v375_v36, 0.0  ;;  %v440_v52 = vmax.f32 %v376_v37, 0.0  ;;  %v441_v55 = vmax.f32 %v377_v41, 0.0  ;;  %v379_v57 = vadd.f32 %v315_v38, %v251_v43 }
  0x60   :  { %v442_v56 = vmax.f32 %v378_v42, 0.0  ;;  %v380_v58 = vadd.f32 %v316_v39, %v252_v44  ;;  %502 = vst.msk [vmem:[%s1345_s5 + $0x180] sm:$0xff] %vm453_vm1, %v437_v48  ;;  %503 = vst.msk [vmem:[%s1345_s5 + $0x188] sm:$0xff] %vm453_vm1, %v438_v50  ;;  %v183_v59 = vmul.f32 %v583_v31, %v113_v40  ;;  %v184_v61 = vmul.f32 %v583_v31, %v114_v45 }
  0x61   :  { %504 = vst.msk [vmem:[%s1345_s5 + $0x190] sm:$0xff] %vm453_vm1, %v439_v51  ;;  %505 = vst.msk [vmem:[%s1345_s5 + $0x198] sm:$0xff] %vm453_vm1, %v440_v52  ;;  %v185_v62 = vmul.f32 %v583_v31, %v115_v46  ;;  %v186_v63 = vmul.f32 %v583_v31, %v116_v47  ;;  %v443_v2 = vmax.f32 %v379_v57, 0.0  ;;  %v187_v7 = vmul.f32 %v583_v31, %v117_v53 }
  0x62   :  { %506 = vst.msk [vmem:[%s1345_s5 + $0x1a0] sm:$0xff] %vm453_vm1, %v441_v55  ;;  %507 = vst.msk [vmem:[%s1345_s5 + $0x1a8] sm:$0xff] %vm453_vm1, %v442_v56  ;;  %v444_v3 = vmax.f32 %v380_v58, 0.0  ;;  %v188_v8 = vmul.f32 %v583_v31, %v118_v54  ;;  %v253_v9 = vadd.f32 %v619_v49, %v183_v59  ;;  %v254_v10 = vadd.f32 %v619_v49, %v184_v61 }
  0x63   :  { %v255_v11 = vadd.f32 %v619_v49, %v185_v62  ;;  %v256_v12 = vadd.f32 %v619_v49, %v186_v63  ;;  %508 = vst.msk [vmem:[%s1345_s5 + $0x1b0] sm:$0xff] %vm453_vm1, %v443_v2  ;;  %v257_v15 = vadd.f32 %v619_v49, %v187_v7  ;;  %v189_v17 = vmul.f32 %v583_v31, %v119_v0 }
  0x64   :  { %509 = vst.msk [vmem:[%s1345_s5 + $0x1b8] sm:$0xff] %vm453_vm1, %v444_v3  ;;  %v258_v16 = vadd.f32 %v619_v49, %v188_v8  ;;  %v190_v18 = vmul.f32 %v583_v31, %v120_v1  ;;  %v381_v19 = vadd.f32 %v317_v60, %v253_v9  ;;  %v382_v20 = vadd.f32 %v318_v4, %v254_v10 }
  0x65   :  { %v383_v21 = vadd.f32 %v319_v5, %v255_v11  ;;  %v384_v22 = vadd.f32 %v320_v6, %v256_v12  ;;  %v385_v25 = vadd.f32 %v321_v13, %v257_v15  ;;  %v259_v27 = vadd.f32 %v619_v49, %v189_v17 }
  0x66   :  { %v386_v26 = vadd.f32 %v322_v14, %v258_v16  ;;  %v260_v28 = vadd.f32 %v619_v49, %v190_v18  ;;  %v445_v29 = vmax.f32 %v381_v19, 0.0  ;;  %v446_v31 = vmax.f32 %v382_v20, 0.0 }
  0x67   :  { %v447_v30 = vmax.f32 %v383_v21, 0.0  ;;  %v448_v32 = vmax.f32 %v384_v22, 0.0  ;;  %v449_v33 = vmax.f32 %v385_v25, 0.0  ;;  %v387_v35 = vadd.f32 %v323_v23, %v259_v27 }
  0x68   :  { %v450_v34 = vmax.f32 %v386_v26, 0.0  ;;  %v388_v36 = vadd.f32 %v324_v24, %v260_v28  ;;  %510 = vst.msk [vmem:[%s1345_s5 + $0x1c0] sm:$0xff] %vm453_vm1, %v445_v29  ;;  %511 = vst.msk [vmem:[%s1345_s5 + $0x1c8] sm:$0xff] %vm453_vm1, %v446_v31 }
  0x69   :  { %512 = vst.msk [vmem:[%s1345_s5 + $0x1d0] sm:$0xff] %vm453_vm1, %v447_v30  ;;  %513 = vst.msk [vmem:[%s1345_s5 + $0x1d8] sm:$0xff] %vm453_vm1, %v448_v32  ;;  %v451_v49 = vmax.f32 %v387_v35, 0.0 }
  0x6a   :  { %514 = vst.msk [vmem:[%s1345_s5 + $0x1e0] sm:$0xff] %vm453_vm1, %v449_v33  ;;  %515 = vst.msk [vmem:[%s1345_s5 + $0x1e8] sm:$0xff] %vm453_vm1, %v450_v34  ;;  %v452_v37 = vmax.f32 %v388_v36, 0.0 }
  0x6b   :  { %516 = vst.msk [vmem:[%s1345_s5 + $0x1f0] sm:$0xff] %vm453_vm1, %v451_v49 }
  0x6c   :  { %517 = vst.msk [vmem:[%s1345_s5 + $0x1f8] sm:$0xff] %vm453_vm1, %v452_v37 }

// kernel: fwd.4
= control target key start
LH: loop header
LB: loop body
LE: loop exit
PB: predicated region body
PF: predicated region fallthrough
CT: control target
= control target key end

     0   :  { %s6839_s12 = smov 0   ;;  %s6841_s13 = smov 0   ;;  %s9379_s0 = inlined_call_operand.vmem [shape: f32[2,1,324,4], index: 0, kind: input, shape index: {}]   ;;  %s9380_s1 = inlined_call_operand.vmem [shape: f32[9,4,4], index: 1, kind: input, shape index: {}]   ;;  %s9381_s2 = inlined_call_operand.vmem [shape: f32[2,16,16,4], index: 2, kind: output, shape index: {0}]   ;;  %s9382_s3 = inlined_call_operand.vmem [shape: f32[2,2,4], index: 3, kind: output, shape index: {1}]  }
   0x1   :  { %s6843_s14 = smov 0  }
   0x2 LB: > { %s26_s15 = sadd.s32 1, %s6813_s13  ;;  %p5180_p0 = scmp.ge.s32.totalorder %s6817_s14, 1  ;;  %s6817_s14 = sphi %s6843_s14, %s14_s14   ;;  %s6813_s13 = sphi %s6841_s13, %s9933_s13   ;;  %s6809_s12 = sphi %s6839_s12, %s9932_s12  }
   0x3   : > { %p28_p1 = scmp.ge.s32.totalorder %s26_s15, 2  ;;  %p165_p2 = scmp.lt.s32.totalorder %s6817_s14, 3 }
   0x5   : > { %s9935_s15 = smov (%p28_p1, %s26_s15), 0  ;;  %p166_p3 = pnand %p5180_p0, %p165_p2 }
   0x7   : > { %169 = sbr.rel (%p166_p3) target bundleno = 609 (0x261), region = 28 }
   0xe   : > { %v5185_v0 = vld [vmem:[%s9380_s1 + $0x4] sm:$0xf]  ;;  %vm411_vm0 = vcmask 1043456   ;;  %v6863_v1 = vld [vmem:[%s9380_s1 + $0x10] sm:$0xf]  ;;  %p203_p4 = scmp.lt.s32.totalorder %s6809_s12, 1 }
   0xf   : > { %5904 = vmatprep.subr.msk.mxu1 %vm411_vm0, %v5185_v0  ;;  %6128 = vmatprep.subr.msk.mxu0 %vm411_vm0, %v6863_v1  ;;  %v263_v2 = vld [vmem:[%s9380_s1] sm:$0xf]  ;;  %v5374_v3 = vld [vmem:[%s9380_s1 + $0x14] sm:$0xf]  ;;  %vm9383_vm1 = vcmask 31744  }
  0x10   : > { %5905 = vmatpush3.msk.msra.mxu1 %vm411_vm0, %v5185_v0  ;;  %6129 = vmatpush3.msk.msra.mxu0 %vm411_vm0, %v6863_v1  ;;  %s9937_s12 = smov (!%p203_p4, %s6809_s12), 1  ;;  %v6900_v10 = vld [vmem:[%s9380_s1 + $0x18] sm:$0xf]  ;;  %v6905_v11 = vld [vmem:[%s9380_s1 + $0x8] sm:$0xf] }
  0x11   : > { %5960 = vmatprep.subr.msk.mxu1 %vm411_vm0, %v263_v2  ;;  %6184 = vmatprep.subr.msk.mxu0 %vm411_vm0, %v5374_v3  ;;  %s6698_s24 = smul.u32 328, %s9937_s12  ;;  %v6988_v48 = vld [vmem:[%s9380_s1 + $0x1c] sm:$0xf]  ;;  %s5570_s11 = sshll.u32 %s9937_s12, 8 }
  0x12   : > { %s8663_s18 = scalar_lea.vmem %s9381_s2, %s5570_s11  ;;  %s5184_s19 = sshll.u32 %s9937_s12, 1 }
  0x13   : > { %s6885_s27 = scalar_lea.vmem %s9379_s0, %s6698_s24  ;;  %s226_s22 = scalar_lea.vmem %s9382_s3, %s5184_s19 }
  0x14   : > { %v264_v4 = vld [vmem:[%s6885_s27 + $0x1] sm:$0xff]  ;;  %v1876_v5 = vld [vmem:[%s6885_s27 + $0x13] sm:$0xff]  ;;  %v265_v6 = vld [vmem:[%s6885_s27 + $0x9] sm:$0xff] }
  0x15   : > { %5906 = vmatprep.mubr.msk.f32.mxu1 %vm9383_vm1, %v264_v4  ;;  %6130 = vmatprep.mubr.msk.f32.mxu0 %vm9383_vm1, %v1876_v5  ;;  %v1877_v7 = vld [vmem:[%s6885_s27 + $0x1b] sm:$0xff]  ;;  %v266_v8 = vld [vmem:[%s6885_s27 + $0x11] sm:$0xff]  ;;  %v1878_v9 = vld [vmem:[%s6885_s27 + $0x23] sm:$0xff] }
  0x16   : > { %5907 = vmatmul.mubr.msk.f32.vlgmr.msra.gmra.mrb[0].mxu1 %vm9383_vm1, %v265_v6  ;;  %6131 = vmatmul.mubr.msk.f32.vlgmr.msra.gmra.mrb[0].mxu0 %vm9383_vm1, %v1877_v7  ;;  %v267_v12 = vld [vmem:[%s6885_s27 + $0x19] sm:$0xff]  ;;  %v1879_v13 = vld [vmem:[%s6885_s27 + $0x2b] sm:$0xff]  ;;  %v268_v14 = vld [vmem:[%s6885_s27 + $0x21] sm:$0xff] }
  0x17   : > { %5961 = vmatpush3.msk.msra.mxu1 %vm411_vm0, %v263_v2  ;;  %6185 = vmatpush3.msk.msra.mxu0 %vm411_vm0, %v5374_v3  ;;  %v1880_v15 = vld [vmem:[%s6885_s27 + $0x33] sm:$0xff]  ;;  %v269_v16 = vld [vmem:[%s6885_s27 + $0x29] sm:$0xff]  ;;  %v1881_v17 = vld [vmem:[%s6885_s27 + $0x3b] sm:$0xff] }
  0x18   : > { %5909 = vmatprep.mubr.msk.f32.mxu1 %vm9383_vm1, %v266_v8  ;;  %6133 = vmatprep.mubr.msk.f32.mxu0 %vm9383_vm1, %v1878_v9  ;;  %v270_v18 = vld [vmem:[%s6885_s27 + $0x31] sm:$0xff]  ;;  %v1882_v19 = vld [vmem:[%s6885_s27 + $0x43] sm:$0xff]  ;;  %v271_v20 = vld [vmem:[%s6885_s27 + $0x39] sm:$0xff] }
  0x19   : > { %6240 = vmatprep.subr.msk.mxu0 %vm411_vm0, %v6900_v10  ;;  %6016 = vmatprep.subr.msk.mxu1 %vm411_vm0, %v6905_v11  ;;  %v1883_v21 = vld [vmem:[%s6885_s27 + $0x4b] sm:$0xff]  ;;  %v272_v22 = vld [vmem:[%s6885_s27 + $0x41] sm:$0xff]  ;;  %v1884_v23 = vld [vmem:[%s6885_s27 + $0x53] sm:$0xff] }
  0x1a   : > { %5910 = vmatmul.mubr.msk.f32.gmra.mrb[2].mxu1 %vm9383_vm1, %v267_v12  ;;  %6134 = vmatmul.mubr.msk.f32.gmra.mrb[2].mxu0 %vm9383_vm1, %v1879_v13  ;;  %v273_v24 = vld [vmem:[%s6885_s27 + $0x49] sm:$0xff]  ;;  %v1885_v25 = vld [vmem:[%s6885_s27 + $0x5b] sm:$0xff]  ;;  %v274_v26 = vld [vmem:[%s6885_s27 + $0x51] sm:$0xff] }
  0x1b   : > { %5912 = vmatprep.mubr.msk.f32.mxu1 %vm9383_vm1, %v268_v14  ;;  %6136 = vmatprep.mubr.msk.f32.mxu0 %vm9383_vm1, %v1880_v15  ;;  %v1886_v27 = vld [vmem:[%s6885_s27 + $0x63] sm:$0xff]  ;;  %v275_v28 = vld [vmem:[%s6885_s27 + $0x59] sm:$0xff]  ;;  %v1887_v29 = vld [vmem:[%s6885_s27 + $0x6b] sm:$0xff] }
  0x1c   : > { %v276_v30 = vld [vmem:[%s6885_s27 + $0x61] sm:$0xff]  ;;  %v1888_v31 = vld [vmem:[%s6885_s27 + $0x73] sm:$0xff]  ;;  %v277_v32 = vld [vmem:[%s6885_s27 + $0x69] sm:$0xff] }
  0x1d   : > { %v1889_v33 = vld [vmem:[%s6885_s27 + $0x7b] sm:$0xff]  ;;  %v278_v34 = vld [vmem:[%s6885_s27 + $0x71] sm:$0xff]  ;;  %v1890_v35 = vld [vmem:[%s6885_s27 + $0x83] sm:$0xff] }
  0x1e   : > { %5913 = vmatmul.mubr.msk.f32.gmra.mrb[4].mxu1 %vm9383_vm1, %v269_v16  ;;  %6137 = vmatmul.mubr.msk.f32.gmra.mrb[4].mxu0 %vm9383_vm1, %v1881_v17  ;;  %v279_v36 = vld [vmem:[%s6885_s27 + $0x79] sm:$0xff]  ;;  %v1891_v37 = vld [vmem:[%s6885_s27 + $0x8b] sm:$0xff]  ;;  %v280_v38 = vld [vmem:[%s6885_s27 + $0x81] sm:$0xff] }
  0x1f   : > { %5915 = vmatprep.mubr.msk.f32.mxu1 %vm9383_vm1, %v270_v18  ;;  %6139 = vmatprep.mubr.msk.f32.mxu0 %vm9383_vm1, %v1882_v19  ;;  %v1892_v39 = vld [vmem:[%s6885_s27 + $0x93] sm:$0xff]  ;;  %v281_v40 = vld [vmem:[%s6885_s27 + $0x89] sm:$0xff]  ;;  %v1893_v41 = vld [vmem:[%s6885_s27 + $0x9b] sm:$0xff] }
  0x20   : > { %v282_v42 = vld [vmem:[%s6885_s27 + $0x91] sm:$0xff]  ;;  %v283_v44 = vld [vmem:[%s6885_s27 + $0x99] sm:$0xff]  ;;  %v284_v46 = vld [vmem:[%s6885_s27 + $0xa1] sm:$0xff] }
  0x21   : > { %v2306_v43 = vld [vmem:[%s6885_s27 + $0x14] sm:$0xff]  ;;  %v2307_v45 = vld [vmem:[%s6885_s27 + $0x1c] sm:$0xff]  ;;  %v6983_v47 = vld [vmem:[%s6885_s27 + $0x24] sm:$0xff] }
  0x22   : > { %5916 = vmatmul.mubr.msk.f32.gmra.mrb[6].mxu1 %vm9383_vm1, %v271_v20  ;;  %6140 = vmatmul.mubr.msk.f32.gmra.mrb[6].mxu0 %vm9383_vm1, %v1883_v21  ;;  %v285_v49 = vld [vmem:[%s6885_s27 + $0xa9] sm:$0xff]  ;;  %v286_v51 = vld [vmem:[%s6885_s27 + $0xb1] sm:$0xff]  ;;  %v287_v53 = vld [vmem:[%s6885_s27 + $0xb9] sm:$0xff] }
  0x23   : > { %5918 = vmatprep.mubr.msk.f32.mxu1 %vm9383_vm1, %v272_v22  ;;  %6142 = vmatprep.mubr.msk.f32.mxu0 %vm9383_vm1, %v1884_v23  ;;  %v6997_v50 = vld [vmem:[%s6885_s27 + $0x2c] sm:$0xff]  ;;  %v7003_v52 = vld [vmem:[%s6885_s27 + $0x34] sm:$0xff]  ;;  %v7015_v54 = vld [vmem:[%s6885_s27 + $0x3c] sm:$0xff] }
  0x24   : > { %v288_v55 = vld [vmem:[%s6885_s27 + $0xc1] sm:$0xff]  ;;  %v289_v57 = vld [vmem:[%s6885_s27 + $0xc9] sm:$0xff]  ;;  %v290_v59 = vld [vmem:[%s6885_s27 + $0xd1] sm:$0xff] }
  0x25   : > { %v7019_v56 = vld [vmem:[%s6885_s27 + $0x44] sm:$0xff]  ;;  %v7029_v58 = vld [vmem:[%s6885_s27 + $0x4c] sm:$0xff]  ;;  %v7033_v60 = vld [vmem:[%s6885_s27 + $0x54] sm:$0xff] }
  0x26   : > { %5919 = vmatmul.mubr.msk.f32.gmra.mrb[8].mxu1 %vm9383_vm1, %v273_v24  ;;  %6143 = vmatmul.mubr.msk.f32.gmra.mrb[8].mxu0 %vm9383_vm1, %v1885_v25  ;;  %v291_v61 = vld [vmem:[%s6885_s27 + $0xd9] sm:$0xff]  ;;  %v292_v63 = vld [vmem:[%s6885_s27 + $0xe1] sm:$0xff]  ;;  %v293_v2 = vld [vmem:[%s6885_s27 + $0xe9] sm:$0xff] }
  0x27   : > { %5921 = vmatprep.mubr.msk.f32.mxu1 %vm9383_vm1, %v274_v26  ;;  %6145 = vmatprep.mubr.msk.f32.mxu0 %vm9383_vm1, %v1886_v27  ;;  %v7043_v62 = vld [vmem:[%s6885_s27 + $0x5c] sm:$0xff]  ;;  %v7047_v0 = vld [vmem:[%s6885_s27 + $0x64] sm:$0xff]  ;;  %v7057_v3 = vld [vmem:[%s6885_s27 + $0x6c] sm:$0xff] }
  0x28   : > { %v294_v4 = vld [vmem:[%s6885_s27 + $0xf1] sm:$0xff]  ;;  %v295_v6 = vld [vmem:[%s6885_s27 + $0xf9] sm:$0xff]  ;;  %v296_v8 = vld [vmem:[%s6885_s27 + $0x101] sm:$0xff] }
  0x29   : > { %v7061_v5 = vld [vmem:[%s6885_s27 + $0x74] sm:$0xff]  ;;  %v7071_v7 = vld [vmem:[%s6885_s27 + $0x7c] sm:$0xff]  ;;  %v7075_v9 = vld [vmem:[%s6885_s27 + $0x84] sm:$0xff] }
  0x2a   : > { %5922 = vmatmul.mubr.msk.f32.gmra.mrb[10].mxu1 %vm9383_vm1, %v275_v28  ;;  %6146 = vmatmul.mubr.msk.f32.gmra.mrb[10].mxu0 %vm9383_vm1, %v1887_v29  ;;  %v7085_v12 = vld [vmem:[%s6885_s27 + $0x8c] sm:$0xff]  ;;  %v7089_v14 = vld [vmem:[%s6885_s27 + $0x94] sm:$0xff]  ;;  %v7099_v16 = vld [vmem:[%s6885_s27 + $0x9c] sm:$0xff] }
  0x2b   : > { %5924 = vmatprep.mubr.msk.f32.mxu1 %vm9383_vm1, %v276_v30  ;;  %6148 = vmatprep.mubr.msk.f32.mxu0 %vm9383_vm1, %v1888_v31  ;;  %v298_v13 = vld [vmem:[%s6885_s27 + $0x111] sm:$0xff]  ;;  %v299_v15 = vld [vmem:[%s6885_s27 + $0x119] sm:$0x3f]  ;;  %v227_v17 = vld [vmem:[%s6885_s27] sm:$0xff] }
  0x2c   : > { %v7103_v18 = vld [vmem:[%s6885_s27 + $0xa4] sm:$0xff]  ;;  %v7113_v20 = vld [vmem:[%s6885_s27 + $0xac] sm:$0xff]  ;;  %v7117_v22 = vld [vmem:[%s6885_s27 + $0xb4] sm:$0xff] }
  0x2d   : > { %v228_v19 = vld [vmem:[%s6885_s27 + $0x8] sm:$0xff]  ;;  %v229_v21 = vld [vmem:[%s6885_s27 + $0x10] sm:$0xff]  ;;  %v230_v24 = vld [vmem:[%s6885_s27 + $0x18] sm:$0xff] }
  0x2e   : > { %5925 = vmatmul.mubr.msk.f32.gmra.mrb[12].mxu1 %vm9383_vm1, %v277_v32  ;;  %6149 = vmatmul.mubr.msk.f32.gmra.mrb[12].mxu0 %vm9383_vm1, %v1889_v33  ;;  %v7122_v23 = vld [vmem:[%s9380_s1 + $0xc] sm:$0xf]  ;;  %v7132_v25 = vld [vmem:[%s6885_s27 + $0xbc] sm:$0xff]  ;;  %v7138_v27 = vld [vmem:[%s6885_s27 + $0xc4] sm:$0xff] }
  0x2f   : > { %5927 = vmatprep.mubr.msk.f32.mxu1 %vm9383_vm1, %v278_v34  ;;  %6151 = vmatprep.mubr.msk.f32.mxu0 %vm9383_vm1, %v1890_v35  ;;  %v231_v26 = vld [vmem:[%s6885_s27 + $0x20] sm:$0xff]  ;;  %v7150_v28 = vld [vmem:[%s6885_s27 + $0xcc] sm:$0xff]  ;;  %v7154_v30 = vld [vmem:[%s6885_s27 + $0xd4] sm:$0xff] }
  0x30   : > { %v233_v29 = vld [vmem:[%s6885_s27 + $0x30] sm:$0xff]  ;;  %v234_v31 = vld [vmem:[%s6885_s27 + $0x38] sm:$0xff]  ;;  %v235_v33 = vld [vmem:[%s6885_s27 + $0x40] sm:$0xff] }
  0x31   : > { %v7164_v32 = vld [vmem:[%s6885_s27 + $0xdc] sm:$0xff]  ;;  %v7168_v34 = vld [vmem:[%s6885_s27 + $0xe4] sm:$0xff] }
  0x32   : > { %5928 = vmatmul.mubr.msk.f32.gmra.mrb[14].mxu1 %vm9383_vm1, %v279_v36  ;;  %6152 = vmatmul.mubr.msk.f32.gmra.mrb[14].mxu0 %vm9383_vm1, %v1891_v37  ;;  %v236_v35 = vld [vmem:[%s6885_s27 + $0x48] sm:$0xff]  ;;  %v237_v37 = vld [vmem:[%s6885_s27 + $0x50] sm:$0xff] }
  0x33   : > { %5930 = vmatprep.mubr.msk.f32.mxu1 %vm9383_vm1, %v280_v38  ;;  %6154 = vmatprep.mubr.msk.f32.mxu0 %vm9383_vm1, %v1892_v39  ;;  %v7178_v36 = vld [vmem:[%s6885_s27 + $0xec] sm:$0xff]  ;;  %v7182_v38 = vld [vmem:[%s6885_s27 + $0xf4] sm:$0xff] }
  0x34   : > { %v238_v39 = vld [vmem:[%s6885_s27 + $0x58] sm:$0xff] }
  0x36   : > { %5931 = vmatmul.mubr.msk.f32.gmra.mrb[16].mxu1 %vm9383_vm1, %v281_v40  ;;  %6155 = vmatmul.mubr.msk.f32.gmra.mrb[16].mxu0 %vm9383_vm1, %v1893_v41  ;;  %v7192_v40 = vld [vmem:[%s6885_s27 + $0xfc] sm:$0xff] }
  0x37   : > { %5933 = vmatprep.mubr.msk.f32.mxu1 %vm9383_vm1, %v282_v42  ;;  %6186 = vmatprep.mubr.msk.f32.mxu0 %vm9383_vm1, %v2306_v43  ;;  %v239_v41 = vld [vmem:[%s6885_s27 + $0x60] sm:$0xff]  ;;  %v240_v43 = vld [vmem:[%s6885_s27 + $0x68] sm:$0xff] }
  0x38   : > { %v7196_v42 = vld [vmem:[%s6885_s27 + $0x104] sm:$0xff] }
  0x3a   : > { %5934 = vmatmul.mubr.msk.f32.gmra.mrb[18].mxu1 %vm9383_vm1, %v283_v44  ;;  %6187 = vmatmul.mubr.msk.f32.vlgmr.msra.gmra.mrb[0].mxu0 %vm9383_vm1, %v2307_v45  ;;  %v7206_v44 = vld [vmem:[%s6885_s27 + $0x10c] sm:$0xff] }
  0x3b   : > { %6241 = vmatpush3.msk.msra.mxu0 %vm411_vm0, %v6900_v10  ;;  %5936 = vmatprep.mubr.msk.f32.mxu1 %vm9383_vm1, %v284_v46  ;;  %v297_v10 = vld [vmem:[%s6885_s27 + $0x109] sm:$0xff]  ;;  %v7210_v46 = vld [vmem:[%s6885_s27 + $0x114] sm:$0xff] }
  0x3c   : > { %6189 = vmatprep.mubr.msk.f32.mxu0 %vm9383_vm1, %v6983_v47  ;;  %6296 = vmatprep.subr.msk.mxu0 %vm411_vm0, %v6988_v48  ;;  %v241_v45 = vld [vmem:[%s6885_s27 + $0x70] sm:$0xff] }
  0x3e   : > { %5937 = vmatmul.mubr.msk.f32.gmra.mrb[20].mxu1 %vm9383_vm1, %v285_v49  ;;  %6190 = vmatmul.mubr.msk.f32.gmra.mrb[2].mxu0 %vm9383_vm1, %v6997_v50  ;;  %v242_v49 = vld [vmem:[%s6885_s27 + $0x78] sm:$0xff] }
  0x3f   : > { %5939 = vmatprep.mubr.msk.f32.mxu1 %vm9383_vm1, %v286_v51  ;;  %6192 = vmatprep.mubr.msk.f32.mxu0 %vm9383_vm1, %v7003_v52  ;;  %v7220_v51 = vld [vmem:[%s6885_s27 + $0x11c] sm:$0xff] }
  0x42   : > { %5940 = vmatmul.mubr.msk.f32.gmra.mrb[22].mxu1 %vm9383_vm1, %v287_v53  ;;  %6193 = vmatmul.mubr.msk.f32.gmra.mrb[4].mxu0 %vm9383_vm1, %v7015_v54  ;;  %v243_v53 = vld [vmem:[%s6885_s27 + $0x80] sm:$0xff] }
  0x43   : > { %5942 = vmatprep.mubr.msk.f32.mxu1 %vm9383_vm1, %v288_v55  ;;  %6195 = vmatprep.mubr.msk.f32.mxu0 %vm9383_vm1, %v7019_v56  ;;  %v7224_v55 = vld [vmem:[%s6885_s27 + $0x124] sm:$0xff] }
  0x46   : > { %5943 = vmatmul.mubr.msk.f32.gmra.mrb[24].mxu1 %vm9383_vm1, %v289_v57  ;;  %6196 = vmatmul.mubr.msk.f32.gmra.mrb[6].mxu0 %vm9383_vm1, %v7029_v58  ;;  %v244_v57 = vld [vmem:[%s6885_s27 + $0x88] sm:$0xff] }
  0x47   : > { %5945 = vmatprep.mubr.msk.f32.mxu1 %vm9383_vm1, %v290_v59  ;;  %6198 = vmatprep.mubr.msk.f32.mxu0 %vm9383_vm1, %v7033_v60  ;;  %v2341_v59 = vld [vmem:[%s6885_s27 + $0x12c] sm:$0x3f] }
  0x4a   : > { %5946 = vmatmul.mubr.msk.f32.gmra.mrb[26].mxu1 %vm9383_vm1, %v291_v61  ;;  %6199 = vmatmul.mubr.msk.f32.gmra.mrb[8].mxu0 %vm9383_vm1, %v7043_v62  ;;  %v245_v61 = vld [vmem:[%s6885_s27 + $0x90] sm:$0xff] }
  0x4b   : > { %5948 = vmatprep.mubr.msk.f32.mxu1 %vm9383_vm1, %v292_v63  ;;  %6201 = vmatprep.mubr.msk.f32.mxu0 %vm9383_vm1, %v7047_v0  ;;  %v246_v63 = vld [vmem:[%s6885_s27 + $0x98] sm:$0xff] }
  0x4e   : > { %5949 = vmatmul.mubr.msk.f32.gmra.mrb[28].mxu1 %vm9383_vm1, %v293_v2  ;;  %6202 = vmatmul.mubr.msk.f32.gmra.mrb[10].mxu0 %vm9383_vm1, %v7057_v3  ;;  %v247_v2 = vld [vmem:[%s6885_s27 + $0xa0] sm:$0xff] }
  0x4f   : > { %5951 = vmatprep.mubr.msk.f32.mxu1 %vm9383_vm1, %v294_v4  ;;  %6204 = vmatprep.mubr.msk.f32.mxu0 %vm9383_vm1, %v7061_v5  ;;  %v7245_v4 = vld [vmem:[%s9380_s1 + $0x20] sm:$0xf] }
  0x52   : > { %5952 = vmatmul.mubr.msk.f32.gmra.mrb[30].mxu1 %vm9383_vm1, %v295_v6  ;;  %6205 = vmatmul.mubr.msk.f32.gmra.mrb[12].mxu0 %vm9383_vm1, %v7071_v7  ;;  %v249_v6 = vld [vmem:[%s6885_s27 + $0xb0] sm:$0xff] }
  0x53   : > { %5954 = vmatprep.mubr.msk.f32.mxu1 %vm9383_vm1, %v296_v8  ;;  %6207 = vmatprep.mubr.msk.f32.mxu0 %vm9383_vm1, %v7075_v9  ;;  %v262_v8 = vld [vmem:[%s6885_s27 + $0x118] sm:$0x3f] }
  0x56   : > { %5955 = vmatmul.mubr.msk.f32.gmra.mrb[32].mxu1 %vm9383_vm1, %v297_v10  ;;  %6208 = vmatmul.mubr.msk.f32.gmra.mrb[14].mxu0 %vm9383_vm1, %v7085_v12  ;;  %v1017_v10 = vld [vmem:[%s6885_s27 + $0xa] sm:$0xff] }
  0x57   : > { %5957 = vmatprep.mubr.msk.f32.mxu1 %vm9383_vm1, %v298_v13  ;;  %6210 = vmatprep.mubr.msk.f32.mxu0 %vm9383_vm1, %v7089_v14  ;;  %v7333_v13 = vld [vmem:[%s6885_s27 + $0x1a] sm:$0xff] }
  0x5a   : > { %5958 = vmatmul.mubr.msk.f32.gmra.mrb[34].mxu1 %vm9383_vm1, %v299_v15  ;;  %6211 = vmatmul.mubr.msk.f32.gmra.mrb[16].mxu0 %vm9383_vm1, %v7099_v16  ;;  %v7351_v15 = vld [vmem:[%s6885_s27 + $0x2a] sm:$0xff] }
  0x5b   : > { %5962 = vmatprep.mubr.msk.f32.mxu1 %vm9383_vm1, %v227_v17  ;;  %6213 = vmatprep.mubr.msk.f32.mxu0 %vm9383_vm1, %v7103_v18  ;;  %v7365_v17 = vld [vmem:[%s6885_s27 + $0x3a] sm:$0xff] }
  0x5e   : > { %5963 = vmatmul.mubr.msk.f32.vlgmr.msra.gmra.mrb[0].mxu1 %vm9383_vm1, %v228_v19  ;;  %6214 = vmatmul.mubr.msk.f32.gmra.mrb[18].mxu0 %vm9383_vm1, %v7113_v20  ;;  %v7379_v19 = vld [vmem:[%s6885_s27 + $0x4a] sm:$0xff] }
  0x5f   : > { %6017 = vmatpush3.msk.msra.mxu1 %vm411_vm0, %v6905_v11  ;;  %5965 = vmatprep.mubr.msk.f32.mxu1 %vm9383_vm1, %v229_v21  ;;  %v232_v11 = vld [vmem:[%s6885_s27 + $0x28] sm:$0xff]  ;;  %v7393_v21 = vld [vmem:[%s6885_s27 + $0x5a] sm:$0xff] }
  0x60   : > { %6216 = vmatprep.mubr.msk.f32.mxu0 %vm9383_vm1, %v7117_v22  ;;  %6072 = vmatprep.subr.msk.mxu1 %vm411_vm0, %v7122_v23 }
  0x62   : > { %5966 = vmatmul.mubr.msk.f32.gmra.mrb[2].mxu1 %vm9383_vm1, %v230_v24  ;;  %6217 = vmatmul.mubr.msk.f32.gmra.mrb[20].mxu0 %vm9383_vm1, %v7132_v25  ;;  %v7410_v24 = vld [vmem:[%s6885_s27 + $0x72] sm:$0xff] }
  0x63   : > { %5968 = vmatprep.mubr.msk.f32.mxu1 %vm9383_vm1, %v231_v26  ;;  %6219 = vmatprep.mubr.msk.f32.mxu0 %vm9383_vm1, %v7138_v27  ;;  %v2769_v26 = vld [vmem:[%s6885_s27 + $0x12c] sm:$0xff] }
  0x66   : > { %5969 = vmatmul.mubr.msk.f32.gmra.mrb[4].mxu1 %vm9383_vm1, %v232_v11  ;;  %6220 = vmatmul.mubr.msk.f32.gmra.mrb[22].mxu0 %vm9383_vm1, %v7150_v28  ;;  %v2770_v11 = vld [vmem:[%s6885_s27 + $0x134] sm:$0xff] }
  0x67   : > { %5971 = vmatprep.mubr.msk.f32.mxu1 %vm9383_vm1, %v233_v29  ;;  %6222 = vmatprep.mubr.msk.f32.mxu0 %vm9383_vm1, %v7154_v30  ;;  %v2771_v29 = vld [vmem:[%s6885_s27 + $0x13c] sm:$0x3f] }
  0x6a   : > { %5972 = vmatmul.mubr.msk.f32.gmra.mrb[6].mxu1 %vm9383_vm1, %v234_v31  ;;  %6223 = vmatmul.mubr.msk.f32.gmra.mrb[24].mxu0 %vm9383_vm1, %v7164_v32  ;;  %v3166_v31 = vld [vmem:[%s6885_s27 + $0x25] sm:$0xff] }
  0x6b   : > { %5974 = vmatprep.mubr.msk.f32.mxu1 %vm9383_vm1, %v235_v33  ;;  %6225 = vmatprep.mubr.msk.f32.mxu0 %vm9383_vm1, %v7168_v34  ;;  %v3167_v33 = vld [vmem:[%s6885_s27 + $0x2d] sm:$0xff] }
  0x6e   : > { %5975 = vmatmul.mubr.msk.f32.gmra.mrb[8].mxu1 %vm9383_vm1, %v236_v35  ;;  %6226 = vmatmul.mubr.msk.f32.gmra.mrb[26].mxu0 %vm9383_vm1, %v7178_v36  ;;  %v3168_v35 = vld [vmem:[%s6885_s27 + $0x35] sm:$0xff] }
  0x6f   : > { %5977 = vmatprep.mubr.msk.f32.mxu1 %vm9383_vm1, %v237_v37  ;;  %6228 = vmatprep.mubr.msk.f32.mxu0 %vm9383_vm1, %v7182_v38  ;;  %v3169_v37 = vld [vmem:[%s6885_s27 + $0x3d] sm:$0xff] }
  0x72   : > { %5978 = vmatmul.mubr.msk.f32.gmra.mrb[10].mxu1 %vm9383_vm1, %v238_v39  ;;  %6229 = vmatmul.mubr.msk.f32.gmra.mrb[28].mxu0 %vm9383_vm1, %v7192_v40  ;;  %v3170_v39 = vld [vmem:[%s6885_s27 + $0x45] sm:$0xff] }
  0x73   : > { %5980 = vmatprep.mubr.msk.f32.mxu1 %vm9383_vm1, %v239_v41  ;;  %6231 = vmatprep.mubr.msk.f32.mxu0 %vm9383_vm1, %v7196_v42  ;;  %v3171_v41 = vld [vmem:[%s6885_s27 + $0x4d] sm:$0xff] }
  0x76   : > { %5981 = vmatmul.mubr.msk.f32.gmra.mrb[12].mxu1 %vm9383_vm1, %v240_v43  ;;  %6232 = vmatmul.mubr.msk.f32.gmra.mrb[30].mxu0 %vm9383_vm1, %v7206_v44  ;;  %v3172_v43 = vld [vmem:[%s6885_s27 + $0x55] sm:$0xff] }
  0x77   : > { %5983 = vmatprep.mubr.msk.f32.mxu1 %vm9383_vm1, %v241_v45  ;;  %6234 = vmatprep.mubr.msk.f32.mxu0 %vm9383_vm1, %v7210_v46  ;;  %v3173_v45 = vld [vmem:[%s6885_s27 + $0x5d] sm:$0xff] }
  0x7a   : > { %5984 = vmatmul.mubr.msk.f32.gmra.mrb[14].mxu1 %vm9383_vm1, %v242_v49  ;;  %6235 = vmatmul.mubr.msk.f32.gmra.mrb[32].mxu0 %vm9383_vm1, %v7220_v51  ;;  %v3174_v49 = vld [vmem:[%s6885_s27 + $0x65] sm:$0xff] }
  0x7b   : > { %5986 = vmatprep.mubr.msk.f32.mxu1 %vm9383_vm1, %v243_v53  ;;  %6237 = vmatprep.mubr.msk.f32.mxu0 %vm9383_vm1, %v7224_v55  ;;  %v3175_v53 = vld [vmem:[%s6885_s27 + $0x6d] sm:$0xff] }
  0x7e   : > { %5987 = vmatmul.mubr.msk.f32.gmra.mrb[16].mxu1 %vm9383_vm1, %v244_v57  ;;  %6238 = vmatmul.mubr.msk.f32.gmra.mrb[34].mxu0 %vm9383_vm1, %v2341_v59  ;;  %v3176_v57 = vld [vmem:[%s6885_s27 + $0x75] sm:$0xff]  ;;  %v7521_v59 = vld [vmem:[%s6885_s27 + $0xea] sm:$0xff] }
  0x7f   : > { %5989 = vmatprep.mubr.msk.f32.mxu1 %vm9383_vm1, %v245_v61  ;;  %6242 = vmatprep.mubr.msk.f32.mxu0 %vm9383_vm1, %v6983_v47  ;;  %v248_v47 = vld [vmem:[%s6885_s27 + $0xa8] sm:$0xff]  ;;  %v3177_v61 = vld [vmem:[%s6885_s27 + $0x7d] sm:$0xff] }
  0x82   : > { %5990 = vmatmul.mubr.msk.f32.gmra.mrb[18].mxu1 %vm9383_vm1, %v246_v63  ;;  %6243 = vmatmul.mubr.msk.f32.vlgmr.msra.gmra.mrb[0].mxu0 %vm9383_vm1, %v6997_v50  ;;  %v251_v50 = vld [vmem:[%s6885_s27 + $0xc0] sm:$0xff]  ;;  %v7525_v63 = vld [vmem:[%s6885_s27 + $0xf2] sm:$0xff] }
  0x83   : > { %6297 = vmatpush3.msk.msra.mxu0 %vm411_vm0, %v6988_v48  ;;  %5992 = vmatprep.mubr.msk.f32.mxu1 %vm9383_vm1, %v247_v2  ;;  %v250_v48 = vld [vmem:[%s6885_s27 + $0xb8] sm:$0xff]  ;;  %v3178_v2 = vld [vmem:[%s6885_s27 + $0x85] sm:$0xff] }
  0x84   : > { %6245 = vmatprep.mubr.msk.f32.mxu0 %vm9383_vm1, %v7003_v52  ;;  %6352 = vmatprep.subr.msk.mxu0 %vm411_vm0, %v7245_v4  ;;  %v252_v52 = vld [vmem:[%s6885_s27 + $0xc8] sm:$0xff] }
  0x86   : > { %5993 = vmatmul.mubr.msk.f32.gmra.mrb[20].mxu1 %vm9383_vm1, %v248_v47  ;;  %6246 = vmatmul.mubr.msk.f32.gmra.mrb[2].mxu0 %vm9383_vm1, %v7015_v54  ;;  %v253_v54 = vld [vmem:[%s6885_s27 + $0xd0] sm:$0xff] }
  0x87   : > { %5995 = vmatprep.mubr.msk.f32.mxu1 %vm9383_vm1, %v249_v6  ;;  %6248 = vmatprep.mubr.msk.f32.mxu0 %vm9383_vm1, %v7019_v56  ;;  %v254_v56 = vld [vmem:[%s6885_s27 + $0xd8] sm:$0xff]  ;;  %v3179_v47 = vld [vmem:[%s6885_s27 + $0x8d] sm:$0xff]  ;;  %v7539_v6 = vld [vmem:[%s6885_s27 + $0x102] sm:$0xff] }
  0x8a   : > { %5996 = vmatmul.mubr.msk.f32.gmra.mrb[22].mxu1 %vm9383_vm1, %v250_v48  ;;  %6249 = vmatmul.mubr.msk.f32.gmra.mrb[4].mxu0 %vm9383_vm1, %v7029_v58  ;;  %v255_v58 = vld [vmem:[%s6885_s27 + $0xe0] sm:$0xff]  ;;  %v3180_v48 = vld [vmem:[%s6885_s27 + $0x95] sm:$0xff] }
  0x8b   : > { %5998 = vmatprep.mubr.msk.f32.mxu1 %vm9383_vm1, %v251_v50  ;;  %6251 = vmatprep.mubr.msk.f32.mxu0 %vm9383_vm1, %v7033_v60  ;;  %v256_v60 = vld [vmem:[%s6885_s27 + $0xe8] sm:$0xff] }
  0x8c   : > { %v7549_v50 = vld [vmem:[%s6885_s27 + $0x10a] sm:$0xff] }
  0x8e   : > { %5999 = vmatmul.mubr.msk.f32.gmra.mrb[24].mxu1 %vm9383_vm1, %v252_v52  ;;  %6252 = vmatmul.mubr.msk.f32.gmra.mrb[6].mxu0 %vm9383_vm1, %v7043_v62  ;;  %v257_v62 = vld [vmem:[%s6885_s27 + $0xf0] sm:$0xff]  ;;  %v3181_v52 = vld [vmem:[%s6885_s27 + $0x9d] sm:$0xff] }
  0x8f   : > { %6001 = vmatprep.mubr.msk.f32.mxu1 %vm9383_vm1, %v253_v54  ;;  %6254 = vmatprep.mubr.msk.f32.mxu0 %vm9383_vm1, %v7047_v0  ;;  %v258_v0 = vld [vmem:[%s6885_s27 + $0xf8] sm:$0xff] }
  0x90   : > { %v7553_v54 = vld [vmem:[%s6885_s27 + $0x112] sm:$0xff] }
  0x92   : > { %6002 = vmatmul.mubr.msk.f32.gmra.mrb[26].mxu1 %vm9383_vm1, %v254_v56  ;;  %6255 = vmatmul.mubr.msk.f32.gmra.mrb[8].mxu0 %vm9383_vm1, %v7057_v3  ;;  %v259_v3 = vld [vmem:[%s6885_s27 + $0x100] sm:$0xff] }
  0x93   : > { %6004 = vmatprep.mubr.msk.f32.mxu1 %vm9383_vm1, %v255_v58  ;;  %6257 = vmatprep.mubr.msk.f32.mxu0 %vm9383_vm1, %v7061_v5  ;;  %v260_v5 = vld [vmem:[%s6885_s27 + $0x108] sm:$0xff]  ;;  %v1051_v58 = vld [vmem:[%s6885_s27 + $0x11a] sm:$0x3f] }
  0x94   : > { %v3182_v56 = vld [vmem:[%s6885_s27 + $0xa5] sm:$0xff] }
  0x96   : > { %6005 = vmatmul.mubr.msk.f32.gmra.mrb[28].mxu1 %vm9383_vm1, %v256_v60  ;;  %6258 = vmatmul.mubr.msk.f32.gmra.mrb[10].mxu0 %vm9383_vm1, %v7071_v7  ;;  %v261_v7 = vld [vmem:[%s6885_s27 + $0x110] sm:$0xff] }
  0x97   : > { %6007 = vmatprep.mubr.msk.f32.mxu1 %vm9383_vm1, %v257_v62  ;;  %6260 = vmatprep.mubr.msk.f32.mxu0 %vm9383_vm1, %v7075_v9  ;;  %v1016_v9 = vld [vmem:[%s6885_s27 + $0x2] sm:$0xff]  ;;  %v3183_v60 = vld [vmem:[%s6885_s27 + $0xad] sm:$0xff]  ;;  %v3184_v62 = vld [vmem:[%s6885_s27 + $0xb5] sm:$0xff] }
  0x9a   : > { %6008 = vmatmul.mubr.msk.f32.gmra.mrb[30].mxu1 %vm9383_vm1, %v258_v0  ;;  %6261 = vmatmul.mubr.msk.f32.gmra.mrb[12].mxu0 %vm9383_vm1, %v7085_v12  ;;  %v7323_v12 = vld [vmem:[%s6885_s27 + $0x12] sm:$0xff]  ;;  %v3185_v0 = vld [vmem:[%s6885_s27 + $0xbd] sm:$0xff] }
  0x9b   : > { %6010 = vmatprep.mubr.msk.f32.mxu1 %vm9383_vm1, %v259_v3  ;;  %6263 = vmatprep.mubr.msk.f32.mxu0 %vm9383_vm1, %v7089_v14  ;;  %v7338_v14 = vld [vmem:[%s6885_s27 + $0x22] sm:$0xff] }
  0x9c   : > { %v3186_v3 = vld [vmem:[%s6885_s27 + $0xc5] sm:$0xff] }
  0x9e   : > { %6011 = vmatmul.mubr.msk.f32.gmra.mrb[32].mxu1 %vm9383_vm1, %v260_v5  ;;  %6264 = vmatmul.mubr.msk.f32.gmra.mrb[14].mxu0 %vm9383_vm1, %v7099_v16  ;;  %v7354_v16 = vld [vmem:[%s6885_s27 + $0x32] sm:$0xff] }
  0x9f   : > { %6013 = vmatprep.mubr.msk.f32.mxu1 %vm9383_vm1, %v261_v7  ;;  %6266 = vmatprep.mubr.msk.f32.mxu0 %vm9383_vm1, %v7103_v18  ;;  %v7368_v18 = vld [vmem:[%s6885_s27 + $0x42] sm:$0xff]  ;;  %v3187_v5 = vld [vmem:[%s6885_s27 + $0xcd] sm:$0xff]  ;;  %v3188_v7 = vld [vmem:[%s6885_s27 + $0xd5] sm:$0xff] }
  0xa2   : > { %6014 = vmatmul.mubr.msk.f32.gmra.mrb[34].mxu1 %vm9383_vm1, %v262_v8  ;;  %6267 = vmatmul.mubr.msk.f32.gmra.mrb[16].mxu0 %vm9383_vm1, %v7113_v20  ;;  %v7382_v20 = vld [vmem:[%s6885_s27 + $0x52] sm:$0xff]  ;;  %v3190_v8 = vld [vmem:[%s6885_s27 + $0xe5] sm:$0xff] }
  0xa3   : > { %6018 = vmatprep.mubr.msk.f32.mxu1 %vm9383_vm1, %v1016_v9  ;;  %6269 = vmatprep.mubr.msk.f32.mxu0 %vm9383_vm1, %v7117_v22  ;;  %v7396_v22 = vld [vmem:[%s6885_s27 + $0x62] sm:$0xff]  ;;  %v3191_v9 = vld [vmem:[%s6885_s27 + $0xed] sm:$0xff] }
  0xa6   : > { %6019 = vmatmul.mubr.msk.f32.vlgmr.msra.gmra.mrb[0].mxu1 %vm9383_vm1, %v1017_v10  ;;  %6270 = vmatmul.mubr.msk.f32.gmra.mrb[18].mxu0 %vm9383_vm1, %v7132_v25  ;;  %v7421_v25 = vld [vmem:[%s6885_s27 + $0x7a] sm:$0xff] }
  0xa7   : > { %6073 = vmatpush3.msk.msra.mxu1 %vm411_vm0, %v7122_v23  ;;  %6021 = vmatprep.mubr.msk.f32.mxu1 %vm9383_vm1, %v7323_v12  ;;  %v7407_v23 = vld [vmem:[%s6885_s27 + $0x6a] sm:$0xff]  ;;  %v3192_v10 = vld [vmem:[%s6885_s27 + $0xf5] sm:$0xff] }
  0xa8   : > { %6272 = vmatprep.mubr.msk.f32.mxu0 %vm9383_vm1, %v7138_v27  ;;  %6408 = vmatprep.subr.msk.mxu1 %vm411_vm0, %v6863_v1  ;;  %v7425_v27 = vld [vmem:[%s6885_s27 + $0x82] sm:$0xff] }
  0xaa   : > { %6022 = vmatmul.mubr.msk.f32.gmra.mrb[2].mxu1 %vm9383_vm1, %v7333_v13  ;;  %6273 = vmatmul.mubr.msk.f32.gmra.mrb[20].mxu0 %vm9383_vm1, %v7150_v28  ;;  %v7435_v28 = vld [vmem:[%s6885_s27 + $0x8a] sm:$0xff] }
  0xab   : > { %6024 = vmatprep.mubr.msk.f32.mxu1 %vm9383_vm1, %v7338_v14  ;;  %6275 = vmatprep.mubr.msk.f32.mxu0 %vm9383_vm1, %v7154_v30  ;;  %v7439_v30 = vld [vmem:[%s6885_s27 + $0x92] sm:$0xff] }
  0xae   : > { %6025 = vmatmul.mubr.msk.f32.gmra.mrb[4].mxu1 %vm9383_vm1, %v7351_v15  ;;  %6276 = vmatmul.mubr.msk.f32.gmra.mrb[22].mxu0 %vm9383_vm1, %v7164_v32  ;;  %v7449_v32 = vld [vmem:[%s6885_s27 + $0x9a] sm:$0xff] }
  0xaf   : > { %6027 = vmatprep.mubr.msk.f32.mxu1 %vm9383_vm1, %v7354_v16  ;;  %6278 = vmatprep.mubr.msk.f32.mxu0 %vm9383_vm1, %v7168_v34  ;;  %v7453_v34 = vld [vmem:[%s6885_s27 + $0xa2] sm:$0xff] }
  0xb2   : > { %6028 = vmatmul.mubr.msk.f32.gmra.mrb[6].mxu1 %vm9383_vm1, %v7365_v17  ;;  %6279 = vmatmul.mubr.msk.f32.gmra.mrb[24].mxu0 %vm9383_vm1, %v7178_v36  ;;  %v7464_v36 = vld [vmem:[%s6885_s27 + $0xaa] sm:$0xff] }
  0xb3   : > { %6030 = vmatprep.mubr.msk.f32.mxu1 %vm9383_vm1, %v7368_v18  ;;  %6281 = vmatprep.mubr.msk.f32.mxu0 %vm9383_vm1, %v7182_v38  ;;  %v7469_v38 = vld [vmem:[%s6885_s27 + $0xb2] sm:$0xff] }
  0xb6   : > { %6031 = vmatmul.mubr.msk.f32.gmra.mrb[8].mxu1 %vm9383_vm1, %v7379_v19  ;;  %6282 = vmatmul.mubr.msk.f32.gmra.mrb[26].mxu0 %vm9383_vm1, %v7192_v40  ;;  %v7479_v40 = vld [vmem:[%s6885_s27 + $0xba] sm:$0xff] }
  0xb7   : > { %6033 = vmatprep.mubr.msk.f32.mxu1 %vm9383_vm1, %v7382_v20  ;;  %6284 = vmatprep.mubr.msk.f32.mxu0 %vm9383_vm1, %v7196_v42  ;;  %v7483_v42 = vld [vmem:[%s6885_s27 + $0xc2] sm:$0xff] }
  0xba   : > { %6034 = vmatmul.mubr.msk.f32.gmra.mrb[10].mxu1 %vm9383_vm1, %v7393_v21  ;;  %6285 = vmatmul.mubr.msk.f32.gmra.mrb[28].mxu0 %vm9383_vm1, %v7206_v44  ;;  %v7493_v44 = vld [vmem:[%s6885_s27 + $0xca] sm:$0xff] }
  0xbb   : > { %6036 = vmatprep.mubr.msk.f32.mxu1 %vm9383_vm1, %v7396_v22  ;;  %6287 = vmatprep.mubr.msk.f32.mxu0 %vm9383_vm1, %v7210_v46  ;;  %v7497_v46 = vld [vmem:[%s6885_s27 + $0xd2] sm:$0xff] }
  0xbe   : > { %6037 = vmatmul.mubr.msk.f32.gmra.mrb[12].mxu1 %vm9383_vm1, %v7407_v23  ;;  %6288 = vmatmul.mubr.msk.f32.gmra.mrb[30].mxu0 %vm9383_vm1, %v7220_v51  ;;  %v7507_v51 = vld [vmem:[%s6885_s27 + $0xda] sm:$0xff] }
  0xbf   : > { %6039 = vmatprep.mubr.msk.f32.mxu1 %vm9383_vm1, %v7410_v24  ;;  %6290 = vmatprep.mubr.msk.f32.mxu0 %vm9383_vm1, %v7224_v55  ;;  %v7511_v55 = vld [vmem:[%s6885_s27 + $0xe2] sm:$0xff] }
  0xc2   : > { %6040 = vmatmul.mubr.msk.f32.gmra.mrb[14].mxu1 %vm9383_vm1, %v7421_v25  ;;  %6291 = vmatmul.mubr.msk.f32.gmra.mrb[32].mxu0 %vm9383_vm1, %v2769_v26  ;;  %v3601_v26 = vld [vmem:[%s6885_s27 + $0x4e] sm:$0xff] }
  0xc3   : > { %6042 = vmatprep.mubr.msk.f32.mxu1 %vm9383_vm1, %v7425_v27  ;;  %6293 = vmatprep.mubr.msk.f32.mxu0 %vm9383_vm1, %v2770_v11  ;;  %v3603_v11 = vld [vmem:[%s6885_s27 + $0x5e] sm:$0xff] }
  0xc6   : > { %6043 = vmatmul.mubr.msk.f32.gmra.mrb[16].mxu1 %vm9383_vm1, %v7435_v28  ;;  %6294 = vmatmul.mubr.msk.f32.gmra.mrb[34].mxu0 %vm9383_vm1, %v2771_v29  ;;  %v3605_v29 = vld [vmem:[%s6885_s27 + $0x6e] sm:$0xff] }
  0xc7   : > { %6045 = vmatprep.mubr.msk.f32.mxu1 %vm9383_vm1, %v7439_v30  ;;  %6298 = vmatprep.mubr.msk.f32.mxu0 %vm9383_vm1, %v3166_v31  ;;  %v3607_v31 = vld [vmem:[%s6885_s27 + $0x7e] sm:$0xff] }
  0xca   : > { %6046 = vmatmul.mubr.msk.f32.gmra.mrb[18].mxu1 %vm9383_vm1, %v7449_v32  ;;  %6299 = vmatmul.mubr.msk.f32.vlgmr.msra.gmra.mrb[0].mxu0 %vm9383_vm1, %v3167_v33  ;;  %v3609_v33 = vld [vmem:[%s6885_s27 + $0x8e] sm:$0xff] }
  0xcb   : > { %6353 = vmatpush3.msk.msra.mxu0 %vm411_vm0, %v7245_v4  ;;  %6048 = vmatprep.mubr.msk.f32.mxu1 %vm9383_vm1, %v7453_v34  ;;  %v7535_v4 = vld [vmem:[%s6885_s27 + $0xfa] sm:$0xff] }
  0xcc   : > { %6301 = vmatprep.mubr.msk.f32.mxu0 %vm9383_vm1, %v3168_v35  ;;  %v1479_v35 = vld [vmem:[%s6885_s27 + $0x11a] sm:$0xff] }
  0xce   : > { %6049 = vmatmul.mubr.msk.f32.gmra.mrb[20].mxu1 %vm9383_vm1, %v7464_v36  ;;  %6302 = vmatmul.mubr.msk.f32.gmra.mrb[2].mxu0 %vm9383_vm1, %v3169_v37  ;;  %v1480_v37 = vld [vmem:[%s6885_s27 + $0x122] sm:$0xff] }
  0xcf   : > { %6051 = vmatprep.mubr.msk.f32.mxu1 %vm9383_vm1, %v7469_v38  ;;  %6304 = vmatprep.mubr.msk.f32.mxu0 %vm9383_vm1, %v3170_v39  ;;  %v1481_v39 = vld [vmem:[%s6885_s27 + $0x12a] sm:$0x3f] }
  0xd2   : > { %6052 = vmatmul.mubr.msk.f32.gmra.mrb[22].mxu1 %vm9383_vm1, %v7479_v40  ;;  %6305 = vmatmul.mubr.msk.f32.gmra.mrb[4].mxu0 %vm9383_vm1, %v3171_v41  ;;  %v1894_v41 = vld [vmem:[%s6885_s27 + $0xa3] sm:$0xff] }
  0xd3   : > { %6054 = vmatprep.mubr.msk.f32.mxu1 %vm9383_vm1, %v7483_v42  ;;  %6307 = vmatprep.mubr.msk.f32.mxu0 %vm9383_vm1, %v3172_v43  ;;  %v1895_v43 = vld [vmem:[%s6885_s27 + $0xab] sm:$0xff] }
  0xd6   : > { %6055 = vmatmul.mubr.msk.f32.gmra.mrb[24].mxu1 %vm9383_vm1, %v7493_v44  ;;  %6308 = vmatmul.mubr.msk.f32.gmra.mrb[6].mxu0 %vm9383_vm1, %v3173_v45  ;;  %v1896_v45 = vld [vmem:[%s6885_s27 + $0xb3] sm:$0xff] }
  0xd7   : > { %6057 = vmatprep.mubr.msk.f32.mxu1 %vm9383_vm1, %v7497_v46  ;;  %6310 = vmatprep.mubr.msk.f32.mxu0 %vm9383_vm1, %v3174_v49  ;;  %v1897_v49 = vld [vmem:[%s6885_s27 + $0xbb] sm:$0xff] }
  0xda   : > { %6058 = vmatmul.mubr.msk.f32.gmra.mrb[26].mxu1 %vm9383_vm1, %v7507_v51  ;;  %6311 = vmatmul.mubr.msk.f32.gmra.mrb[8].mxu0 %vm9383_vm1, %v3175_v53  ;;  %v1898_v53 = vld [vmem:[%s6885_s27 + $0xc3] sm:$0xff] }
  0xdb   : > { %6060 = vmatprep.mubr.msk.f32.mxu1 %vm9383_vm1, %v7511_v55  ;;  %6313 = vmatprep.mubr.msk.f32.mxu0 %vm9383_vm1, %v3176_v57  ;;  %v1899_v57 = vld [vmem:[%s6885_s27 + $0xcb] sm:$0xff] }
  0xde   : > { %6061 = vmatmul.mubr.msk.f32.gmra.mrb[28].mxu1 %vm9383_vm1, %v7521_v59  ;;  %6314 = vmatmul.mubr.msk.f32.gmra.mrb[10].mxu0 %vm9383_vm1, %v3177_v61  ;;  %v1900_v61 = vld [vmem:[%s6885_s27 + $0xd3] sm:$0xff] }
  0xdf   : > { %6063 = vmatprep.mubr.msk.f32.mxu1 %vm9383_vm1, %v7525_v63  ;;  %6316 = vmatprep.mubr.msk.f32.mxu0 %vm9383_vm1, %v3178_v2  ;;  %v1901_v2 = vld [vmem:[%s6885_s27 + $0xdb] sm:$0xff] }
  0xe2   : > { %6064 = vmatmul.mubr.msk.f32.gmra.mrb[30].mxu1 %vm9383_vm1, %v7535_v4  ;;  %6317 = vmatmul.mubr.msk.f32.gmra.mrb[12].mxu0 %vm9383_vm1, %v3179_v47  ;;  %v1902_v47 = vld [vmem:[%s6885_s27 + $0xe3] sm:$0xff] }
  0xe3   : > { %6066 = vmatprep.mubr.msk.f32.mxu1 %vm9383_vm1, %v7539_v6  ;;  %6319 = vmatprep.mubr.msk.f32.mxu0 %vm9383_vm1, %v3180_v48  ;;  %v1903_v48 = vld [vmem:[%s6885_s27 + $0xeb] sm:$0xff] }
  0xe6   : > { %6067 = vmatmul.mubr.msk.f32.gmra.mrb[32].mxu1 %vm9383_vm1, %v7549_v50  ;;  %6320 = vmatmul.mubr.msk.f32.gmra.mrb[14].mxu0 %vm9383_vm1, %v3181_v52  ;;  %v1904_v52 = vld [vmem:[%s6885_s27 + $0xf3] sm:$0xff] }
  0xe7   : > { %6069 = vmatprep.mubr.msk.f32.mxu1 %vm9383_vm1, %v7553_v54  ;;  %6322 = vmatprep.mubr.msk.f32.mxu0 %vm9383_vm1, %v3182_v56  ;;  %v1905_v56 = vld [vmem:[%s6885_s27 + $0xfb] sm:$0xff] }
  0xea   : > { %6070 = vmatmul.mubr.msk.f32.gmra.mrb[34].mxu1 %vm9383_vm1, %v1051_v58  ;;  %6323 = vmatmul.mubr.msk.f32.gmra.mrb[16].mxu0 %vm9383_vm1, %v3183_v60  ;;  %v3625_v58 = vld [vmem:[%s6885_s27 + $0x10e] sm:$0xff]  ;;  %v1906_v60 = vld [vmem:[%s6885_s27 + $0x103] sm:$0xff] }
  0xeb   : > { %6074 = vmatprep.mubr.msk.f32.mxu1 %vm9383_vm1, %v7323_v12  ;;  %6325 = vmatprep.mubr.msk.f32.mxu0 %vm9383_vm1, %v3184_v62  ;;  %v3193_v12 = vld [vmem:[%s6885_s27 + $0xfd] sm:$0xff] }
  0xec   : > { %v3626_v62 = vld [vmem:[%s6885_s27 + $0x116] sm:$0xff] }
  0xee   : > { %6075 = vmatmul.mubr.msk.f32.vlgmr.msra.gmra.mrb[0].mxu1 %vm9383_vm1, %v7333_v13  ;;  %6326 = vmatmul.mubr.msk.f32.gmra.mrb[18].mxu0 %vm9383_vm1, %v3185_v0  ;;  %v3194_v13 = vld [vmem:[%s6885_s27 + $0x105] sm:$0xff] }
  0xef   : > { %6409 = vmatpush3.msk.msra.mxu1 %vm411_vm0, %v6863_v1  ;;  %6077 = vmatprep.mubr.msk.f32.mxu1 %vm9383_vm1, %v7338_v14  ;;  %v3189_v1 = vld [vmem:[%s6885_s27 + $0xdd] sm:$0xff]  ;;  %v3195_v14 = vld [vmem:[%s6885_s27 + $0x10d] sm:$0xff] }
  0xf0   : > { %6328 = vmatprep.mubr.msk.f32.mxu0 %vm9383_vm1, %v3186_v3  ;;  %v1907_v0 = vld [vmem:[%s6885_s27 + $0x10b] sm:$0xff]  ;;  %v3627_v3 = vld [vmem:[%s6885_s27 + $0x11e] sm:$0xff] }
  0xf2   : > { %6078 = vmatmul.mubr.msk.f32.gmra.mrb[2].mxu1 %vm9383_vm1, %v7351_v15  ;;  %6329 = vmatmul.mubr.msk.f32.gmra.mrb[20].mxu0 %vm9383_vm1, %v3187_v5  ;;  %v3196_v15 = vld [vmem:[%s6885_s27 + $0x115] sm:$0xff] }
  0xf3   : > { %6080 = vmatprep.mubr.msk.f32.mxu1 %vm9383_vm1, %v7354_v16  ;;  %6331 = vmatprep.mubr.msk.f32.mxu0 %vm9383_vm1, %v3188_v7  ;;  %v3197_v16 = vld [vmem:[%s6885_s27 + $0x11d] sm:$0xff]  ;;  %v1908_v5 = vld [vmem:[%s6885_s27 + $0x113] sm:$0xff]  ;;  %v3628_v7 = vld [vmem:[%s6885_s27 + $0x126] sm:$0xff] }
  0xf6   : > { %6081 = vmatmul.mubr.msk.f32.gmra.mrb[4].mxu1 %vm9383_vm1, %v7365_v17  ;;  %6332 = vmatmul.mubr.msk.f32.gmra.mrb[22].mxu0 %vm9383_vm1, %v3189_v1  ;;  %v3198_v17 = vld [vmem:[%s6885_s27 + $0x125] sm:$0xff]  ;;  %v1909_v1 = vld [vmem:[%s6885_s27 + $0x11b] sm:$0xff] }
  0xf7   : > { %6083 = vmatprep.mubr.msk.f32.mxu1 %vm9383_vm1, %v7368_v18  ;;  %6334 = vmatprep.mubr.msk.f32.mxu0 %vm9383_vm1, %v3190_v8  ;;  %v3199_v18 = vld [vmem:[%s6885_s27 + $0x12d] sm:$0xff] }
  0xf8   : > { %v3629_v8 = vld [vmem:[%s6885_s27 + $0x12e] sm:$0xff] }
  0xfa   : > { %6084 = vmatmul.mubr.msk.f32.gmra.mrb[6].mxu1 %vm9383_vm1, %v7379_v19  ;;  %6335 = vmatmul.mubr.msk.f32.gmra.mrb[24].mxu0 %vm9383_vm1, %v3191_v9  ;;  %v3200_v19 = vld [vmem:[%s6885_s27 + $0x135] sm:$0xff]  ;;  %v1910_v9 = vld [vmem:[%s6885_s27 + $0x123] sm:$0xff] }
  0xfb   : > { %6086 = vmatprep.mubr.msk.f32.mxu1 %vm9383_vm1, %v7382_v20  ;;  %6337 = vmatprep.mubr.msk.f32.mxu0 %vm9383_vm1, %v3192_v10  ;;  %v3201_v20 = vld [vmem:[%s6885_s27 + $0x13d] sm:$0x3f] }
  0xfc   : > { %v3630_v10 = vld [vmem:[%s6885_s27 + $0x136] sm:$0xff] }
  0xfe   : > { %6087 = vmatmul.mubr.msk.f32.gmra.mrb[8].mxu1 %vm9383_vm1, %v7393_v21  ;;  %6338 = vmatmul.mubr.msk.f32.gmra.mrb[26].mxu0 %vm9383_vm1, %v3193_v12  ;;  %v3596_v21 = vld [vmem:[%s6885_s27 + $0x26] sm:$0xff] }
  0xff   : > { %6089 = vmatprep.mubr.msk.f32.mxu1 %vm9383_vm1, %v7396_v22  ;;  %6340 = vmatprep.mubr.msk.f32.mxu0 %vm9383_vm1, %v3194_v13  ;;  %v3597_v22 = vld [vmem:[%s6885_s27 + $0x2e] sm:$0xff]  ;;  %v3631_v13 = vld [vmem:[%s6885_s27 + $0x13e] sm:$0x3f] }
 0x100   : > { %v1911_v12 = vld [vmem:[%s6885_s27 + $0x12b] sm:$0x3f] }
 0x102   : > { %6090 = vmatmul.mubr.msk.f32.gmra.mrb[10].mxu1 %vm9383_vm1, %v7407_v23  ;;  %6341 = vmatmul.mubr.msk.f32.gmra.mrb[28].mxu0 %vm9383_vm1, %v3195_v14  ;;  %v3598_v23 = vld [vmem:[%s6885_s27 + $0x36] sm:$0xff]  ;;  %v4091_v14 = vlaneseq }
 0x103   : > { %6092 = vmatprep.mubr.msk.f32.mxu1 %vm9383_vm1, %v7410_v24  ;;  %6343 = vmatprep.mubr.msk.f32.mxu0 %vm9383_vm1, %v3196_v15  ;;  %v3599_v24 = vld [vmem:[%s6885_s27 + $0x3e] sm:$0xff] }
 0x104   : > { %v7784_v15 = vshrl.u32 %v4091_v14, 7 }
 0x106   : > { %6093 = vmatmul.mubr.msk.f32.gmra.mrb[12].mxu1 %vm9383_vm1, %v7421_v25  ;;  %6344 = vmatmul.mubr.msk.f32.gmra.mrb[30].mxu0 %vm9383_vm1, %v3197_v16  ;;  %v3600_v25 = vld [vmem:[%s6885_s27 + $0x46] sm:$0xff]  ;;  %v4093_v16 = vadd.s32 8, %v7784_v15 }
 0x107   : > { %6095 = vmatprep.mubr.msk.f32.mxu1 %vm9383_vm1, %v7425_v27  ;;  %6346 = vmatprep.mubr.msk.f32.mxu0 %vm9383_vm1, %v3198_v17  ;;  %v3602_v27 = vld [vmem:[%s6885_s27 + $0x56] sm:$0xff] }
 0x10a   : > { %6096 = vmatmul.mubr.msk.f32.gmra.mrb[14].mxu1 %vm9383_vm1, %v7435_v28  ;;  %6347 = vmatmul.mubr.msk.f32.gmra.mrb[32].mxu0 %vm9383_vm1, %v3199_v18  ;;  %v3604_v28 = vld [vmem:[%s6885_s27 + $0x66] sm:$0xff]  ;;  %v7787_v17 = vmul.u32.u64.low 3817748708, %v4093_v16  ;;  %v7788_v18 = vmul.u32.u64.high 3817748708, %v4093_v16, %v7787_v17 }
 0x10b   : > { %6098 = vmatprep.mubr.msk.f32.mxu1 %vm9383_vm1, %v7439_v30  ;;  %6349 = vmatprep.mubr.msk.f32.mxu0 %vm9383_vm1, %v3200_v19  ;;  %v3606_v30 = vld [vmem:[%s6885_s27 + $0x76] sm:$0xff] }
 0x10e   : > { %6099 = vmatmul.mubr.msk.f32.gmra.mrb[16].mxu1 %vm9383_vm1, %v7449_v32  ;;  %6350 = vmatmul.mubr.msk.f32.gmra.mrb[34].mxu0 %vm9383_vm1, %v3201_v20  ;;  %v3608_v32 = vld [vmem:[%s6885_s27 + $0x86] sm:$0xff]  ;;  %v7791_v19 = vmul.u32.u64.low 3817748708, %v7784_v15  ;;  %v7792_v20 = vmul.u32.u64.high 3817748708, %v7784_v15, %v7791_v19 }
 0x10f   : > { %6101 = vmatprep.mubr.msk.f32.mxu1 %vm9383_vm1, %v7453_v34  ;;  %6354 = vmatprep.mubr.msk.f32.mxu0 %vm9383_vm1, %v3596_v21  ;;  %v3610_v34 = vld [vmem:[%s6885_s27 + $0x96] sm:$0xff]  ;;  %v4095_v21 = vadd.s32 24, %v7784_v15 }
 0x112   : > { %6102 = vmatmul.mubr.msk.f32.gmra.mrb[18].mxu1 %vm9383_vm1, %v7464_v36  ;;  %6355 = vmatmul.mubr.msk.f32.vlgmr.msra.gmra.mrb[0].mxu0 %vm9383_vm1, %v3597_v22  ;;  %v3611_v36 = vld [vmem:[%s6885_s27 + $0x9e] sm:$0xff]  ;;  %v4094_v22 = vadd.s32 16, %v7784_v15 }
 0x113   : > { %6104 = vmatprep.mubr.msk.f32.mxu1 %vm9383_vm1, %v7469_v38  ;;  %6357 = vmatprep.mubr.msk.f32.mxu0 %vm9383_vm1, %v3598_v23  ;;  %v3612_v38 = vld [vmem:[%s6885_s27 + $0xa6] sm:$0xff]  ;;  %v4145_v23 = vshrl.u32 %v7788_v18, 4 }
 0x116   : > { %6105 = vmatmul.mubr.msk.f32.gmra.mrb[20].mxu1 %vm9383_vm1, %v7479_v40  ;;  %6358 = vmatmul.mubr.msk.f32.gmra.mrb[2].mxu0 %vm9383_vm1, %v3599_v24  ;;  %v3613_v40 = vld [vmem:[%s6885_s27 + $0xae] sm:$0xff] }
 0x117   : > { %6107 = vmatprep.mubr.msk.f32.mxu1 %vm9383_vm1, %v7483_v42  ;;  %6360 = vmatprep.mubr.msk.f32.mxu0 %vm9383_vm1, %v3600_v25  ;;  %v3614_v42 = vld [vmem:[%s6885_s27 + $0xb6] sm:$0xff]  ;;  %v7797_v24 = vmul.u32.u64.low 3817748708, %v4095_v21  ;;  %v7798_v25 = vmul.u32.u64.high 3817748708, %v4095_v21, %v7797_v24 }
 0x118   : > { %v7930_v24 = vadd.s32 120, %v7784_v15 }
 0x11a   : > { %6108 = vmatmul.mubr.msk.f32.gmra.mrb[22].mxu1 %vm9383_vm1, %v7493_v44  ;;  %6361 = vmatmul.mubr.msk.f32.gmra.mrb[4].mxu0 %vm9383_vm1, %v3601_v26  ;;  %v3615_v44 = vld [vmem:[%s6885_s27 + $0xbe] sm:$0xff]  ;;  %v4097_v26 = vadd.s32 40, %v7784_v15 }
 0x11b   : > { %6110 = vmatprep.mubr.msk.f32.mxu1 %vm9383_vm1, %v7497_v46  ;;  %6363 = vmatprep.mubr.msk.f32.mxu0 %vm9383_vm1, %v3602_v27  ;;  %v3616_v46 = vld [vmem:[%s6885_s27 + $0xc6] sm:$0xff]  ;;  %v4134_v27 = vshrl.u32 %v7792_v20, 4 }
 0x11e   : > { %6111 = vmatmul.mubr.msk.f32.gmra.mrb[24].mxu1 %vm9383_vm1, %v7507_v51  ;;  %6364 = vmatmul.mubr.msk.f32.gmra.mrb[6].mxu0 %vm9383_vm1, %v3603_v11  ;;  %v3617_v51 = vld [vmem:[%s6885_s27 + $0xce] sm:$0xff] }
 0x11f   : > { %6113 = vmatprep.mubr.msk.f32.mxu1 %vm9383_vm1, %v7511_v55  ;;  %6366 = vmatprep.mubr.msk.f32.mxu0 %vm9383_vm1, %v3604_v28  ;;  %v3618_v55 = vld [vmem:[%s6885_s27 + $0xd6] sm:$0xff]  ;;  %v7802_v11 = vmul.u32.u64.low 3817748708, %v4094_v22  ;;  %v7803_v28 = vmul.u32.u64.high 3817748708, %v4094_v22, %v7802_v11 }
 0x122   : > { %6114 = vmatmul.mubr.msk.f32.gmra.mrb[26].mxu1 %vm9383_vm1, %v7521_v59  ;;  %6367 = vmatmul.mubr.msk.f32.gmra.mrb[8].mxu0 %vm9383_vm1, %v3605_v29  ;;  %v3619_v59 = vld [vmem:[%s6885_s27 + $0xde] sm:$0xff]  ;;  %v7806_v29 = vadd.s32 32, %v7784_v15 }
 0x123   : > { %6116 = vmatprep.mubr.msk.f32.mxu1 %vm9383_vm1, %v7525_v63  ;;  %6369 = vmatprep.mubr.msk.f32.mxu0 %vm9383_vm1, %v3606_v30  ;;  %v3620_v63 = vld [vmem:[%s6885_s27 + $0xe6] sm:$0xff]  ;;  %v4146_v30 = vmul.u32 18, %v4145_v23 }
 0x126   : > { %6117 = vmatmul.mubr.msk.f32.gmra.mrb[28].mxu1 %vm9383_vm1, %v7535_v4  ;;  %6370 = vmatmul.mubr.msk.f32.gmra.mrb[10].mxu0 %vm9383_vm1, %v3607_v31  ;;  %v3621_v4 = vld [vmem:[%s6885_s27 + $0xee] sm:$0xff] }
 0x127   : > { %6119 = vmatprep.mubr.msk.f32.mxu1 %vm9383_vm1, %v7539_v6  ;;  %6372 = vmatprep.mubr.msk.f32.mxu0 %vm9383_vm1, %v3608_v32  ;;  %v3622_v6 = vld [vmem:[%s6885_s27 + $0xf6] sm:$0xff]  ;;  %v7808_v31 = vmul.u32.u64.low 3817748708, %v4097_v26  ;;  %v7809_v32 = vmul.u32.u64.high 3817748708, %v4097_v26, %v7808_v31 }
 0x12a   : > { %6120 = vmatmul.mubr.msk.f32.gmra.mrb[30].mxu1 %vm9383_vm1, %v7549_v50  ;;  %6373 = vmatmul.mubr.msk.f32.gmra.mrb[12].mxu0 %vm9383_vm1, %v3609_v33  ;;  %v3623_v50 = vld [vmem:[%s6885_s27 + $0xfe] sm:$0xff]  ;;  %v7812_v33 = vadd.s32 56, %v7784_v15 }
 0x12b   : > { %6122 = vmatprep.mubr.msk.f32.mxu1 %vm9383_vm1, %v7553_v54  ;;  %6375 = vmatprep.mubr.msk.f32.mxu0 %vm9383_vm1, %v3610_v34  ;;  %v3624_v54 = vld [vmem:[%s6885_s27 + $0x106] sm:$0xff]  ;;  %v4135_v34 = vmul.u32 18, %v4134_v27 }
 0x12e   : > { %6123 = vmatmul.mubr.msk.f32.gmra.mrb[32].mxu1 %vm9383_vm1, %v1479_v35  ;;  %6376 = vmatmul.mubr.msk.f32.gmra.mrb[14].mxu0 %vm9383_vm1, %v3611_v36  ;;  %v7815_v35 = vadd.s32 48, %v7784_v15 }
 0x12f   : > { %6125 = vmatprep.mubr.msk.f32.mxu1 %vm9383_vm1, %v1480_v37  ;;  %6378 = vmatprep.mubr.msk.f32.mxu0 %vm9383_vm1, %v3612_v38  ;;  %v7818_v36 = vmul.u32.u64.low 3817748708, %v7806_v29  ;;  %v7819_v37 = vmul.u32.u64.high 3817748708, %v7806_v29, %v7818_v36  ;;  %v7822_v38 = vadd.s32 72, %v7784_v15 }
 0x132   : > { %6126 = vmatmul.mubr.msk.f32.gmra.mrb[34].mxu1 %vm9383_vm1, %v1481_v39  ;;  %6379 = vmatmul.mubr.msk.f32.gmra.mrb[16].mxu0 %vm9383_vm1, %v3613_v40  ;;  %v7824_v39 = vsub.s32 %v4093_v16, %v4146_v30  ;;  %v4167_v40 = vshrl.u32 %v7798_v25, 4 }
 0x133   : > { %6157 = vmatprep.mubr.msk.f32.mxu1 %vm9383_vm1, %v1894_v41  ;;  %6381 = vmatprep.mubr.msk.f32.mxu0 %vm9383_vm1, %v3614_v42  ;;  %v7828_v41 = vmul.u32.u64.low 3817748708, %v7812_v33  ;;  %v7829_v42 = vmul.u32.u64.high 3817748708, %v7812_v33, %v7828_v41 }
 0x134   : > { %vm4525_vm2 = vcmp.ne.s32.totalorder %v7824_v39, 0  ;;  %vm4561_vm3 = vcmp.lt.s32.totalorder %v7824_v39, 0 }
 0x135   : > { %vm7885_vm6 = vmand %vm4561_vm3, %vm4525_vm2 }
 0x136   : > { %6158 = vmatmul.mubr.msk.f32.vlgmr.msra.gmra.mrb[18].mxu1 %vm9383_vm1, %v1895_v43  ;;  %6382 = vmatmul.mubr.msk.f32.gmra.mrb[18].mxu0 %vm9383_vm1, %v3615_v44  ;;  %v7832_v43 = vsub.s32 %v7784_v15, %v4135_v34  ;;  %v4156_v44 = vshrl.u32 %v7803_v28, 4 }
 0x137   : > { %6160 = vmatprep.mubr.msk.f32.mxu1 %vm9383_vm1, %v1896_v45  ;;  %6384 = vmatprep.mubr.msk.f32.mxu0 %vm9383_vm1, %v3616_v46  ;;  %v7836_v45 = vmul.u32.u64.low 3817748708, %v7815_v35  ;;  %v7837_v46 = vmul.u32.u64.high 3817748708, %v7815_v35, %v7836_v45 }
 0x138   : > { %vm4524_vm4 = vcmp.ne.s32.totalorder %v7832_v43, 0  ;;  %vm4560_vm5 = vcmp.lt.s32.totalorder %v7832_v43, 0 }
 0x139   : > { %vm7901_vm7 = vmand %vm4560_vm5, %vm4524_vm4 }
 0x13a   : > { %6161 = vmatmul.mubr.msk.f32.gmra.mrb[20].mxu1 %vm9383_vm1, %v1897_v49  ;;  %6385 = vmatmul.mubr.msk.f32.gmra.mrb[20].mxu0 %vm9383_vm1, %v3617_v51  ;;  %v7840_v49 = vadd.s32 64, %v7784_v15 }
 0x13b   : > { %6163 = vmatprep.mubr.msk.f32.mxu1 %vm9383_vm1, %v1898_v53  ;;  %6387 = vmatprep.mubr.msk.f32.mxu0 %vm9383_vm1, %v3618_v55  ;;  %v7843_v51 = vmul.u32.u64.low 3817748708, %v7822_v38  ;;  %v7844_v53 = vmul.u32.u64.high 3817748708, %v7822_v38, %v7843_v51  ;;  %v7847_v55 = vadd.s32 88, %v7784_v15 }
 0x13e   : > { %6164 = vmatmul.mubr.msk.f32.gmra.mrb[22].mxu1 %vm9383_vm1, %v1899_v57  ;;  %6388 = vmatmul.mubr.msk.f32.gmra.mrb[22].mxu0 %vm9383_vm1, %v3619_v59  ;;  %v4168_v57 = vmul.u32 18, %v4167_v40  ;;  %v4189_v59 = vshrl.u32 %v7809_v32, 4 }
 0x13f   : > { %6166 = vmatprep.mubr.msk.f32.mxu1 %vm9383_vm1, %v1900_v61  ;;  %6390 = vmatprep.mubr.msk.f32.mxu0 %vm9383_vm1, %v3620_v63  ;;  %v7853_v61 = vadd.s32 18, %v7824_v39  ;;  %v7857_v63 = vadd.s32 80, %v7784_v15 }
 0x142   : > { %6167 = vmatmul.mubr.msk.f32.gmra.mrb[24].mxu1 %vm9383_vm1, %v1901_v2  ;;  %6391 = vmatmul.mubr.msk.f32.gmra.mrb[24].mxu0 %vm9383_vm1, %v3621_v4  ;;  %v7860_v2 = vadd.s32 104, %v7784_v15  ;;  %v4157_v4 = vmul.u32 18, %v4156_v44 }
 0x143   : > { %6169 = vmatprep.mubr.msk.f32.mxu1 %vm9383_vm1, %v1902_v47  ;;  %6393 = vmatprep.mubr.msk.f32.mxu0 %vm9383_vm1, %v3622_v6  ;;  %v7864_v47 = vmul.u32.u64.low 3817748708, %v7840_v49  ;;  %v7865_v6 = vmul.u32.u64.high 3817748708, %v7840_v49, %v7864_v47 }
 0x145   : > { %v4222_v23 = vshrl.u32 %v7865_v6, 4 }
 0x146   : > { %6170 = vmatmul.mubr.msk.f32.gmra.mrb[26].mxu1 %vm9383_vm1, %v1903_v48  ;;  %6394 = vmatmul.mubr.msk.f32.gmra.mrb[26].mxu0 %vm9383_vm1, %v3623_v50  ;;  %v4178_v48 = vshrl.u32 %v7819_v37, 4  ;;  %v7955_v36 = vmul.u32.u64.low 3817748708, %v7930_v24  ;;  %v7956_v37 = vmul.u32.u64.high 3817748708, %v7930_v24, %v7955_v36 }
 0x147   : > { %6172 = vmatprep.mubr.msk.f32.mxu1 %vm9383_vm1, %v1904_v52  ;;  %6396 = vmatprep.mubr.msk.f32.mxu0 %vm9383_vm1, %v3624_v54  ;;  %v7869_v50 = vmul.u32.u64.low 3817748708, %v7847_v55  ;;  %v7870_v52 = vmul.u32.u64.high 3817748708, %v7847_v55, %v7869_v50  ;;  %v7873_v54 = vadd.s32 96, %v7784_v15  ;;  %v4223_v34 = vmul.u32 18, %v4222_v23 }
 0x149   : > { %v7910_v14 = vmul.u32.u64.low 3817748708, %v7873_v54  ;;  %v7911_v16 = vmul.u32.u64.high 3817748708, %v7873_v54, %v7910_v14  ;;  %v4255_v27 = vshrl.u32 %v7870_v52, 4  ;;  %v7981_v51 = vsub.s32 %v7840_v49, %v4223_v34 }
 0x14a   : > { %6173 = vmatmul.mubr.msk.f32.gmra.mrb[28].mxu1 %vm9383_vm1, %v1905_v56  ;;  %6397 = vmatmul.mubr.msk.f32.gmra.mrb[28].mxu0 %vm9383_vm1, %v3625_v58  ;;  %v7876_v56 = vadd.s32 18, %v7832_v43  ;;  %v7878_v58 = vsub.s32 %v4095_v21, %v4168_v57 }
 0x14b   : > { %6175 = vmatprep.mubr.msk.f32.mxu1 %vm9383_vm1, %v1906_v60  ;;  %6399 = vmatprep.mubr.msk.f32.mxu0 %vm9383_vm1, %v3626_v62  ;;  %v4190_v60 = vmul.u32 18, %v4189_v59  ;;  %v4211_v62 = vshrl.u32 %v7829_v42, 4  ;;  %v4256_v40 = vmul.u32 18, %v4255_v27  ;;  %v4266_v41 = vshrl.u32 %v7911_v16, 4  ;;  %9472 = vst [vmem:[#allocation6_spill] sm:$0xff] %v7981_v51 }
 0x14c   : > { %vm4527_vm8 = vcmp.ne.s32.totalorder %v7878_v58, 0  ;;  %vm4563_vm9 = vcmp.lt.s32.totalorder %v7878_v58, 0  ;;  %v7926_v21 = vadd.s32 18, %v7878_v58 }
 0x14d   : > { %v7913_v17 = vsub.s32 %v4097_v26, %v4190_v60  ;;  %v4212_v18 = vmul.u32 18, %v4211_v62  ;;  %vm7987_vm5 = vmand %vm4563_vm9, %vm4527_vm8  ;;  %v7996_v59 = vsub.s32 %v7847_v55, %v4256_v40  ;;  %v9507_v40 = vmov 0 }
 0x14e   : > { %6176 = vmatmul.mubr.msk.f32.gmra.mrb[30].mxu1 %vm9383_vm1, %v1907_v0  ;;  %6400 = vmatmul.mubr.msk.f32.gmra.mrb[30].mxu0 %vm9383_vm1, %v3627_v3  ;;  %v9464_v0 = vmov 0  ;;  %v8682_v55 = vadd.s32 272, %v7784_v15 }
 0x14f   : > { %6178 = vmatprep.mubr.msk.f32.mxu1 %vm9383_vm1, %v1908_v5  ;;  %6402 = vmatprep.mubr.msk.f32.mxu0 %vm9383_vm1, %v3628_v7  ;;  %v9465_v0 = vsel %vm7885_vm6, 4294967295, %v9464_v0  ;;  %v7890_v3 = vmul.u32.u64.low 3817748708, %v7857_v63  ;;  %v7891_v5 = vmul.u32.u64.high 3817748708, %v7857_v63, %v7890_v3  ;;  %vm4529_vm12 = vcmp.ne.s32.totalorder %v7913_v17, 0  ;;  %9476 = vst [vmem:[#allocation8_spill] sm:$0xff] %v7996_v59 }
 0x150   : > { %v7943_v28 = vsub.s32 %v7812_v33, %v4212_v18  ;;  %vm4565_vm13 = vcmp.lt.s32.totalorder %v7913_v17, 0  ;;  %v7947_v30 = vadd.s32 18, %v7913_v17  ;;  %v8089_v18 = vadd.s32 18, %v7996_v59 }
 0x151   : > { %vm8018_vm9 = vmand %vm4565_vm13, %vm4529_vm12  ;;  %vm9500_vm6 = vcmp.lt.s32.totalorder %v7981_v51, 0 }
 0x152   : > { %6179 = vmatmul.mubr.msk.f32.gmra.mrb[32].mxu1 %vm9383_vm1, %v1909_v1  ;;  %6403 = vmatmul.mubr.msk.f32.gmra.mrb[32].mxu0 %vm9383_vm1, %v3629_v8  ;;  %v7894_v7 = vmul.u32.u64.low 3817748708, %v7860_v2  ;;  %v7895_v1 = vmul.u32.u64.high 3817748708, %v7860_v2, %v7894_v7  ;;  %v9466_v8 = vmov 0  ;;  %9468 = vst [vmem:[#allocation2_spill] sm:$0xff] %v7943_v28  ;;  %vm4531_vm0 = vcmp.ne.s32.totalorder %v7943_v28, 0  ;;  %9498 = vst [vmem:[#allocation17_spill] sm:$0xff] %v8089_v18 }
 0x153   : > { %6181 = vmatprep.mubr.msk.f32.mxu1 %vm9383_vm1, %v1910_v9  ;;  %6405 = vmatprep.mubr.msk.f32.mxu0 %vm9383_vm1, %v3630_v10  ;;  %v9467_v8 = vsel %vm7901_vm7, 4294967295, %v9466_v8  ;;  %v7905_v9 = vsub.s32 %v4094_v22, %v4157_v4  ;;  %v4200_v10 = vshrl.u32 %v7837_v46, 4  ;;  %vm4567_vm2 = vcmp.lt.s32.totalorder %v7943_v28, 0 }
 0x154   : > { %v4277_v31 = vshrl.u32 %v7895_v1, 4  ;;  %v7976_v46 = vadd.s32 18, %v7943_v28  ;;  %v4267_v4 = vmul.u32 18, %v4266_v41  ;;  %vm8052_vm12 = vmand %vm4567_vm2, %vm4531_vm0  ;;  %v9486_v7 = vmov 0 }
 0x155   : > { %v4201_v22 = vmul.u32 18, %v4200_v10  ;;  %vm4526_vm10 = vcmp.ne.s32.totalorder %v7905_v9, 0  ;;  %vm4562_vm11 = vcmp.lt.s32.totalorder %v7905_v9, 0  ;;  %v7939_v11 = vadd.s32 18, %v7905_v9 }
 0x156   : > { %6182 = vmatmul.mubr.msk.f32.gmra.mrb[34].mxu1 %vm9383_vm1, %v1911_v12  ;;  %6406 = vmatmul.mubr.msk.f32.gmra.mrb[34].mxu0 %vm9383_vm1, %v3631_v13  ;;  %v4179_v12 = vmul.u32 18, %v4178_v48  ;;  %v4233_v13 = vshrl.u32 %v7844_v53, 4  ;;  %v4278_v45 = vmul.u32 18, %v4277_v31  ;;  %9471 = vst [vmem:[#allocation5_spill] sm:$0xff] %v7976_v46  ;;  %vm8002_vm4 = vmand %vm4562_vm11, %vm4526_vm10  ;;  %v8012_v48 = vadd.s32 128, %v7784_v15 }
 0x157   : > { %v7952_v32 = vsub.s32 %v7815_v35, %v4201_v22  ;;  %v7969_v35 = vadd.s32 112, %v7784_v15  ;;  %v9487_v7 = vsel %vm8052_vm12, 4294967295, %v9486_v7  ;;  %v8058_v1 = vadd.s32 18, %v7981_v51 }
 0x158   : > { %v7934_v25 = vsub.s32 %v7806_v29, %v4179_v12  ;;  %v4234_v26 = vmul.u32 18, %v4233_v13  ;;  %v4244_v29 = vshrl.u32 %v7891_v5, 4  ;;  %v8026_v52 = vsub.s32 %v7860_v2, %v4278_v45  ;;  %9488 = vst [vmem:[#allocation12_spill] sm:$0xff] %v9487_v7 }
 0x159   : > { %9469 = vst [vmem:[#allocation3_spill] sm:$0xff] %v7952_v32  ;;  %vm4530_vm3 = vcmp.ne.s32.totalorder %v7952_v32, 0  ;;  %v7992_v57 = vadd.s32 18, %v7952_v32  ;;  %v8008_v47 = vmul.u32.u64.low 3817748708, %v7969_v35  ;;  %v8009_v6 = vmul.u32.u64.high 3817748708, %v7969_v35, %v8008_v47  ;;  %9489 = vst [vmem:[#allocation13_spill] sm:$0xff] %v8058_v1 }
 0x15a   : > { %vm4528_vm14 = vcmp.ne.s32.totalorder %v7934_v25, 0  ;;  %v7960_v33 = vsub.s32 %v7822_v38, %v4234_v26  ;;  %vm4564_vm15 = vcmp.lt.s32.totalorder %v7934_v25, 0  ;;  %v7965_v42 = vadd.s32 18, %v7934_v25  ;;  %9482 = vst [vmem:[#allocation10_spill] sm:$0xff] %v8026_v52 }
 0x15b   : > { %v4245_v44 = vmul.u32 18, %v4244_v29  ;;  %v7973_v38 = vadd.s32 136, %v7784_v15  ;;  %9475 = vst [vmem:[#allocation7_spill] sm:$0xff] %v7992_v57  ;;  %vm8036_vm10 = vmand %vm4564_vm15, %vm4528_vm14  ;;  %v8046_v2 = vadd.s32 152, %v7784_v15  ;;  %v8061_v10 = vsub.s32 %v7873_v54, %v4267_v4 }
 0x15c   : > { %9470 = vst [vmem:[#allocation4_spill] sm:$0xff] %v7960_v33  ;;  %vm4533_vm1 = vcmp.ne.s32.totalorder %v7960_v33, 0  ;;  %vm4569_vm8 = vcmp.lt.s32.totalorder %v7960_v33, 0  ;;  %v8041_v5 = vadd.s32 18, %v7960_v33  ;;  %v8064_v12 = vadd.s32 144, %v7784_v15 }
 0x15d   : > { %v8023_v50 = vsub.s32 %v7857_v63, %v4245_v44  ;;  %v8029_v60 = vmul.u32.u64.low 3817748708, %v7973_v38  ;;  %v8030_v62 = vmul.u32.u64.high 3817748708, %v7973_v38, %v8029_v60  ;;  %v4299_v63 = vshrl.u32 %v7956_v37, 4  ;;  %9490 = vst [vmem:[#allocation14_spill] sm:$0xff] %v8061_v10  ;;  %vm8084_vm13 = vmand %vm4569_vm8, %vm4533_vm1 }
 0x15e   : > { %9485 = vst [vmem:[#allocation11_spill] sm:$0xff] %v8041_v5  ;;  %vm9491_vm14 = vcmp.lt.s32.totalorder %v7952_v32, 0  ;;  %v9492_v13 = vmov 0  ;;  %vm4535_vm0 = vcmp.ne.s32.totalorder %v7996_v59, 0  ;;  %vm4571_vm2 = vcmp.lt.s32.totalorder %v7996_v59, 0 }
 0x15f   : > { %9481 = vst [vmem:[#allocation9_spill] sm:$0xff] %v8023_v50  ;;  %vm8070_vm15 = vmand %vm9491_vm14, %vm4530_vm3  ;;  %v8077_v14 = vmul.u32.u64.low 3817748708, %v8012_v48  ;;  %v8078_v16 = vmul.u32.u64.high 3817748708, %v8012_v48, %v8077_v14  ;;  %v9495_v54 = vmov 0  ;;  %vm4534_vm3 = vcmp.ne.s32.totalorder %v8023_v50, 0 }
 0x160   : > { %v9493_v13 = vsel %vm8070_vm15, 4294967295, %v9492_v13  ;;  %v9496_v54 = vsel %vm8084_vm13, 4294967295, %v9495_v54  ;;  %vm4570_vm14 = vcmp.lt.s32.totalorder %v8023_v50, 0  ;;  %vm9499_vm7 = vcmp.ne.s32.totalorder %v7981_v51, 0  ;;  %vm8107_vm8 = vmand %vm4571_vm2, %vm4535_vm0 }
 0x161   : > { %9494 = vst [vmem:[#allocation15_spill] sm:$0xff] %v9493_v13  ;;  %9497 = vst [vmem:[#allocation16_spill] sm:$0xff] %v9496_v54  ;;  %v9501_v22 = vmov 0  ;;  %vm4573_vm1 = vcmp.lt.s32.totalorder %v8026_v52, 0  ;;  %v4300_v23 = vmul.u32 18, %v4299_v63  ;;  %v9504_v29 = vmov 0 }
 0x162   : > { %vm8098_vm15 = vmand %vm9500_vm6, %vm9499_vm7  ;;  %v8104_v26 = vmul.u32.u64.low 3817748708, %v8046_v2  ;;  %v8105_v27 = vmul.u32.u64.high 3817748708, %v8046_v2, %v8104_v26  ;;  %v9505_v29 = vsel %vm8107_vm8, 4294967295, %v9504_v29  ;;  %vm4536_vm11 = vcmp.ne.s32.totalorder %v8061_v10, 0 }
 0x163   : > { %v9502_v22 = vsel %vm8098_vm15, 4294967295, %v9501_v22  ;;  %9506 = vst [vmem:[#allocation19_spill] sm:$0xff] %v9505_v29  ;;  %vm4572_vm13 = vcmp.lt.s32.totalorder %v8061_v10, 0  ;;  %v8114_v31 = vmul.u32.u64.low 3817748708, %v8064_v12  ;;  %v8115_v34 = vmul.u32.u64.high 3817748708, %v8064_v12, %v8114_v31  ;;  %vm8125_vm6 = vmand %vm4570_vm14, %vm4534_vm3 }
 0x164   : > { %9503 = vst [vmem:[#allocation18_spill] sm:$0xff] %v9502_v22  ;;  %v9508_v40 = vsel %vm8125_vm6, 4294967295, %v9507_v40  ;;  %v8130_v41 = vadd.s32 18, %v8023_v50  ;;  %v4288_v44 = vshrl.u32 %v8009_v6, 4  ;;  %vm9511_vm7 = vcmp.ne.s32.totalorder %v8026_v52, 0  ;;  %vm8166_vm3 = vmand %vm4572_vm13, %vm4536_vm11 }
 0x165   : > { %9509 = vst [vmem:[#allocation20_spill] sm:$0xff] %v9508_v40  ;;  %vm8139_vm0 = vmand %vm4573_vm1, %vm9511_vm7  ;;  %v9512_v4 = vmov 0  ;;  %v8144_v47 = vadd.s32 18, %v8026_v52  ;;  %v8147_v60 = vadd.s32 18, %v8061_v10  ;;  %v4321_v63 = vshrl.u32 %v8030_v62, 4 }
 0x166   : > { %9510 = vst [vmem:[#allocation21_spill] sm:$0xff] %v8130_v41  ;;  %v9513_v4 = vsel %vm8139_vm0, 4294967295, %v9512_v4  ;;  %v9518_v62 = vmov 0  ;;  %v8171_v31 = vadd.s32 168, %v7784_v15  ;;  %v8186_v45 = vsub.s32 %v7930_v24, %v4300_v23 }
 0x167   : > { %9514 = vst [vmem:[#allocation22_spill] sm:$0xff] %v9513_v4  ;;  %9515 = vst [vmem:[#allocation23_spill] sm:$0xff] %v8144_v47  ;;  %v9519_v62 = vsel %vm8166_vm3, 4294967295, %v9518_v62  ;;  %v4289_v36 = vmul.u32 18, %v4288_v44  ;;  %v4310_v20 = vshrl.u32 %v8078_v16, 4  ;;  %v8196_v26 = vadd.s32 160, %v7784_v15 }
 0x168   : > { %9516 = vst [vmem:[#allocation24_spill] sm:$0xff] %v8147_v60  ;;  %9520 = vst [vmem:[#allocation25_spill] sm:$0xff] %v9519_v62  ;;  %v4322_v6 = vmul.u32 18, %v4321_v63  ;;  %v8209_v44 = vadd.s32 184, %v7784_v15  ;;  %v4343_v16 = vshrl.u32 %v8105_v27, 4  ;;  %v8217_v41 = vadd.s32 176, %v7784_v15 }
 0x169   : > { %9522 = vst [vmem:[#allocation26_spill] sm:$0xff] %v8186_v45  ;;  %v8213_v14 = vmul.u32.u64.low 3817748708, %v8171_v31  ;;  %v8214_v50 = vmul.u32.u64.high 3817748708, %v8171_v31, %v8213_v14  ;;  %vm4539_vm11 = vcmp.ne.s32.totalorder %v8186_v45, 0  ;;  %v8222_v24 = vadd.s32 18, %v8186_v45 }
 0x16a   : > { %v4332_v63 = vshrl.u32 %v8115_v34, 4  ;;  %v8226_v23 = vadd.s32 200, %v7784_v15  ;;  %v8231_v10 = vsub.s32 %v7969_v35, %v4289_v36  ;;  %v4311_v14 = vmul.u32 18, %v4310_v20 }
 0x16b   : > { %9523 = vst [vmem:[#allocation27_spill] sm:$0xff] %v8222_v24  ;;  %v8234_v60 = vmul.u32.u64.low 3817748708, %v8196_v26  ;;  %v8235_v62 = vmul.u32.u64.high 3817748708, %v8196_v26, %v8234_v60  ;;  %v8240_v47 = vsub.s32 %v7973_v38, %v4322_v6  ;;  %v8247_v40 = vadd.s32 192, %v7784_v15 }
 0x16c   : > { %v8243_v34 = vmul.u32.u64.low 3817748708, %v8209_v44  ;;  %v8244_v4 = vmul.u32.u64.high 3817748708, %v8209_v44, %v8243_v34  ;;  %v4344_v59 = vmul.u32 18, %v4343_v16  ;;  %v8254_v36 = vadd.s32 216, %v7784_v15 }
 0x16d   : > { %v8250_v35 = vmul.u32.u64.low 3817748708, %v8217_v41  ;;  %v8251_v20 = vmul.u32.u64.high 3817748708, %v8217_v41, %v8250_v35  ;;  %v4333_v60 = vmul.u32 18, %v4332_v63  ;;  %v8261_v6 = vadd.s32 208, %v7784_v15 }
 0x16e   : > { %v8257_v18 = vmul.u32.u64.low 3817748708, %v8226_v23  ;;  %v8258_v38 = vmul.u32.u64.high 3817748708, %v8226_v23, %v8257_v18  ;;  %v8268_v16 = vadd.s32 18, %v8231_v10  ;;  %v8271_v35 = vsub.s32 %v8012_v48, %v4311_v14 }
 0x16f   : > { %v8277_v18 = vmul.u32.u64.low 3817748708, %v8247_v40  ;;  %v8278_v29 = vmul.u32.u64.high 3817748708, %v8247_v40, %v8277_v18  ;;  %v8281_v51 = vadd.s32 232, %v7784_v15  ;;  %v8284_v1 = vsub.s32 %v8046_v2, %v4344_v59 }
 0x170   : > { %v4365_v22 = vshrl.u32 %v8214_v50, 4  ;;  %v8293_v14 = vsub.s32 %v8064_v12, %v4333_v60  ;;  %v8302_v59 = vadd.s32 18, %v8240_v47  ;;  %v4354_v50 = vshrl.u32 %v8235_v62, 4 }
 0x171   : > { %v8307_v2 = vadd.s32 224, %v7784_v15  ;;  %v4387_v12 = vshrl.u32 %v8244_v4, 4  ;;  %vm9531_vm1 = vcmp.lt.s32.totalorder %v8186_v45, 0  ;;  %v8326_v62 = vadd.s32 18, %v8271_v35 }
 0x172   : > { %9528 = vst [vmem:[#allocation32_spill] sm:$0xff] %v8293_v14  ;;  %vm8321_vm13 = vmand %vm9531_vm1, %vm4539_vm11  ;;  %v4376_v4 = vshrl.u32 %v8251_v20, 4  ;;  %vm9535_vm7 = vcmp.ne.s32.totalorder %v8231_v10, 0  ;;  %vm9536_vm0 = vcmp.lt.s32.totalorder %v8231_v10, 0  ;;  %vm4579_vm11 = vcmp.lt.s32.totalorder %v8284_v1, 0 }
 0x173   : > { %vm8334_vm6 = vmand %vm9536_vm0, %vm9535_vm7  ;;  %v4409_v5 = vshrl.u32 %v8258_v38, 4  ;;  %v8342_v54 = vadd.s32 248, %v7784_v15  ;;  %vm9540_vm3 = vcmp.ne.s32.totalorder %v8240_v47, 0  ;;  %vm9541_vm8 = vcmp.lt.s32.totalorder %v8240_v47, 0 }
 0x174   : > { %vm8350_vm15 = vmand %vm9541_vm8, %vm9540_vm3  ;;  %v9542_v20 = vmov 0  ;;  %v4355_v32 = vmul.u32 18, %v4354_v50  ;;  %v8356_v57 = vmul.u32.u64.low 3817748708, %v8307_v2  ;;  %v8357_v13 = vmul.u32.u64.high 3817748708, %v8307_v2, %v8356_v57 }
 0x175   : > { %v9543_v20 = vsel %vm8350_vm15, 4294967295, %v9542_v20  ;;  %vm9546_vm7 = vcmp.ne.s32.totalorder %v8271_v35, 0  ;;  %vm9547_vm8 = vcmp.lt.s32.totalorder %v8271_v35, 0  ;;  %v8374_v50 = vadd.s32 18, %v8284_v1 }
 0x176   : > { %9544 = vst [vmem:[#allocation37_spill] sm:$0xff] %v9543_v20  ;;  %vm8369_vm3 = vmand %vm9547_vm8, %vm9546_vm7  ;;  %v4398_v57 = vshrl.u32 %v8278_v29, 4  ;;  %vm9550_vm0 = vcmp.ne.s32.totalorder %v8284_v1, 0  ;;  %v8386_v45 = vadd.s32 18, %v8293_v14  ;;  %vm9555_vm7 = vcmp.ne.s32.totalorder %v8293_v14, 0 }
 0x177   : > { %vm8381_vm1 = vmand %vm4579_vm11, %vm9550_vm0  ;;  %vm9556_vm8 = vcmp.lt.s32.totalorder %v8293_v14, 0  ;;  %v9557_v29 = vmov 0  ;;  %v8402_v46 = vmul.u32.u64.low 3817748708, %v8342_v54  ;;  %v8403_v7 = vmul.u32.u64.high 3817748708, %v8342_v54, %v8402_v46 }
 0x178   : > { %9553 = vst [vmem:[#allocation39_spill] sm:$0xff] %v8386_v45  ;;  %v4399_v20 = vmul.u32 18, %v4398_v57  ;;  %v4442_v57 = vshrl.u32 %v8357_v13, 4  ;;  %v9564_v13 = vmov 0 }
 0x1c1   : > { %v8188_v37 = vpop.f32.mrb[0].mxu1 }
 0x1c2   : > { %v8198_v19 = vpop.f32.mrb[1].mxu1 }
 0x1c5   : > { %v8228_v27 = vpop.f32.mrb[2].mxu1 }
 0x1c6   : > { %9524 = vst [vmem:[#allocation28_spill] sm:$0xff] %v8228_v27  ;;  %v8237_v52 = vpop.f32.mrb[3].mxu1  ;;  %v4388_v27 = vmul.u32 18, %v4387_v12  ;;  %v4410_v12 = vmul.u32 18, %v4409_v5 }
 0x1c7   : > { %9525 = vst [vmem:[#allocation29_spill] sm:$0xff] %v8237_v52  ;;  %v9548_v52 = vmov 0 }
 0x1c8   : > { %v9549_v52 = vsel %vm8369_vm3, 4294967295, %v9548_v52 }
 0x1c9   : > { %v8263_v34 = vpop.f32.mrb[4].mxu1 }
 0x1ca   : > { %9526 = vst [vmem:[#allocation30_spill] sm:$0xff] %v8263_v34  ;;  %v8273_v63 = vpop.f32.mrb[5].mxu1  ;;  %v8288_v34 = vmul.u32.u64.low 3817748708, %v8254_v36  ;;  %v8289_v48 = vmul.u32.u64.high 3817748708, %v8254_v36, %v8288_v34 }
 0x1cb   : > { %9527 = vst [vmem:[#allocation31_spill] sm:$0xff] %v8273_v63  ;;  %v8296_v63 = vmul.u32.u64.low 3817748708, %v8261_v6  ;;  %v8297_v18 = vmul.u32.u64.high 3817748708, %v8261_v6, %v8296_v63 }
 0x1cc   : > { %v8314_v60 = vmul.u32.u64.low 3817748708, %v8281_v51  ;;  %v8315_v63 = vmul.u32.u64.high 3817748708, %v8281_v51, %v8314_v60 }
 0x1cd   : > { %v8299_v33 = vpop.f32.mrb[6].mxu1  ;;  %v9537_v60 = vmov 0  ;;  %v4420_v28 = vshrl.u32 %v8297_v18, 4  ;;  %v8420_v18 = vsub.s32 %v8196_v26, %v4355_v32 }
 0x1ce   : > { %9529 = vst [vmem:[#allocation33_spill] sm:$0xff] %v8299_v33  ;;  %v8309_v34 = vpop.f32.mrb[7].mxu1  ;;  %v9532_v33 = vmov 0  ;;  %v9538_v60 = vsel %vm8334_vm6, 4294967295, %v9537_v60 }
 0x1cf   : > { %9530 = vst [vmem:[#allocation34_spill] sm:$0xff] %v8309_v34  ;;  %v9533_v33 = vsel %vm8321_vm13, 4294967295, %v9532_v33  ;;  %v4366_v34 = vmul.u32 18, %v4365_v22  ;;  %vm8396_vm13 = vmand %vm9556_vm8, %vm9555_vm7  ;;  %vm9573_vm0 = vcmp.ne.s32.totalorder %v8420_v18, 0  ;;  %vm9574_vm3 = vcmp.lt.s32.totalorder %v8420_v18, 0 }
 0x1d0   : > { %9534 = vst [vmem:[#allocation35_spill] sm:$0xff] %v9533_v33  ;;  %v4377_v33 = vmul.u32 18, %v4376_v4  ;;  %v9558_v29 = vsel %vm8396_vm13, 4294967295, %v9557_v29 }
 0x1d1   : > { %v8344_v22 = vpop.f32.mrb[8].mxu1  ;;  %v8389_v24 = vsub.s32 %v8171_v31, %v4366_v34  ;;  %v4453_v34 = vshrl.u32 %v8315_v63, 4 }
 0x1d2   : > { %9539 = vst [vmem:[#allocation36_spill] sm:$0xff] %v8344_v22  ;;  %v8359_v38 = vpop.f32.mrb[9].mxu1  ;;  %v9551_v22 = vmov 0  ;;  %v8438_v32 = vsub.s32 %v8217_v41, %v4377_v33  ;;  %v8453_v33 = vadd.s32 240, %v7784_v15 }
 0x1d3   : > { %9545 = vst [vmem:[#allocation38_spill] sm:$0xff] %v8359_v38  ;;  %v9552_v22 = vsel %vm8381_vm1, 4294967295, %v9551_v22  ;;  %9554 = vst [vmem:[#allocation40_spill] sm:$0xff] %v8389_v24  ;;  %v4431_v38 = vshrl.u32 %v8289_v48, 4  ;;  %v8429_v48 = vsub.s32 %v8209_v44, %v4388_v27  ;;  %vm4545_vm11 = vcmp.ne.s32.totalorder %v8389_v24, 0 }
 0x1d4   : > { %9560 = vst [vmem:[#allocation42_spill] sm:$0xff] %v8438_v32  ;;  %v8442_v4 = vadd.s32 18, %v8389_v24  ;;  %v8445_v44 = vsub.s32 %v8226_v23, %v4410_v12  ;;  %v4421_v27 = vmul.u32 18, %v4420_v28  ;;  %v8462_v28 = vsub.s32 %v8247_v40, %v4399_v20  ;;  %vm8501_vm1 = vmand %vm9574_vm3, %vm9573_vm0 }
 0x1d5   : > { %v8405_v31 = vpop.f32.mrb[10].mxu1  ;;  %9559 = vst [vmem:[#allocation41_spill] sm:$0xff] %v8429_v48  ;;  %v4432_v26 = vmul.u32 18, %v4431_v38  ;;  %v8458_v38 = vadd.s32 18, %v8420_v18  ;;  %v4454_v23 = vmul.u32 18, %v4453_v34  ;;  %vm9563_vm8 = vcmp.lt.s32.totalorder %v8389_v24, 0 }
 0x1d6   : > { %v8422_v46 = vpop.f32.mrb[11].mxu1  ;;  %9561 = vst [vmem:[#allocation43_spill] sm:$0xff] %v8442_v4  ;;  %9562 = vst [vmem:[#allocation44_spill] sm:$0xff] %v8445_v44  ;;  %v8474_v12 = vadd.s32 18, %v8429_v48  ;;  %v8483_v40 = vsub.s32 %v8261_v6, %v4421_v27  ;;  %v4475_v20 = vshrl.u32 %v8403_v7, 4  ;;  %v4443_v7 = vmul.u32 18, %v4442_v57 }
 0x1d7   : > { %vm8468_vm7 = vmand %vm9563_vm8, %vm4545_vm11  ;;  %v8478_v5 = vsub.s32 %v8254_v36, %v4432_v26  ;;  %vm9569_vm11 = vnez %v9465_v0  ;;  %v9575_v36 = vmov 0  ;;  %vm9581_vm3 = vcmp.ne.s32.totalorder %v8429_v48, 0 }
 0x1d8   : > { %v9565_v13 = vsel %vm8468_vm7, 4294967295, %v9564_v13  ;;  %9566 = vst [vmem:[#allocation45_spill] sm:$0xff] %v8474_v12  ;;  %9568 = vst [vmem:[#allocation47_spill] sm:$0xff] %v8483_v40  ;;  %v9570_v14 = vsel %vm9569_vm11, %v7853_v61, %v7824_v39  ;;  %v9576_v36 = vsel %vm8501_vm1, 4294967295, %v9575_v36  ;;  %vm9577_vm11 = vnez %v9467_v8 }
 0x1d9   : > { %v8447_v63 = vpop.f32.mrb[12].mxu1  ;;  %9567 = vst [vmem:[#allocation46_spill] sm:$0xff] %v8478_v5  ;;  %vm8493_vm8 = vcmp.lt.s32.totalorder %v9570_v14, 16  ;;  %v8507_v0 = vmul.u32.u64.low 3817748708, %v8453_v33  ;;  %v8508_v6 = vmul.u32.u64.high 3817748708, %v8453_v33, %v8507_v0  ;;  %v9578_v61 = vsel %vm9577_vm11, %v7876_v56, %v7832_v43 }
 0x1da   : > { %v8455_v41 = vpop.f32.mrb[13].mxu1  ;;  %vm8517_vm15 = vcmp.lt.s32.totalorder %v9578_v61, 16  ;;  %vm9582_vm0 = vcmp.lt.s32.totalorder %v8429_v48, 0  ;;  %v9583_v27 = vmov 0  ;;  %v8536_v43 = vsub.s32 %v8281_v51, %v4454_v23 }
 0x1db   : > { %vm8529_vm13 = vmand %vm9582_vm0, %vm9581_vm3  ;;  %vm9586_vm14 = vcmp.ne.s32.totalorder %v8438_v32, 0  ;;  %vm9587_vm2 = vcmp.lt.s32.totalorder %v8438_v32, 0  ;;  %v9588_v56 = vmov 0  ;;  %v8547_v8 = vadd.s32 18, %v8438_v32 }
 0x1dc   : > { %v9584_v27 = vsel %vm8529_vm13, 4294967295, %v9583_v27  ;;  %9585 = vst [vmem:[#allocation48_spill] sm:$0xff] %v8536_v43  ;;  %vm8542_vm7 = vmand %vm9587_vm2, %vm9586_vm14  ;;  %v8550_v57 = vadd.s32 18, %v8445_v44  ;;  %vm4551_vm3 = vcmp.ne.s32.totalorder %v8478_v5, 0  ;;  %vm9592_vm11 = vcmp.ne.s32.totalorder %v8445_v44, 0 }
 0x1dd   : > { %v8486_v34 = vpop.f32.mrb[14].mxu1  ;;  %v9589_v56 = vsel %vm8542_vm7, 4294967295, %v9588_v56  ;;  %9590 = vst [vmem:[#allocation49_spill] sm:$0xff] %v8547_v8  ;;  %vm9593_vm6 = vcmp.lt.s32.totalorder %v8445_v44, 0  ;;  %v9594_v51 = vmov 0  ;;  %v4476_v23 = vmul.u32 18, %v4475_v20 }
 0x1de   : > { %v8510_v39 = vpop.f32.mrb[15].mxu1  ;;  %9591 = vst [vmem:[#allocation50_spill] sm:$0xff] %v8550_v57  ;;  %vm8558_vm12 = vmand %vm9593_vm6, %vm9592_vm11  ;;  %v8565_v0 = vadd.s32 264, %v7784_v15  ;;  %v9597_v26 = vsel %vm7987_vm5, %v7926_v21, %v7878_v58  ;;  %vm9600_vm6 = vcmp.ne.s32.totalorder %v8462_v28, 0  ;;  %vm9601_vm11 = vcmp.lt.s32.totalorder %v8462_v28, 0 }
 0x1df   : > { %v9595_v51 = vsel %vm8558_vm12, 4294967295, %v9594_v51  ;;  %vm8574_vm0 = vcmp.lt.s32.totalorder %v9597_v26, 16  ;;  %vm8590_vm14 = vmand %vm9601_vm11, %vm9600_vm6  ;;  %v8595_v21 = vadd.s32 18, %v8462_v28  ;;  %v8598_v53 = vsub.s32 %v8307_v2, %v4443_v7 }
 0x1e0   : > { %9596 = vst [vmem:[#allocation51_spill] sm:$0xff] %v9595_v51  ;;  %v9605_v20 = vsel %vm8002_vm4, %v7939_v11, %v7905_v9  ;;  %vm9608_vm6 = vcmp.lt.s32.totalorder %v8478_v5, 0  ;;  %v9609_v2 = vmov 0  ;;  %v8621_v7 = vadd.s32 18, %v8478_v5 }
 0x1e1   : > { %v8567_v61 = vpop.f32.mrb[16].mxu1  ;;  %9604 = vst [vmem:[#allocation52_spill] sm:$0xff] %v8598_v53  ;;  %vm8608_vm2 = vcmp.lt.s32.totalorder %v9605_v20, 16  ;;  %vm8616_vm11 = vmand %vm9608_vm6, %vm4551_vm3  ;;  %v8624_v49 = vadd.s32 18, %v8483_v40  ;;  %vm4553_vm4 = vcmp.ne.s32.totalorder %v8536_v43, 0  ;;  %vm4589_vm5 = vcmp.lt.s32.totalorder %v8536_v43, 0 }
 0x1e2   : > { %v8600_v26 = vpop.f32.mrb[17].mxu1  ;;  %v9610_v2 = vsel %vm8616_vm11, 4294967295, %v9609_v2  ;;  %9612 = vst [vmem:[#allocation54_spill] sm:$0xff] %v8621_v7  ;;  %vm9614_vm3 = vcmp.ne.s32.totalorder %v8483_v40, 0  ;;  %vm9615_vm6 = vcmp.lt.s32.totalorder %v8483_v40, 0  ;;  %v9616_v20 = vmov 0 }
 0x1e3   : > { %9611 = vst [vmem:[#allocation53_spill] sm:$0xff] %v9610_v2  ;;  %9613 = vst [vmem:[#allocation55_spill] sm:$0xff] %v8624_v49  ;;  %v8645_v48 = vadd.s32 256, %v7784_v15  ;;  %v8648_v12 = vadd.s32 280, %v7784_v15  ;;  %v8651_v9 = vadd.s32 18, %v8536_v43  ;;  %v8654_v51 = vsub.s32 %v8342_v54, %v4476_v23  ;;  %v9646_v40 = vld [vmem:[#allocation28_spill] sm:$0xff] }
 0x1e4   : > { %vm8640_vm13 = vmand %vm9615_vm6, %vm9614_vm3  ;;  %v8657_v11 = vmul.u32.u64.low 3817748708, %v8565_v0  ;;  %v8658_v44 = vmul.u32.u64.high 3817748708, %v8565_v0, %v8657_v11  ;;  %v9622_v32 = vsel %vm8018_vm9, %v7947_v30, %v7913_v17  ;;  %v9625_v54 = vmov 0  ;;  %v9653_v7 = vld [vmem:[#allocation3_spill] sm:$0xff] }
 0x1e5   : > { %v9617_v20 = vsel %vm8640_vm13, 4294967295, %v9616_v20  ;;  %9619 = vst [vmem:[#allocation57_spill] sm:$0xff] %v8648_v12  ;;  %9620 = vst [vmem:[#allocation58_spill] sm:$0xff] %v8651_v9  ;;  %v6356_v57 = vpop.f32.mrb[0].mxu0  ;;  %vm8670_vm3 = vcmp.lt.s32.totalorder %v9622_v32, 16  ;;  %vm4552_vm12 = vcmp.ne.s32.totalorder %v8598_v53, 0 }
 0x1e6   : > { %9618 = vst [vmem:[#allocation56_spill] sm:$0xff] %v9617_v20  ;;  %9621 = vst [vmem:[#allocation59_spill] sm:$0xff] %v8654_v51  ;;  %vm4588_vm7 = vcmp.lt.s32.totalorder %v8598_v53, 0  ;;  %v4464_v23 = vshrl.u32 %v8508_v6, 4  ;;  %v6410_v17 = vadd.f32 %v6356_v57, %v8188_v37  ;;  %v3811_v30 = vpop.f32.mrb[1].mxu0  ;;  %v9628_v6 = vsel %vm8036_vm10, %v7965_v42, %v7934_v25  ;;  %v9641_v25 = vld [vmem:[#allocation2_spill] sm:$0xff] }
 0x1e7   : > { %vm8674_vm6 = vmand %vm4589_vm5, %vm4553_vm4  ;;  %v6411_v37 = vadd.f32 %v3811_v30, %v8198_v19  ;;  %vm8703_vm5 = vcmp.lt.s32.totalorder %v9628_v6, 16  ;;  %v8708_v32 = vadd.s32 18, %v8598_v53  ;;  %vm9632_vm4 = vcmask 31744   ;;  %v9640_v6 = vld [vmem:[#allocation5_spill] sm:$0xff]  ;;  %v9675_v53 = vld [vmem:[#allocation6_spill] sm:$0xff] }
 0x1e8   : > { %v9626_v54 = vsel %vm8674_vm6, 4294967295, %v9625_v54  ;;  %v8711_v11 = vmul.u32.u64.low 3817748708, %v8645_v48  ;;  %v8712_v5 = vmul.u32.u64.high 3817748708, %v8645_v48, %v8711_v11  ;;  %4027 = vst.msk [vmem:[%s8663_s18 + $0x8] sm:$0xff] %vm9632_vm4, %v6410_v17  ;;  %v4813_v19 = vsel %vm8493_vm8, %v6410_v17, 0.0  ;;  %vm8726_vm10 = vmand %vm4588_vm7, %vm4552_vm12 }
 0x1e9   : > { %9627 = vst [vmem:[#allocation60_spill] sm:$0xff] %v9626_v54  ;;  %9631 = vst [vmem:[#allocation61_spill] sm:$0xff] %v8708_v32  ;;  %v9633_v42 = vmov 0  ;;  %vm4555_vm1 = vcmp.ne.s32.totalorder %v8654_v51, 0  ;;  %v4926_v45 = vmul.f32 %v4813_v19, %v4813_v19  ;;  %v4812_v17 = vsel %vm8517_vm15, %v6411_v37, 0.0  ;;  %v6359_v30 = vpop.f32.mrb[2].mxu0 }
 0x1ea   : > { %v9634_v42 = vsel %vm8726_vm10, 4294967295, %v9633_v42  ;;  %vm9636_vm9 = vmmov %vm9632_vm4  ;;  %v9638_v11 = vld [vmem:[#allocation12_spill] sm:$0xff]  ;;  %v4465_v9 = vmul.u32 18, %v4464_v23  ;;  %v6412_v49 = vadd.f32 %v6359_v30, %v9646_v40  ;;  %v3821_v14 = vpop.f32.mrb[3].mxu0  ;;  %v9652_v23 = vld [vmem:[#allocation7_spill] sm:$0xff] }
 0x1eb   : > { %9635 = vst [vmem:[#allocation62_spill] sm:$0xff] %v9634_v42  ;;  %v4849_v3 = vsel %vm9636_vm9, %v4813_v19, 0.0  ;;  %vm9637_vm8 = vmmov %vm9632_vm4  ;;  %vm9639_vm6 = vnez %v9638_v11  ;;  %v4925_v19 = vmul.f32 %v4812_v17, %v4812_v17  ;;  %v9674_v40 = vld [vmem:[#allocation13_spill] sm:$0xff] }
 0x1ec   : > { %4026 = vst.msk [vmem:[%s8663_s18] sm:$0xff] %vm9637_vm8, %v6411_v37  ;;  %v9642_v15 = vsel %vm9639_vm6, %v9640_v6, %v9641_v25  ;;  %vm9645_vm7 = vmmov %vm9632_vm4  ;;  %v8749_v37 = vadd.s32 18, %v8654_v51  ;;  %v9649_v25 = vld [vmem:[#allocation29_spill] sm:$0xff]  ;;  %v8798_v4 = vsub.s32 %v8453_v33, %v4465_v9  ;;  %v9679_v9 = vld [vmem:[#allocation31_spill] sm:$0xff]  ;;  %vm9684_vm6 = vcmask 31748  }
 0x1ed   : > { %vm8742_vm12 = vcmp.lt.s32.totalorder %v9642_v15, 16  ;;  %v4848_v54 = vsel %vm9645_vm7, %v4812_v17, 0.0  ;;  %vm9648_vm15 = vmmov %vm9632_vm4  ;;  %v6413_v6 = vadd.f32 %v3821_v14, %v9649_v25  ;;  %v9650_v15 = vld [vmem:[#allocation15_spill] sm:$0xff]  ;;  %5527 = vst.msk [vmem:[%s8663_s18 + $0x16] sm:$0xff] %vm9632_vm4, %v6412_v49  ;;  %v6362_v14 = vpop.f32.mrb[4].mxu0  ;;  %v9659_v25 = vld [vmem:[#allocation16_spill] sm:$0xff] }
 0x1ee   : > { %9647 = vst [vmem:[#allocation12_spill] sm:$0xff] %v8749_v37  ;;  %v4962_v11 = vsel %vm9648_vm15, %v4926_v45, 0.0  ;;  %v4850_v20 = vadd.f32 %v4849_v3, %v4848_v54  ;;  %vm9651_vm8 = vnez %v9650_v15  ;;  %vm9657_vm15 = vmmov %vm9632_vm4  ;;  %v4815_v3 = vsel %vm8574_vm0, %v6412_v49, 0.0  ;;  %v9662_v15 = vld [vmem:[#allocation4_spill] sm:$0xff]  ;;  %v9720_v37 = vld [vmem:[#allocation14_spill] sm:$0xff] }
 0x1ef   : > { %v9654_v2 = vsel %vm9651_vm8, %v9652_v23, %v9653_v7  ;;  %v4961_v54 = vsel %vm9657_vm15, %v4925_v19, 0.0  ;;  %v8772_v45 = vmul.u32.u64.low 3817748708, %v8648_v12  ;;  %v8773_v30 = vmul.u32.u64.high 3817748708, %v8648_v12, %v8772_v45  ;;  %v9661_v19 = vld [vmem:[#allocation11_spill] sm:$0xff] }
 0x1f0   : > { %vm8758_vm7 = vcmp.lt.s32.totalorder %v9654_v2, 16  ;;  %v4963_v2 = vadd.f32 %v4962_v11, %v4961_v54  ;;  %vm9658_vm8 = vcmask 31746   ;;  %v4814_v7 = vsel %vm8608_vm2, %v6413_v6, 0.0 }
 0x1f1   : > { %5526 = vst.msk [vmem:[%s8663_s18 + $0xe] sm:$0xfc] %vm9658_vm8, %v6413_v6  ;;  %vm9660_vm9 = vnez %v9659_v25  ;;  %vm9666_vm0 = vcmp.lt.s32.totalorder %v8654_v51, 0  ;;  %v9667_v49 = vmov 0  ;;  %v4497_v11 = vshrl.u32 %v8658_v44, 4  ;;  %v9671_v25 = vld [vmem:[#allocation30_spill] sm:$0xff] }
 0x1f2   : > { %v9663_v23 = vsel %vm9660_vm9, %v9661_v19, %v9662_v15  ;;  %vm8793_vm15 = vmand %vm9666_vm0, %vm4555_vm1  ;;  %v4928_v6 = vmul.f32 %v4815_v3, %v4815_v3  ;;  %vm9670_vm2 = vcmask 31744   ;;  %v4927_v45 = vmul.f32 %v4814_v7, %v4814_v7  ;;  %v3831_v15 = vpop.f32.mrb[5].mxu0  ;;  %v9697_v51 = vld [vmem:[#allocation9_spill] sm:$0xff] }
 0x1f3   : > { %vm8785_vm4 = vcmp.lt.s32.totalorder %v9663_v23, 16  ;;  %v9668_v49 = vsel %vm8793_vm15, 4294967295, %v9667_v49  ;;  %v4851_v54 = vsel %vm9670_vm2, %v4814_v7, 0.0  ;;  %v6414_v19 = vadd.f32 %v6362_v14, %v9671_v25  ;;  %v9672_v23 = vld [vmem:[#allocation18_spill] sm:$0xff]  ;;  %vm9680_vm0 = vmmov %vm9670_vm2 }
 0x1f4   : > { %9669 = vst [vmem:[#allocation5_spill] sm:$0xff] %v9668_v49  ;;  %vm9673_vm1 = vnez %v9672_v23  ;;  %v4852_v44 = vadd.f32 %v4851_v54, %v4850_v20  ;;  %v6415_v42 = vadd.f32 %v3831_v15, %v9679_v9  ;;  %v4853_v14 = vsel %vm9680_vm0, %v4815_v3, 0.0  ;;  %vm9681_vm2 = vmmov %vm9680_vm0  ;;  %v6365_v3 = vpop.f32.mrb[6].mxu0  ;;  %v9694_v20 = vld [vmem:[#allocation20_spill] sm:$0xff] }
 0x1f5   : > { %v9676_v32 = vsel %vm9673_vm1, %v9674_v40, %v9675_v53  ;;  %v8814_v7 = vmul.u32.u64.low 3817748708, %v8682_v55  ;;  %v8815_v12 = vmul.u32.u64.high 3817748708, %v8682_v55, %v8814_v7  ;;  %v4964_v25 = vsel %vm9681_vm2, %v4927_v45, 0.0  ;;  %vm9682_vm9 = vmmov %vm9680_vm0  ;;  %v3841_v9 = vpop.f32.mrb[7].mxu0 }
 0x1f6   : > { %vm8808_vm8 = vcmp.lt.s32.totalorder %v9676_v32, 16  ;;  %5530 = vst.msk [vmem:[%s8663_s18 + $0x24] sm:$0xff] %vm9682_vm9, %v6414_v19  ;;  %v4817_v53 = vsel %vm8670_vm3, %v6414_v19, 0.0  ;;  %v4854_v32 = vadd.f32 %v4853_v14, %v4852_v44  ;;  %v4965_v40 = vadd.f32 %v4964_v25, %v4963_v2  ;;  %vm9685_vm9 = vmmov %vm9680_vm0  ;;  %v9686_v19 = vld [vmem:[#allocation33_spill] sm:$0xff]  ;;  %v9687_v7 = vld [vmem:[#allocation19_spill] sm:$0xff] }
 0x1f7   : > { %v4930_v54 = vmul.f32 %v4817_v53, %v4817_v53  ;;  %vm9683_vm1 = vcmask 25600   ;;  %5529 = vst.msk [vmem:[%s8663_s18 + $0x1c] sm:$0xf0] %vm9684_vm6, %v6415_v42  ;;  %v4486_v45 = vshrl.u32 %v8712_v5, 4  ;;  %v4966_v15 = vsel %vm9685_vm9, %v4928_v6, 0.0  ;;  %v9689_v2 = vld [vmem:[#allocation17_spill] sm:$0xff] }
 0x1f8   : > { %5528 = vst.msk [vmem:[%s8663_s18 + $0x1e] sm:$0x3] %vm9683_vm1, %v6415_v42  ;;  %v4816_v8 = vsel %vm8703_vm5, %v6415_v42, 0.0  ;;  %v6416_v23 = vadd.f32 %v6365_v3, %v9686_v19  ;;  %vm9688_vm3 = vnez %v9687_v7  ;;  %v9690_v44 = vld [vmem:[#allocation8_spill] sm:$0xff]  ;;  %vm9695_vm6 = vnez %v9694_v20  ;;  %v9696_v5 = vld [vmem:[#allocation21_spill] sm:$0xff]  ;;  %vm9701_vm5 = vmmov %vm9685_vm9 }
 0x1f9   : > { %v9691_v14 = vsel %vm9688_vm3, %v9689_v2, %v9690_v44  ;;  %v9698_v6 = vsel %vm9695_vm6, %v9696_v5, %v9697_v51  ;;  %v4498_v42 = vmul.u32 18, %v4497_v11  ;;  %v4967_v3 = vadd.f32 %v4966_v15, %v4965_v40  ;;  %vm9702_vm9 = vmmov %vm9701_vm5  ;;  %v9703_v51 = vld [vmem:[#allocation34_spill] sm:$0xff] }
 0x1fa   : > { %vm8842_vm0 = vcmp.lt.s32.totalorder %v9691_v14, 16  ;;  %vm8851_vm2 = vcmp.lt.s32.totalorder %v9698_v6, 16  ;;  %v4855_v19 = vsel %vm9701_vm5, %v4816_v8, 0.0  ;;  %v4929_v7 = vmul.f32 %v4816_v8, %v4816_v8  ;;  %5533 = vst.msk [vmem:[%s8663_s18 + $0x32] sm:$0xff] %vm9702_vm9, %v6416_v23  ;;  %vm9704_vm6 = vmmov %vm9701_vm5  ;;  %v6368_v14 = vpop.f32.mrb[8].mxu0  ;;  %v9710_v5 = vld [vmem:[#allocation22_spill] sm:$0xff] }
 0x1fb   : > { %vm4554_vm1 = vcmp.ne.s32.totalorder %v8798_v4, 0  ;;  %v4856_v2 = vadd.f32 %v4855_v19, %v4854_v32  ;;  %v4819_v20 = vsel %vm8742_vm12, %v6416_v23, 0.0  ;;  %v6417_v44 = vadd.f32 %v3841_v9, %v9703_v51  ;;  %vm9705_vm15 = vmmov %vm9701_vm5  ;;  %v9709_v9 = vld [vmem:[#allocation36_spill] sm:$0xff]  ;;  %v9712_v6 = vld [vmem:[#allocation23_spill] sm:$0xff] }
 0x1fc   : > { %vm4590_vm3 = vcmp.lt.s32.totalorder %v8798_v4, 0  ;;  %v4857_v11 = vsel %vm9704_vm6, %v4817_v53, 0.0  ;;  %v4970_v40 = vsel %vm9705_vm15, %v4930_v54, 0.0  ;;  %vm9706_vm10 = vmmov %vm9701_vm5  ;;  %v8867_v8 = vadd.s32 18, %v8798_v4  ;;  %v3851_v54 = vpop.f32.mrb[9].mxu0  ;;  %v9713_v19 = vld [vmem:[#allocation10_spill] sm:$0xff] }
 0x1fd   : > { %v4968_v15 = vsel %vm9706_vm10, %v4929_v7, 0.0  ;;  %vm9707_vm5 = vcmask 27648   ;;  %vm9708_vm9 = vcmask 31750   ;;  %v4818_v43 = vsel %vm8758_vm7, %v6417_v44, 0.0  ;;  %v6371_v49 = vpop.f32.mrb[10].mxu0 }
 0x1fe   : > { %v4969_v32 = vadd.f32 %v4968_v15, %v4967_v3  ;;  %5531 = vst.msk [vmem:[%s8663_s18 + $0x2c] sm:$0xf] %vm9707_vm5, %v6417_v44  ;;  %v4858_v23 = vadd.f32 %v4857_v11, %v4856_v2  ;;  %v6418_v53 = vadd.f32 %v6368_v14, %v9709_v9  ;;  %vm9711_vm10 = vnez %v9710_v5  ;;  %v9717_v3 = vld [vmem:[#allocation25_spill] sm:$0xff]  ;;  %v9719_v15 = vld [vmem:[#allocation24_spill] sm:$0xff]  ;;  %v9724_v9 = vld [vmem:[#allocation38_spill] sm:$0xff]  ;;  %v3861_v24 = vpop.f32.mrb[11].mxu0 }
 0x1ff   : > { %5532 = vst.msk [vmem:[%s8663_s18 + $0x2a] sm:$0xc0] %vm9708_vm9, %v6417_v44  ;;  %v9714_v7 = vsel %vm9711_vm10, %v9712_v6, %v9713_v19  ;;  %vm9718_vm15 = vnez %v9717_v3  ;;  %v4932_v44 = vmul.f32 %v4819_v20, %v4819_v20  ;;  %v4859_v11 = vsel %vm9704_vm6, %v4818_v43, 0.0  ;;  %vm9725_vm5 = vmmov %vm9704_vm6  ;;  %v9768_v2 = vld [vmem:[#allocation39_spill] sm:$0xff] }
 0x200   : > { %vm8881_vm12 = vcmp.lt.s32.totalorder %v9714_v7, 16  ;;  %v9721_v17 = vsel %vm9718_vm15, %v9719_v15, %v9720_v37  ;;  %v4931_v14 = vmul.f32 %v4818_v43, %v4818_v43  ;;  %v6419_v5 = vadd.f32 %v3851_v54, %v9724_v9  ;;  %5535 = vst.msk [vmem:[%s8663_s18 + $0x40] sm:$0xff] %vm9725_vm5, %v6418_v53  ;;  %vm9726_vm9 = vmmov %vm9725_vm5 }
 0x201   : > { %vm8890_vm7 = vcmp.lt.s32.totalorder %v9721_v17, 16  ;;  %v4860_v6 = vadd.f32 %v4859_v11, %v4858_v23  ;;  %v4971_v19 = vadd.f32 %v4970_v40, %v4969_v32  ;;  %v4821_v7 = vsel %vm8785_vm4, %v6418_v53, 0.0  ;;  %vm9727_vm10 = vmmov %vm9725_vm5  ;;  %v9733_v53 = vld [vmem:[#allocation26_spill] sm:$0xff] }
 0x202   : > { %v4487_v3 = vmul.u32 18, %v4486_v45  ;;  %v4861_v37 = vsel %vm9726_vm9, %v4819_v20, 0.0  ;;  %v4972_v15 = vsel %vm9727_vm10, %v4931_v14, 0.0  ;;  %v4934_v17 = vmul.f32 %v4821_v7, %v4821_v7  ;;  %vm9729_vm6 = vmmov %vm9725_vm5  ;;  %v9730_v45 = vld [vmem:[#allocation35_spill] sm:$0xff] }
 0x203   : > { %vm9728_vm15 = vcmask 29696   ;;  %v4820_v43 = vsel %vm8808_vm8, %v6419_v5, 0.0  ;;  %v4973_v54 = vadd.f32 %v4972_v15, %v4971_v19  ;;  %v4862_v23 = vadd.f32 %v4861_v37, %v4860_v6  ;;  %v9732_v20 = vld [vmem:[#allocation27_spill] sm:$0xff]  ;;  %vm8929_vm10 = vmand %vm4590_vm3, %vm4554_vm1 }
 0x204   : > { %5534 = vst.msk [vmem:[%s8663_s18 + $0x3a] sm:$0x3f] %vm9728_vm15, %v6419_v5  ;;  %v4863_v40 = vsel %vm9729_vm6, %v4820_v43, 0.0  ;;  %v4933_v32 = vmul.f32 %v4820_v43, %v4820_v43  ;;  %vm9731_vm4 = vnez %v9730_v45  ;;  %vm9737_vm8 = vnez %v9538_v60  ;;  %vm9743_vm15 = vmmov %vm9729_vm6 }
 0x205   : > { %v9734_v11 = vsel %vm9731_vm4, %v9732_v20, %v9733_v53  ;;  %v9738_v33 = vsel %vm9737_vm8, %v8268_v16, %v8231_v10  ;;  %v4974_v6 = vsel %vm9743_vm15, %v4932_v44, 0.0  ;;  %v6420_v19 = vadd.f32 %v6371_v49, %v8405_v31  ;;  %vm9744_vm4 = vmmov %vm9729_vm6 }
 0x206   : > { %vm8912_vm5 = vcmp.lt.s32.totalorder %v9734_v11, 16  ;;  %vm8921_vm9 = vcmp.lt.s32.totalorder %v9738_v33, 16  ;;  %v6421_v60 = vadd.f32 %v3861_v24, %v8422_v46  ;;  %v8937_v10 = vsub.s32 %v8565_v0, %v4498_v42  ;;  %vm9746_vm3 = vmmov %vm9744_vm4  ;;  %v6374_v46 = vpop.f32.mrb[12].mxu0 }
 0x207   : > { %v4864_v16 = vadd.f32 %v4863_v40, %v4862_v23  ;;  %v4975_v37 = vadd.f32 %v4974_v6, %v4973_v54  ;;  %v4976_v15 = vsel %vm9729_vm6, %v4933_v32, 0.0  ;;  %v4519_v43 = vshrl.u32 %v8773_v30, 4  ;;  %vm9747_vm8 = vmmov %vm9746_vm3  ;;  %v3871_v25 = vpop.f32.mrb[13].mxu0  ;;  %v9748_v23 = vld [vmem:[#allocation37_spill] sm:$0xff] }
 0x208   : > { %v4865_v45 = vsel %vm9744_vm4, %v4821_v7, 0.0  ;;  %vm9745_vm1 = vcmask 31746   ;;  %v4823_v44 = vsel %vm8842_vm0, %v6420_v19, 0.0  ;;  %5536 = vst.msk [vmem:[%s8663_s18 + $0x48] sm:$0xff] %vm9746_vm3, %v6421_v60  ;;  %v4822_v31 = vsel %vm8851_vm2, %v6421_v60, 0.0  ;;  %vm9757_vm4 = vmmov %vm9746_vm3  ;;  %v6377_v33 = vpop.f32.mrb[14].mxu0 }
 0x209   : > { %5537 = vst.msk [vmem:[%s8663_s18 + $0x4e] sm:$0xfc] %vm9745_vm1, %v6420_v19  ;;  %v4698_v0 = vsel %vm8929_vm10, %v8867_v8, %v8798_v4  ;;  %v4978_v49 = vsel %vm9747_vm8, %v4934_v17, 0.0  ;;  %v4977_v42 = vadd.f32 %v4976_v15, %v4975_v37  ;;  %v4936_v7 = vmul.f32 %v4823_v44, %v4823_v44  ;;  %vm9758_vm8 = vmmov %vm9746_vm3  ;;  %v3881_v60 = vpop.f32.mrb[15].mxu0  ;;  %v9769_v37 = vld [vmem:[#allocation32_spill] sm:$0xff] }
 0x20a   : > { %v4866_v54 = vadd.f32 %v4865_v45, %v4864_v16  ;;  %vm9749_vm0 = vnez %v9748_v23  ;;  %vm9753_vm15 = vnez %v9549_v52  ;;  %v4867_v24 = vsel %vm9757_vm4, %v4822_v31, 0.0  ;;  %vm9761_vm4 = vmmov %vm9746_vm3  ;;  %v9817_v16 = vld [vmem:[#allocation50_spill] sm:$0xff] }
 0x20b   : > { %v9750_v57 = vsel %vm9749_vm0, %v8302_v59, %v8240_v47  ;;  %v9754_v17 = vsel %vm9753_vm15, %v8326_v62, %v8271_v35  ;;  %v4935_v20 = vmul.f32 %v4822_v31, %v4822_v31  ;;  %v6422_v53 = vadd.f32 %v6374_v46, %v8447_v63  ;;  %vm9762_vm1 = vmmov %vm9746_vm3 }
 0x20c   : > { %vm8960_vm2 = vcmp.lt.s32.totalorder %v9750_v57, 16  ;;  %vm8969_vm6 = vcmp.lt.s32.totalorder %v9754_v17, 16  ;;  %v6423_v47 = vadd.f32 %v3871_v25, %v8455_v41  ;;  %v4868_v59 = vadd.f32 %v4867_v24, %v4866_v54  ;;  %v9780_v24 = vld [vmem:[#allocation43_spill] sm:$0xff] }
 0x20d   : > { %v4979_v11 = vadd.f32 %v4978_v49, %v4977_v42  ;;  %v8978_v52 = vsub.s32 %v8645_v48, %v4487_v3  ;;  %v4869_v35 = vsel %vm9746_vm3, %v4823_v44, 0.0  ;;  %v4980_v62 = vsel %vm9758_vm8, %v4935_v20, 0.0  ;;  %vm9773_vm8 = vmmov %vm9761_vm4  ;;  %v9781_v20 = vld [vmem:[#allocation40_spill] sm:$0xff] }
 0x20e   : > { %vm9759_vm0 = vcmask 25600   ;;  %vm9760_vm15 = vcmask 31748   ;;  %v4825_v63 = vsel %vm8881_vm12, %v6422_v53, 0.0  ;;  %5538 = vst.msk [vmem:[%s8663_s18 + $0x56] sm:$0xff] %vm9761_vm4, %v6423_v47  ;;  %v4824_v41 = vsel %vm8890_vm7, %v6423_v47, 0.0 }
 0x20f   : > { %5539 = vst.msk [vmem:[%s8663_s18 + $0x5e] sm:$0x3] %vm9759_vm0, %v6422_v53  ;;  %v4982_v48 = vsel %vm9762_vm1, %v4936_v7, 0.0  ;;  %v4981_v3 = vadd.f32 %v4980_v62, %v4979_v11  ;;  %v4938_v6 = vmul.f32 %v4825_v63, %v4825_v63  ;;  %v4870_v19 = vadd.f32 %v4869_v35, %v4868_v59  ;;  %v6380_v7 = vpop.f32.mrb[16].mxu0  ;;  %vm9778_vm0 = vmmov %vm9761_vm4 }
 0x210   : > { %5540 = vst.msk [vmem:[%s8663_s18 + $0x5c] sm:$0xf0] %vm9760_vm15, %v6422_v53  ;;  %vm9763_vm3 = vnez %v9552_v22  ;;  %vm9767_vm7 = vnez %v9558_v29  ;;  %v4871_v44 = vsel %vm9773_vm8, %v4824_v41, 0.0  ;;  %v4937_v22 = vmul.f32 %v4824_v41, %v4824_v41  ;;  %vm9774_vm15 = vmmov %vm9761_vm4  ;;  %v3891_v17 = vpop.f32.mrb[17].mxu0 }
 0x211   : > { %v9764_v51 = vsel %vm9763_vm3, %v8374_v50, %v8284_v1  ;;  %v9770_v15 = vsel %vm9767_vm7, %v9768_v2, %v9769_v37  ;;  %v6424_v31 = vadd.f32 %v6377_v33, %v8486_v34  ;;  %v6425_v1 = vadd.f32 %v3881_v60, %v8510_v39  ;;  %vm9777_vm8 = vmmov %vm9761_vm4  ;;  %v6383_v33 = vpop.f32.mrb[18].mxu0  ;;  %v9800_v2 = vld [vmem:[#allocation41_spill] sm:$0xff] }
 0x212   : > { %vm8998_vm12 = vcmp.lt.s32.totalorder %v9764_v51, 16  ;;  %vm9007_vm1 = vcmp.lt.s32.totalorder %v9770_v15, 16  ;;  %v4872_v50 = vadd.f32 %v4871_v44, %v4870_v19  ;;  %v4983_v46 = vadd.f32 %v4982_v48, %v4981_v3  ;;  %v3901_v32 = vpop.f32.mrb[19].mxu0  ;;  %v9799_v51 = vld [vmem:[#allocation45_spill] sm:$0xff] }
 0x213   : > { %v9016_v29 = vadd.s32 18, %v8937_v10  ;;  %v4873_v49 = vsel %vm9774_vm15, %v4825_v63, 0.0  ;;  %v4984_v42 = vsel %vm9761_vm4, %v4937_v22, 0.0  ;;  %vm9775_vm3 = vcmask 27648   ;;  %5541 = vst.msk [vmem:[%s8663_s18 + $0x64] sm:$0xff] %vm9777_vm8, %v6425_v1  ;;  %v9805_v44 = vld [vmem:[#allocation49_spill] sm:$0xff] }
 0x214   : > { %5542 = vst.msk [vmem:[%s8663_s18 + $0x6c] sm:$0xf] %vm9775_vm3, %v6424_v31  ;;  %vm9776_vm7 = vcmask 31750   ;;  %v4827_v34 = vsel %vm8912_vm5, %v6424_v31, 0.0  ;;  %v4826_v39 = vsel %vm8921_vm9, %v6425_v1, 0.0  ;;  %v4986_v54 = vsel %vm9778_vm0, %v4938_v6, 0.0  ;;  %vm9789_vm3 = vmmov %vm9761_vm4 }
 0x215   : > { %5543 = vst.msk [vmem:[%s8663_s18 + $0x6a] sm:$0xc0] %vm9776_vm7, %v6424_v31  ;;  %v4985_v25 = vadd.f32 %v4984_v42, %v4983_v46  ;;  %v4940_v23 = vmul.f32 %v4827_v34, %v4827_v34  ;;  %v4874_v57 = vadd.f32 %v4873_v49, %v4872_v50  ;;  %vm9779_vm15 = vnez %v9565_v13  ;;  %vm9790_vm8 = vmmov %vm9789_vm3  ;;  %v9806_v22 = vld [vmem:[#allocation42_spill] sm:$0xff] }
 0x216   : > { %v9782_v53 = vsel %vm9779_vm15, %v9780_v24, %v9781_v20  ;;  %vm9785_vm9 = vnez %v9576_v36  ;;  %v4875_v13 = vsel %vm9789_vm3, %v4826_v39, 0.0  ;;  %v4939_v59 = vmul.f32 %v4826_v39, %v4826_v39  ;;  %vm9791_vm15 = vmmov %vm9789_vm3 }
 0x217   : > { %vm9036_vm5 = vcmp.lt.s32.totalorder %v9782_v53, 16  ;;  %v9786_v9 = vsel %vm9785_vm9, %v8458_v38, %v8420_v18  ;;  %v6426_v11 = vadd.f32 %v6380_v7, %v8567_v61  ;;  %v6427_v35 = vadd.f32 %v3891_v17, %v8600_v26  ;;  %v6159_v26 = vpop.f32.mrb[18].mxu1  ;;  %v6386_v17 = vpop.f32.mrb[20].mxu0 }
 0x218   : > { %vm9045_vm0 = vcmp.lt.s32.totalorder %v9786_v9, 16  ;;  %v4876_v62 = vadd.f32 %v4875_v13, %v4874_v57  ;;  %v4987_v63 = vadd.f32 %v4986_v54, %v4985_v25  ;;  %v9055_v36 = vadd.s32 18, %v8978_v52  ;;  %v2181_v60 = vpop.f32.mrb[19].mxu1  ;;  %v3911_v9 = vpop.f32.mrb[21].mxu0  ;;  %v9815_v13 = vld [vmem:[#allocation51_spill] sm:$0xff] }
 0x219   : > { %v4877_v18 = vsel %vm9790_vm8, %v4827_v34, 0.0  ;;  %v4988_v38 = vsel %vm9791_vm15, %v4939_v59, 0.0  ;;  %vm9792_vm9 = vcmask 29696   ;;  %v4829_v41 = vsel %vm8960_vm2, %v6426_v11, 0.0  ;;  %5544 = vst.msk [vmem:[%s8663_s18 + $0x72] sm:$0xff] %vm9789_vm3, %v6427_v35  ;;  %vm9797_vm8 = vmmov %vm9789_vm3  ;;  %v6162_v57 = vpop.f32.mrb[20].mxu1 }
 0x21a   : > { %5545 = vst.msk [vmem:[%s8663_s18 + $0x7a] sm:$0x3f] %vm9792_vm9, %v6426_v11  ;;  %v4828_v61 = vsel %vm8969_vm6, %v6427_v35, 0.0  ;;  %vm9793_vm7 = vcmp.ne.s32.totalorder %v8937_v10, 0  ;;  %vm9794_vm4 = vcmp.lt.s32.totalorder %v8937_v10, 0  ;;  %v4990_v3 = vsel %vm9797_vm8, %v4940_v23, 0.0  ;;  %vm9810_vm15 = vmmov %vm9789_vm3 }
 0x21b   : > { %vm9071_vm10 = vmand %vm9794_vm4, %vm9793_vm7  ;;  %v4989_v6 = vadd.f32 %v4988_v38, %v4987_v63  ;;  %v4942_v40 = vmul.f32 %v4829_v41, %v4829_v41  ;;  %v4878_v19 = vadd.f32 %v4877_v18, %v4876_v62  ;;  %vm9798_vm2 = vnez %v9584_v27  ;;  %v2191_v53 = vpop.f32.mrb[21].mxu1  ;;  %v9818_v59 = vld [vmem:[#allocation44_spill] sm:$0xff]  ;;  %v9874_v35 = vld [vmem:[#allocation5_spill] sm:$0xff] }
 0x21c   : > { %v9801_v37 = vsel %vm9798_vm2, %v9799_v51, %v9800_v2  ;;  %vm9804_vm4 = vnez %v9589_v56  ;;  %v4879_v50 = vsel %vm9810_vm15, %v4828_v61, 0.0  ;;  %v4941_v46 = vmul.f32 %v4828_v61, %v4828_v61  ;;  %vm9811_vm9 = vmmov %vm9789_vm3 }
 0x21d   : > { %vm9081_vm6 = vcmp.lt.s32.totalorder %v9801_v37, 16  ;;  %v9807_v31 = vsel %vm9804_vm4, %v9805_v44, %v9806_v22  ;;  %v6428_v27 = vadd.f32 %v6383_v33, %v6159_v26  ;;  %v6429_v49 = vadd.f32 %v3901_v32, %v2181_v60  ;;  %vm9812_vm8 = vmmov %vm9789_vm3  ;;  %v9826_v33 = vld [vmem:[#allocation57_spill] sm:$0xff]  ;;  %v6389_v60 = vpop.f32.mrb[22].mxu0  ;;  %v9836_v22 = vld [vmem:[#allocation54_spill] sm:$0xff] }
 0x21e   : > { %vm9090_vm7 = vcmp.lt.s32.totalorder %v9807_v31, 16  ;;  %v4880_v42 = vadd.f32 %v4879_v50, %v4878_v19  ;;  %v4991_v34 = vadd.f32 %v4990_v3, %v4989_v6  ;;  %v4701_v39 = vsel %vm9071_vm10, %v9016_v29, %v8937_v10  ;;  %vm9813_vm2 = vmmov %vm9789_vm3  ;;  %v6165_v19 = vpop.f32.mrb[22].mxu1  ;;  %v3921_v47 = vpop.f32.mrb[23].mxu0  ;;  %v9837_v31 = vld [vmem:[#allocation46_spill] sm:$0xff] }
 0x21f   : > { %v4520_v56 = vmul.u32 18, %v4519_v43  ;;  %v4881_v7 = vsel %vm9811_vm9, %v4829_v41, 0.0  ;;  %v4992_v54 = vsel %vm9789_vm3, %v4941_v46, 0.0  ;;  %5547 = vst.msk [vmem:[%s8663_s18 + $0x88] sm:$0xff] %vm9812_vm8, %v6428_v27  ;;  %v4831_v25 = vsel %vm8998_vm12, %v6428_v27, 0.0  ;;  %vm9814_vm4 = vmmov %vm9813_vm2  ;;  %v2201_v37 = vpop.f32.mrb[23].mxu1 }
 0x220   : > { %5546 = vst.msk [vmem:[%s8663_s18 + $0x80] sm:$0xff] %vm9813_vm2, %v6429_v49  ;;  %v4830_v23 = vsel %vm9007_vm1, %v6429_v49, 0.0  ;;  %v4994_v24 = vsel %vm9814_vm4, %v4942_v40, 0.0  ;;  %v4993_v30 = vadd.f32 %v4992_v54, %v4991_v34  ;;  %v4944_v43 = vmul.f32 %v4831_v25, %v4831_v25  ;;  %vm9825_vm9 = vmmov %vm9813_vm2  ;;  %v9842_v49 = vld [vmem:[#allocation55_spill] sm:$0xff] }
 0x221   : > { %v4882_v20 = vadd.f32 %v4881_v7, %v4880_v42  ;;  %vm9816_vm15 = vnez %v9815_v13  ;;  %v9822_v45 = vsel %vm8590_vm14, %v8595_v21, %v8462_v28  ;;  %v4883_v63 = vsel %vm9825_vm9, %v4830_v23, 0.0  ;;  %vm9827_vm3 = vmmov %vm9813_vm2  ;;  %v9843_v42 = vld [vmem:[#allocation47_spill] sm:$0xff]  ;;  %v6168_v13 = vpop.f32.mrb[24].mxu1 }
 0x222   : > { %v9819_v11 = vsel %vm9816_vm15, %v9817_v16, %v9818_v59  ;;  %vm9126_vm1 = vcmp.lt.s32.totalorder %v9822_v45, 16  ;;  %v4943_v18 = vmul.f32 %v4830_v23, %v4830_v23  ;;  %v6430_v38 = vadd.f32 %v6386_v17, %v6162_v57  ;;  %vm9828_vm8 = vmmov %vm9813_vm2  ;;  %v6392_v16 = vpop.f32.mrb[24].mxu0 }
 0x223   : > { %vm9117_vm12 = vcmp.lt.s32.totalorder %v9819_v11, 16  ;;  %v6431_v41 = vadd.f32 %v3911_v9, %v2191_v53  ;;  %v4884_v61 = vadd.f32 %v4883_v63, %v4882_v20  ;;  %v4995_v26 = vadd.f32 %v4994_v24, %v4993_v30  ;;  %vm9829_vm14 = vmmov %vm9813_vm2  ;;  %v3931_v15 = vpop.f32.mrb[25].mxu0 }
 0x224   : > { %v9132_v3 = vsub.s32 %v9826_v33, %v4520_v56  ;;  %v4508_v6 = vshrl.u32 %v8815_v12, 4  ;;  %v4885_v58 = vsel %vm9827_vm3, %v4831_v25, 0.0  ;;  %v4996_v28 = vsel %vm9828_vm8, %v4943_v18, 0.0  ;;  %5549 = vst.msk [vmem:[%s8663_s18 + $0x96] sm:$0xff] %vm9829_vm14, %v6430_v38  ;;  %vm9847_vm8 = vmmov %vm9827_vm3  ;;  %v2211_v18 = vpop.f32.mrb[25].mxu1  ;;  %v9860_v33 = vld [vmem:[#allocation62_spill] sm:$0xff] }
 0x225   : > { %v4833_v21 = vsel %vm9036_vm5, %v6430_v38, 0.0  ;;  %vm9830_vm2 = vcmask 31746   ;;  %v4832_v40 = vsel %vm9045_vm0, %v6431_v41, 0.0  ;;  %vm9831_vm4 = vcmp.ne.s32.totalorder %v8978_v52, 0  ;;  %vm9850_vm14 = vmmov %vm9827_vm3  ;;  %v9853_v38 = vld [vmem:[#allocation60_spill] sm:$0xff] }
 0x226   : > { %5548 = vst.msk [vmem:[%s8663_s18 + $0x8e] sm:$0xfc] %vm9830_vm2, %v6431_v41  ;;  %vm9832_vm15 = vcmp.lt.s32.totalorder %v8978_v52, 0  ;;  %v4998_v32 = vsel %vm9827_vm3, %v4944_v43, 0.0  ;;  %v4997_v51 = vadd.f32 %v4996_v28, %v4995_v26  ;;  %v4946_v14 = vmul.f32 %v4833_v21, %v4833_v21  ;;  %v9855_v41 = vld [vmem:[#allocation58_spill] sm:$0xff] }
 0x227   : > { %vm9149_vm9 = vmand %vm9832_vm15, %vm9831_vm4  ;;  %v4886_v2 = vadd.f32 %v4885_v58, %v4884_v61  ;;  %v9838_v50 = vsel %vm8616_vm11, %v9836_v22, %v9837_v31  ;;  %v9844_v34 = vsel %vm8640_vm13, %v9842_v49, %v9843_v42  ;;  %v4887_v7 = vsel %vm9847_vm8, %v4832_v40, 0.0  ;;  %v9856_v61 = vld [vmem:[#allocation48_spill] sm:$0xff]  ;;  %v6171_v31 = vpop.f32.mrb[26].mxu1 }
 0x228   : > { %vm9159_vm5 = vcmp.lt.s32.totalorder %v9838_v50, 16  ;;  %vm9168_vm0 = vcmp.lt.s32.totalorder %v9844_v34, 16  ;;  %v4945_v54 = vmul.f32 %v4832_v40, %v4832_v40  ;;  %v6432_v25 = vadd.f32 %v6389_v60, %v6165_v19  ;;  %vm9848_vm11 = vmmov %vm9827_vm3  ;;  %v9863_v58 = vld [vmem:[#allocation52_spill] sm:$0xff]  ;;  %v6395_v50 = vpop.f32.mrb[26].mxu0  ;;  %v2221_v34 = vpop.f32.mrb[27].mxu1 }
 0x229   : > { %v6433_v23 = vadd.f32 %v3921_v47, %v2201_v37  ;;  %v4888_v57 = vadd.f32 %v4887_v7, %v4886_v2  ;;  %v4999_v17 = vadd.f32 %v4998_v32, %v4997_v51  ;;  %v4700_v24 = vsel %vm9149_vm9, %v9055_v36, %v8978_v52  ;;  %vm9849_vm13 = vmmov %vm9827_vm3  ;;  %v3941_v7 = vpop.f32.mrb[27].mxu0 }
 0x22a   : > { %v4509_v30 = vmul.u32 18, %v4508_v6  ;;  %v4889_v43 = vsel %vm9848_vm11, %v4833_v21, 0.0  ;;  %v5000_v20 = vsel %vm9849_vm13, %v4945_v54, 0.0  ;;  %5552 = vst.msk [vmem:[%s8663_s18 + $0xa4] sm:$0xff] %vm9850_vm14, %v6432_v25  ;;  %v4835_v53 = vsel %vm9081_vm6, %v6432_v25, 0.0  ;;  %v9862_v6 = vld [vmem:[#allocation61_spill] sm:$0xff]  ;;  %vm9867_vm13 = vmmov %vm9827_vm3 }
 0x22b   : > { %vm9851_vm2 = vcmask 25600   ;;  %vm9852_vm4 = vcmask 31748   ;;  %v4834_v9 = vsel %vm9090_vm7, %v6433_v23, 0.0  ;;  %vm4559_vm15 = vcmp.ne.s32.totalorder %v9132_v3, 0  ;;  %v9876_v54 = vld [vmem:[#allocation12_spill] sm:$0xff]  ;;  %v9877_v25 = vld [vmem:[#allocation59_spill] sm:$0xff] }
 0x22c   : > { %5550 = vst.msk [vmem:[%s8663_s18 + $0x9e] sm:$0x3] %vm9851_vm2, %v6433_v23  ;;  %v5002_v59 = vsel %vm9827_vm3, %v4946_v14, 0.0  ;;  %v4890_v11 = vadd.f32 %v4889_v43, %v4888_v57  ;;  %v5001_v45 = vadd.f32 %v5000_v20, %v4999_v17  ;;  %v4948_v63 = vmul.f32 %v4835_v53, %v4835_v53  ;;  %vm9868_vm2 = vmmov %vm9827_vm3 }
 0x22d   : > { %5551 = vst.msk [vmem:[%s8663_s18 + $0x9c] sm:$0xf0] %vm9852_vm4, %v6433_v23  ;;  %vm9854_vm6 = vnez %v9853_v38  ;;  %vm9861_vm8 = vnez %v9860_v33  ;;  %v4891_v40 = vsel %vm9867_vm13, %v4834_v9, 0.0  ;;  %v4947_v19 = vmul.f32 %v4834_v9, %v4834_v9  ;;  %vm9869_vm4 = vmmov %vm9868_vm2 }
 0x22e   : > { %v9857_v26 = vsel %vm9854_vm6, %v9855_v41, %v9856_v61  ;;  %v9864_v28 = vsel %vm9861_vm8, %v9862_v6, %v9863_v58  ;;  %v6434_v60 = vadd.f32 %v6392_v16, %v6168_v13  ;;  %v6435_v32 = vadd.f32 %v3931_v15, %v2211_v18  ;;  %vm9870_vm3 = vmmov %vm9868_vm2  ;;  %v6398_v16 = vpop.f32.mrb[28].mxu0 }
 0x22f   : > { %vm9196_vm7 = vcmp.lt.s32.totalorder %v9857_v26, 16  ;;  %vm9205_vm11 = vcmp.lt.s32.totalorder %v9864_v28, 16  ;;  %v5003_v51 = vadd.f32 %v5002_v59, %v5001_v45  ;;  %v4892_v14 = vadd.f32 %v4891_v40, %v4890_v11  ;;  %vm9873_vm13 = vmmov %vm9868_vm2  ;;  %v3951_v15 = vpop.f32.mrb[29].mxu0 }
 0x230   : > { %v9212_v2 = vsub.s32 %v8682_v55, %v4509_v30  ;;  %v4893_v37 = vsel %vm9868_vm2, %v4835_v53, 0.0  ;;  %v5004_v47 = vsel %vm9869_vm4, %v4947_v19, 0.0  ;;  %5555 = vst.msk [vmem:[%s8663_s18 + $0xb2] sm:$0xff] %vm9870_vm3, %v6434_v60  ;;  %v4837_v44 = vsel %vm9117_vm12, %v6434_v60, 0.0  ;;  %v6401_v58 = vpop.f32.mrb[30].mxu0 }
 0x231   : > { %vm9871_vm6 = vcmask 27648   ;;  %vm9872_vm8 = vcmask 31750   ;;  %v4836_v22 = vsel %vm9126_vm1, %v6435_v32, 0.0  ;;  %v5006_v55 = vsel %vm9873_vm13, %v4948_v63, 0.0  ;;  %vm9884_vm13 = vmmov %vm9870_vm3 }
 0x232   : > { %5553 = vst.msk [vmem:[%s8663_s18 + $0xac] sm:$0xf] %vm9871_vm6, %v6435_v32  ;;  %v5005_v27 = vadd.f32 %v5004_v47, %v5003_v51  ;;  %v4950_v49 = vmul.f32 %v4837_v44, %v4837_v44  ;;  %v4894_v42 = vadd.f32 %v4893_v37, %v4892_v14  ;;  %vm9875_vm12 = vnez %v9874_v35  ;;  %vm9886_vm1 = vmmov %vm9870_vm3 }
 0x233   : > { %5554 = vst.msk [vmem:[%s8663_s18 + $0xaa] sm:$0xc0] %vm9872_vm8, %v6435_v32  ;;  %v9878_v23 = vsel %vm9875_vm12, %v9876_v54, %v9877_v25  ;;  %vm9241_vm4 = vcmp.lt.s32.totalorder %v4698_v0, 16  ;;  %v4895_v17 = vsel %vm9870_vm3, %v4836_v22, 0.0  ;;  %v4949_v30 = vmul.f32 %v4836_v22, %v4836_v22  ;;  %vm9885_vm12 = vmmov %vm9870_vm3  ;;  %v6174_v0 = vpop.f32.mrb[28].mxu1  ;;  %v3961_v32 = vpop.f32.mrb[31].mxu0 }
 0x234   : > { %vm9232_vm2 = vcmp.lt.s32.totalorder %v9878_v23, 16  ;;  %v6436_v43 = vadd.f32 %v6395_v50, %v6171_v31  ;;  %v6437_v20 = vadd.f32 %v3941_v7, %v2221_v34  ;;  %v4896_v53 = vadd.f32 %v4895_v17, %v4894_v42  ;;  %vm9888_vm3 = vmmov %vm9886_vm1  ;;  %v2231_v18 = vpop.f32.mrb[29].mxu1  ;;  %v6404_v34 = vpop.f32.mrb[32].mxu0 }
 0x235   : > { %v5007_v9 = vadd.f32 %v5006_v55, %v5005_v27  ;;  %vm4558_vm6 = vcmp.ne.s32.totalorder %v9212_v2, 0  ;;  %vm4594_vm8 = vcmp.lt.s32.totalorder %v9212_v2, 0  ;;  %v4897_v5 = vsel %vm9884_vm13, %v4837_v44, 0.0  ;;  %vm9897_vm9 = vmmov %vm9886_vm1  ;;  %v6177_v6 = vpop.f32.mrb[30].mxu1  ;;  %v3971_v23 = vpop.f32.mrb[33].mxu0 }
 0x236   : > { %v5008_v13 = vsel %vm9885_vm12, %v4949_v30, 0.0  ;;  %5557 = vst.msk [vmem:[%s8663_s18 + $0xc0] sm:$0xff] %vm9886_vm1, %v6436_v43  ;;  %v4839_v4 = vsel %vm9159_vm5, %v6436_v43, 0.0  ;;  %vm9887_vm14 = vcmask 29696   ;;  %v4838_v8 = vsel %vm9168_vm0, %v6437_v20, 0.0  ;;  %vm9898_vm12 = vmmov %vm9886_vm1  ;;  %v2241_v21 = vpop.f32.mrb[31].mxu1 }
 0x237   : > { %5556 = vst.msk [vmem:[%s8663_s18 + $0xba] sm:$0x3f] %vm9887_vm14, %v6437_v20  ;;  %v5010_v59 = vsel %vm9888_vm3, %v4950_v49, 0.0  ;;  %v5009_v11 = vadd.f32 %v5008_v13, %v5007_v9  ;;  %v4952_v45 = vmul.f32 %v4839_v4, %v4839_v4  ;;  %v4898_v63 = vadd.f32 %v4897_v5, %v4896_v53  ;;  %vm9893_vm14 = vmmov %vm9886_vm1  ;;  %v6180_v42 = vpop.f32.mrb[32].mxu1 }
 0x238   : > { %vm9264_vm5 = vcmp.lt.s32.totalorder %v4701_v39, 16  ;;  %vm9273_vm0 = vcmp.lt.s32.totalorder %v4700_v24, 16  ;;  %v4899_v38 = vsel %vm9893_vm14, %v4838_v8, 0.0  ;;  %v4951_v48 = vmul.f32 %v4838_v8, %v4838_v8  ;;  %vm9902_vm14 = vmmov %vm9888_vm3  ;;  %v2251_v25 = vpop.f32.mrb[33].mxu1 }
 0x239   : > { %v6438_v41 = vadd.f32 %v6398_v16, %v6174_v0  ;;  %v6439_v61 = vadd.f32 %v3951_v15, %v2231_v18  ;;  %v4900_v10 = vadd.f32 %v4899_v38, %v4898_v63  ;;  %v5011_v29 = vadd.f32 %v5010_v59, %v5009_v11  ;;  %v6183_v0 = vpop.f32.mrb[34].mxu1  ;;  %v6407_v16 = vpop.f32.mrb[34].mxu0 }
 0x23a   : > { %vm9894_vm10 = vcmp.lt.s32.totalorder %v9132_v3, 0  ;;  %v4667_v52 = vadd.s32 18, %v9132_v3  ;;  %v4666_v36 = vadd.s32 18, %v9212_v2  ;;  %v4901_v12 = vsel %vm9897_vm9, %v4839_v4, 0.0  ;;  %vm9908_vm9 = vmmov %vm9888_vm3  ;;  %v2261_v18 = vpop.f32.mrb[35].mxu1  ;;  %v3981_v15 = vpop.f32.mrb[35].mxu0 }
 0x23b   : > { %vm9282_vm13 = vmand %vm9894_vm10, %vm4559_vm15  ;;  %v5012_v24 = vsel %vm9898_vm12, %v4951_v48, 0.0  ;;  %vm9899_vm1 = vcmask 31746   ;;  %v4841_v26 = vsel %vm9196_vm7, %v6438_v41, 0.0  ;;  %5558 = vst.msk [vmem:[%s8663_s18 + $0xc8] sm:$0xff] %vm9888_vm3, %v6439_v61  ;;  %v4840_v33 = vsel %vm9205_vm11, %v6439_v61, 0.0 }
 0x23c   : > { %5559 = vst.msk [vmem:[%s8663_s18 + $0xce] sm:$0xfc] %vm9899_vm1, %v6438_v41  ;;  %vm9302_vm15 = vmand %vm4594_vm8, %vm4558_vm6  ;;  %v5014_v40 = vsel %vm9902_vm14, %v4952_v45, 0.0  ;;  %v5013_v1 = vadd.f32 %v5012_v24, %v5011_v29  ;;  %v4954_v19 = vmul.f32 %v4841_v26, %v4841_v26  ;;  %v4902_v60 = vadd.f32 %v4901_v12, %v4900_v10 }
 0x23d   : > { %vm9903_vm7 = vmmov %vm9888_vm3  ;;  %v4953_v14 = vmul.f32 %v4840_v33, %v4840_v33  ;;  %v6440_v37 = vadd.f32 %v6401_v58, %v6177_v6  ;;  %v6441_v47 = vadd.f32 %v3961_v32, %v2241_v21  ;;  %v4703_v31 = vsel %vm9282_vm13, %v4667_v52, %v9132_v3 }
 0x23e   : > { %v4903_v51 = vsel %vm9903_vm7, %v4840_v33, 0.0  ;;  %v5015_v22 = vadd.f32 %v5014_v40, %v5013_v1  ;;  %v4702_v50 = vsel %vm9302_vm15, %v4666_v36, %v9212_v2  ;;  %vm9904_vm11 = vmmov %vm9888_vm3  ;;  %vm9906_vm8 = vcmask 25600  }
 0x23f   : > { %v4904_v44 = vadd.f32 %v4903_v51, %v4902_v60  ;;  %v4905_v55 = vsel %vm9904_vm11, %v4841_v26, 0.0  ;;  %vm9905_vm6 = vmmov %vm9888_vm3  ;;  %5561 = vst.msk [vmem:[%s8663_s18 + $0xde] sm:$0x3] %vm9906_vm8, %v6440_v37  ;;  %vm9907_vm10 = vcmask 31748   ;;  %v4843_v49 = vsel %vm9232_vm2, %v6440_v37, 0.0 }
 0x240   : > { %v5016_v27 = vsel %vm9905_vm6, %v4953_v14, 0.0  ;;  %5562 = vst.msk [vmem:[%s8663_s18 + $0xdc] sm:$0xf0] %vm9907_vm10, %v6440_v37  ;;  %v4842_v3 = vsel %vm9241_vm4, %v6441_v47, 0.0  ;;  %vm9909_vm13 = vmmov %vm9888_vm3  ;;  %v4956_v35 = vmul.f32 %v4843_v49, %v4843_v49  ;;  %v6442_v30 = vadd.f32 %v6404_v34, %v6180_v42 }
 0x241   : > { %5560 = vst.msk [vmem:[%s8663_s18 + $0xd6] sm:$0xff] %vm9908_vm9, %v6441_v47  ;;  %v5018_v2 = vsel %vm9909_vm13, %v4954_v19, 0.0  ;;  %v5017_v7 = vadd.f32 %v5016_v27, %v5015_v22  ;;  %v4906_v54 = vadd.f32 %v4905_v55, %v4904_v44  ;;  %vm9910_vm12 = vmmov %vm9888_vm3  ;;  %v4955_v17 = vmul.f32 %v4842_v3, %v4842_v3 }
 0x242   : > { %v4907_v57 = vsel %vm9910_vm12, %v4842_v3, 0.0  ;;  %v6443_v43 = vadd.f32 %v3971_v23, %v2251_v25  ;;  %vm9328_vm2 = vcmp.lt.s32.totalorder %v4703_v31, 16  ;;  %vm9332_vm4 = vcmp.lt.s32.totalorder %v4702_v50, 16  ;;  %vm9915_vm1 = vmmov %vm9888_vm3 }
 0x243   : > { %v4908_v20 = vadd.f32 %v4907_v57, %v4906_v54  ;;  %v5019_v62 = vadd.f32 %v5018_v2, %v5017_v7  ;;  %v4909_v5 = vsel %vm9915_vm1, %v4843_v49, 0.0  ;;  %vm9916_vm3 = vmmov %vm9915_vm1  ;;  %vm9917_vm15 = vcmask 27648  }
 0x244   : > { %v5020_v13 = vsel %vm9916_vm3, %v4955_v17, 0.0  ;;  %5564 = vst.msk [vmem:[%s8663_s18 + $0xec] sm:$0xf] %vm9917_vm15, %v6442_v30  ;;  %vm9918_vm14 = vcmask 31750   ;;  %v4845_v4 = vsel %vm9264_vm5, %v6442_v30, 0.0  ;;  %vm9919_vm7 = vmmov %vm9915_vm1  ;;  %v4844_v8 = vsel %vm9273_vm0, %v6443_v43, 0.0 }
 0x245   : > { %5565 = vst.msk [vmem:[%s8663_s18 + $0xea] sm:$0xc0] %vm9918_vm14, %v6442_v30  ;;  %vm9920_vm11 = vmmov %vm9915_vm1  ;;  %v5021_v11 = vadd.f32 %v5020_v13, %v5019_v62  ;;  %v4958_v45 = vmul.f32 %v4845_v4, %v4845_v4  ;;  %v4910_v63 = vadd.f32 %v4909_v5, %v4908_v20  ;;  %v4957_v46 = vmul.f32 %v4844_v8, %v4844_v8 }
 0x246   : > { %5563 = vst.msk [vmem:[%s8663_s18 + $0xe4] sm:$0xff] %vm9919_vm7, %v6443_v43  ;;  %v5022_v59 = vsel %vm9920_vm11, %v4956_v35, 0.0  ;;  %vm9921_vm6 = vmmov %vm9915_vm1  ;;  %v6444_v48 = vadd.f32 %v6407_v16, %v6183_v0  ;;  %v6445_v41 = vadd.f32 %v3981_v15, %v2261_v18  ;;  %vm9924_vm8 = vcmask 29696  }
 0x247   : > { %v4911_v38 = vsel %vm9921_vm6, %v4844_v8, 0.0  ;;  %v5023_v10 = vadd.f32 %v5022_v59, %v5021_v11  ;;  %vm9922_vm5 = vmmov %vm9915_vm1  ;;  %vm9931_vm3 = vcmask 25600  }
 0x248   : > { %v4912_v61 = vadd.f32 %v4911_v38, %v4910_v63  ;;  %v4913_v56 = vsel %vm9922_vm5, %v4845_v4, 0.0  ;;  %vm9923_vm0 = vmmov %vm9915_vm1  ;;  %5567 = vst.msk [vmem:[%s8663_s18 + $0xfa] sm:$0x3f] %vm9924_vm8, %v6444_v48  ;;  %v4847_v39 = vsel %vm9328_vm2, %v6444_v48, 0.0  ;;  %v4846_v52 = vsel %vm9332_vm4, %v6445_v41, 0.0 }
 0x249   : > { %v5024_v29 = vsel %vm9923_vm0, %v4957_v46, 0.0  ;;  %vm9925_vm10 = vmmov %vm9923_vm0  ;;  %v4960_v26 = vmul.f32 %v4847_v39, %v4847_v39  ;;  %v4959_v6 = vmul.f32 %v4846_v52, %v4846_v52  ;;  %vm5038_vm4 = vcmask 1040384  }
 0x24a   : > { %5566 = vst.msk [vmem:[%s8663_s18 + $0xf2] sm:$0xff] %vm9925_vm10, %v6445_v41  ;;  %v5025_v36 = vadd.f32 %v5024_v29, %v5023_v10  ;;  %v4914_v12 = vadd.f32 %v4913_v56, %v4912_v61  ;;  %vm9926_vm9 = vmmov %vm9923_vm0 }
 0x24b   : > { %v5026_v24 = vsel %vm9926_vm9, %v4958_v45, 0.0  ;;  %vm9927_vm13 = vmmov %vm9923_vm0 }
 0x24c   : > { %v4915_v33 = vsel %vm9927_vm13, %v4846_v52, 0.0  ;;  %v5027_v28 = vadd.f32 %v5026_v24, %v5025_v36  ;;  %vm9928_vm12 = vmmov %vm9924_vm8 }
 0x24d   : > { %v4916_v58 = vadd.f32 %v4915_v33, %v4914_v12  ;;  %v4917_v40 = vsel %vm9928_vm12, %v4847_v39, 0.0  ;;  %vm9929_vm1 = vmmov %vm9923_vm0 }
 0x24e   : > { %v5028_v1 = vsel %vm9929_vm1, %v4959_v6, 0.0  ;;  %vm9930_vm2 = vmmov %vm9924_vm8 }
 0x24f   : > { %v4918_v19 = vadd.f32 %v4917_v40, %v4916_v58  ;;  %v5029_v60 = vadd.f32 %v5028_v1, %v5027_v28  ;;  %v5030_v21 = vsel %vm9930_vm2, %v4960_v26, 0.0 }
 0x251   : > { %v4919_v32 = vrot.slane %v4918_v19, 4  ;;  %v5031_v51 = vadd.f32 %v5030_v21, %v5029_v60 }
 0x253   : > { %v4920_v14 = vadd.f32 %v4919_v32, %v4918_v19  ;;  %v5032_v37 = vrot.slane %v5031_v51, 4 }
 0x255   : > { %v4921_v47 = vrot.slane %v4920_v14, 2  ;;  %v5033_v44 = vadd.f32 %v5032_v37, %v5031_v51 }
 0x257   : > { %v4922_v22 = vadd.f32 %v4921_v47, %v4920_v14  ;;  %v5034_v31 = vrot.slane %v5033_v44, 2 }
 0x259   : > { %v4923_v50 = vrot.slane %v4922_v22, 1  ;;  %v5035_v55 = vadd.f32 %v5034_v31, %v5033_v44 }
 0x25b   : > { %v5036_v27 = vrot.slane %v5035_v55, 1  ;;  %v4924_v49 = vadd.f32 %v4923_v50, %v4922_v22 }
 0x25d   : > { %v5037_v3 = vadd.f32 %v5036_v27, %v5035_v55 }
 0x25f   : > { %v5039_v42 = vsel %vm5038_vm4, %v4924_v49, %v5037_v3 }
 0x260   : > { %5040 = vst.msk [vmem:[%s226_s22] sm:$0x3] %vm9931_vm3, %v5039_v42 }
 0x261 PF: > { %s14_s14 = sadd.s32 1, %s6817_s14   ;;  %s9932_s12 = smov %s6813_s13 }
 0x262   : > { %p11_p5 = scmp.ge.s32.totalorder %s14_s14, 4   ;;  %s9933_s13 = smov %s9935_s15 }
 0x264   :  { %13 = sbr.rel (!%p11_p5) target bundleno = 2 (0x2), region = 96 }

</bundles_post_ra>
